<compile_context>
chip_gen: v5e
topology: v5e:2x2
jax: 0.10.0
libtpu: 0.0.40
codegen_flags: <defaults>
</compile_context>

<pallas_src>
import jax
import jax.numpy as jnp
from jax.experimental import pallas as pl
from jax.experimental.pallas import tpu as pltpu

_K = 31                      # avg_pool2d kernel size
_PAD = 15                    # avg_pool2d padding
_INV_KK = 1.0 / float(_K * _K)


def _band(n, dtype):
    """(n, n) 0/1 band matrix with half-width _PAD — the 1-D box-filter operator."""
    idx = jnp.arange(n, dtype=jnp.int32)
    return (jnp.abs(idx[:, None] - idx[None, :]) <= _PAD).astype(dtype)


def _finish(pp_raw, mm_raw, pooled, bce_ref, wiou_ref):
    """Lane-dense elementwise + reduction phase shared by both pooling paths.

    pp_raw / mm_raw: (TN, H*W) logits / targets in their HBM dtype.
    pooled:          (TN, H*W) f32 box-filtered mask.
    """
    pp = pp_raw.astype(jnp.float32)
    mm = mm_raw.astype(jnp.float32)

    # Stable BCE-with-logits, reduced immediately so its temporaries die before
    # the IoU temporaries go live.  e = exp(-|x|) is shared with the sigmoid.
    e = jnp.exp(-jnp.abs(pp))
    bce = jnp.maximum(pp, 0.0) - pp * mm + jnp.log1p(e)
    bce_ref[0] = jnp.sum(jnp.sum(bce, axis=1, keepdims=True), axis=0, keepdims=True)

    # sigmoid(pp): the divide rides the EUP (approx vrcp), not the VALU.
    inv = pl.reciprocal(1.0 + e, approx=True)
    sp = jnp.where(pp >= 0.0, inv, e * inv)

    weit = 1.0 + 5.0 * jnp.abs(pooled - mm)
    wsp = weit * sp
    wm = weit * mm
    # Per-row reductions first (mostly plain vadds), then the tiny cross-row combine.
    inter = jnp.sum(wsp * mm, axis=1, keepdims=True)         # (TN, 1)
    union = jnp.sum(wsp + wm, axis=1, keepdims=True)         # (TN, 1)
    wiou = 1.0 - (inter + 1.0) / (union - inter + 1.0)
    wiou_ref[0] = jnp.sum(wiou, axis=0, keepdims=True)       # (1, 1)


def _kernel_dense_pool(pmat_ref, pred_ref, mask_ref, bce_ref, wiou_ref):
    """Small images: pooled = mask @ (A_h kron A_w) — dense layout throughout."""
    mm_raw = mask_ref[...]                                   # (TN, H*W), loaded once
    pooled = jnp.dot(mm_raw.astype(pmat_ref.dtype), pmat_ref[...],
                     preferred_element_type=jnp.float32) * _INV_KK
    _finish(pred_ref[...], mm_raw, pooled, bce_ref, wiou_ref)


def _kernel_separable_pool(aw_ref, ahbd_ref, pred_ref, mask_ref, mrows_ref,
                           bce_ref, wiou_ref):
    """Larger images: separable box filter as two full-width MXU matmuls."""
    # TODO(synk): on v5e at large H,W the banded matmuls become co-critical with
    # the VPU (197 TF/s MXU); a separable running-sum (prefix) pool would be the
    # better trade there.  Kept as matmuls: v6e/v7x MXU has large slack.
    # W pass: (TN*H, W) @ (W, W); integer counts <= 31 are exact after the cast.
    row = jnp.dot(mrows_ref[...], aw_ref[...],
                  preferred_element_type=jnp.float32).astype(ahbd_ref.dtype)
    # H pass, de-batched into ONE matmul with the block-diagonal I_TN kron A_h.
    box = jnp.dot(ahbd_ref[...], row, preferred_element_type=jnp.float32)
    pooled = (box * _INV_KK).reshape(mask_ref.shape)         # -> dense (TN, H*W)
    _finish(pred_ref[...], mask_ref[...], pooled, bce_ref, wiou_ref)


def _pick_block_n(N, H, W, in_stream_bytes, pool_itemsize, separable):
    """Largest divisor of N whose *live f32 working set* (not input bytes) fits VMEM."""
    HW = H * W
    budget = 28 * 1024 * 1024                  # headroom under the 48 MiB vmem limit
    per_elem = 8 * 4 + 2 * in_stream_bytes     # ~8 live f32 temps + 2x-buffered inputs
    if separable:
        per_elem += 2 * 4 + 2 * pool_itemsize  # row/box f32 + mask-rows stream

    def const_bytes(d):                        # double-buffered resident constants
        if separable:
            return 2 * pool_itemsize * (W * W + (d * H) * (d * H))
        return 2 * pool_itemsize * HW * HW

    def fits(d):
        if separable and d * H > max(H, 512):  # bound the block-diag H-pass inflation
            return False
        return d * HW * per_elem + const_bytes(d) <= budget

    divisors = [d for d in range(1, N + 1) if N % d == 0]
    cand = [d for d in divisors if fits(d)] or [1]
    # Prefer sublane-aligned blocks, then G >= 2 (v7x 2-TC split), then the biggest.
    aligned = [d for d in cand if d % 8 == 0 or d == N] or cand
    multi = [d for d in aligned if N // d >= 2] or aligned
    return max(multi)


def bce_iou_loss(pred, mask, *, block_n=None):
    """Pallas TPU implementation of BCEIoU_loss.forward(pred, mask). Returns f32 scalar."""
    assert pred.shape == mask.shape and pred.ndim == 4
    B, C, H, W = pred.shape
    N, HW = B * C, H * W

    # bf16 pooling operands are exact for binary masks (counts <= 961 accumulate
    # in f32); keep f32 operands when a soft f32 mask is supplied.
    pool_dtype = jnp.bfloat16 if mask.dtype == jnp.bfloat16 else jnp.float32
    pool_itemsize = jnp.dtype(pool_dtype).itemsize

    use_dense_pool = HW <= 1024        # (H*W, H*W) pool operator stays <= 2 MiB bf16
    if block_n is None:
        block_n = _pick_block_n(
            N, H, W, pred.dtype.itemsize + mask.dtype.itemsize,
            pool_itemsize, not use_dense_pool)
    assert N % block_n == 0
    G = N // block_n

    p2 = pred.reshape(N, HW)           # lane-dense layouts for the elementwise phase
    m2 = mask.reshape(N, HW)

    out_shape = (jax.ShapeDtypeStruct((G, 1, 1), jnp.float32),
                 jax.ShapeDtypeStruct((G, 1, 1), jnp.float32))
    out_specs = [pl.BlockSpec((1, 1, 1), lambda g: (g, 0, 0)),
                 pl.BlockSpec((1, 1, 1), lambda g: (g, 0, 0))]
    compiler_params = pltpu.CompilerParams(
        dimension_semantics=("parallel",),   # independent per-block partials
        vmem_limit_bytes=48 * 1024 * 1024)

    if use_dense_pool:
        # Hoisted constant: full 2-D 31x31 box-filter operator A_h kron A_w.
        pmat = jnp.kron(_band(H, pool_dtype), _band(W, pool_dtype))     # (HW, HW)
        bce_part, wiou_part = pl.pallas_call(
            _kernel_dense_pool,
            out_shape=out_shape,
            grid_spec=pltpu.PrefetchScalarGridSpec(
                num_scalar_prefetch=0, grid=(G,),
                in_specs=[
                    pl.BlockSpec((HW, HW), lambda g: (0, 0)),        # resident constant
                    pl.BlockSpec((block_n, HW), lambda g: (g, 0)),   # pred slab
                    pl.BlockSpec((block_n, HW), lambda g: (g, 0)),   # mask slab
                ],
                out_specs=out_specs),
            compiler_params=compiler_params,
        )(pmat, p2, m2)
    else:
        # Hoisted constants: W-band and de-batched block-diagonal H-band operators.
        a_w = _band(W, pool_dtype)                                       # (W, W)
        a_hbd = jnp.kron(jnp.eye(block_n, dtype=pool_dtype), _band(H, pool_dtype))
        m_rows = mask.reshape(N * H, W).astype(pool_dtype)   # pool-layout mask stream
        bce_part, wiou_part = pl.pallas_call(
            _kernel_separable_pool,
            out_shape=out_shape,
            grid_spec=pltpu.PrefetchScalarGridSpec(
                num_scalar_prefetch=0, grid=(G,),
                in_specs=[
                    pl.BlockSpec((W, W), lambda g: (0, 0)),                  # resident
                    pl.BlockSpec((block_n * H, block_n * H), lambda g: (0, 0)),
                    pl.BlockSpec((block_n, HW), lambda g: (g, 0)),           # pred slab
                    pl.BlockSpec((block_n, HW), lambda g: (g, 0)),           # mask slab
                    pl.BlockSpec((block_n * H, W), lambda g: (g, 0)),        # mask rows
                ],
                out_specs=out_specs),
            compiler_params=compiler_params,
        )(a_w, a_hbd, p2, m2, m_rows)

    # reduce='none' quirk: the wbce term is the *global* BCE mean (the weighted
    # normalization cancels exactly); the wiou term is the per-slice mean.
    return jnp.sum(bce_part) / float(N * HW) + jnp.sum(wiou_part) / float(N)


def _reference(pred, mask):
    """Pure-JAX reference reproducing the PyTorch code verbatim (f32 math)."""
    pred = pred.astype(jnp.float32)
    mask = mask.astype(jnp.float32)
    pooled = jax.lax.reduce_window(
        mask, 0.0, jax.lax.add,
        window_dimensions=(1, 1, _K, _K),
        window_strides=(1, 1, 1, 1),
        padding=((0, 0), (0, 0), (_PAD, _PAD), (_PAD, _PAD))) / float(_K * _K)
    weit = 1.0 + 5.0 * jnp.abs(pooled - mask)
    bce = (jnp.maximum(pred, 0.0) - pred * mask
           + jnp.log1p(jnp.exp(-jnp.abs(pred))))
    wbce_scalar = jnp.mean(bce)  # legacy reduce='none' (truthy) -> reduction='mean'
    wbce = (weit * wbce_scalar).sum(axis=(2, 3)) / weit.sum(axis=(2, 3))
    sp = jax.nn.sigmoid(pred)
    inter = (sp * mask * weit).sum(axis=(2, 3))
    union = ((sp + mask) * weit).sum(axis=(2, 3))
    wiou = 1.0 - (inter + 1.0) / (union - inter + 1.0)
    return jnp.mean(wbce + wiou)


if __name__ == "__main__":
    key = jax.random.PRNGKey(0)
    k1, k2 = jax.random.split(key)
    B, C, H, W = 2, 4, 32, 32
    # bf16 inputs in HBM (halves memory traffic); the binary mask is exact in bf16.
    pred = jax.random.normal(k1, (B, C, H, W), dtype=jnp.float32).astype(jnp.bfloat16)
    mask = (jax.random.uniform(k2, (B, C, H, W)) > 0.5).astype(jnp.bfloat16)

    loss = jax.block_until_ready(bce_iou_loss(pred, mask))
    ref = jax.block_until_ready(_reference(pred, mask))

    assert jnp.allclose(loss, ref, rtol=1e-3, atol=1e-4), (float(loss), float(ref))
    print("KERNEL_OK")
</pallas_src>

<mosaic_0001>
module attributes {stable_mosaic.version = 11 : i64} {
  func.func @_kernel_dense_pool(%arg0: i32, %arg1: memref<1024x1024xbf16, #tpu.memory_space<vmem>>, %arg2: memref<8x1024xbf16, #tpu.memory_space<vmem>>, %arg3: memref<8x1024xbf16, #tpu.memory_space<vmem>>, %arg4: memref<1x1x1xf32, #tpu.memory_space<vmem>>, %arg5: memref<1x1x1xf32, #tpu.memory_space<vmem>>) attributes {dimension_semantics = [#tpu.dimension_semantics<parallel>], iteration_bounds = array<i64: 1>, scalar_prefetch = 0 : i64, scratch_operands = 0 : i64, tpu.core_type = #tpu.core_type<tc>, window_params = [{pipeline_mode = #tpu.pipeline_mode<synchronous>, transform_indices = @transform_0, window_bounds = array<i64: 1024, 1024>}, {transform_indices = @transform_1, window_bounds = array<i64: 8, 1024>}, {transform_indices = @transform_2, window_bounds = array<i64: 8, 1024>}, {transform_indices = @transform_3, window_bounds = array<i64: 1, 1, 1>}, {transform_indices = @transform_4, window_bounds = array<i64: 1, 1, 1>}]} {
    %c0 = arith.constant 0 : index
    %c0_0 = arith.constant 0 : index
    %0 = vector.load %arg3[%c0, %c0_0] : memref<8x1024xbf16, #tpu.memory_space<vmem>>, vector<8x1024xbf16>
    %c0_1 = arith.constant 0 : index
    %c0_2 = arith.constant 0 : index
    %1 = vector.load %arg1[%c0_1, %c0_2] : memref<1024x1024xbf16, #tpu.memory_space<vmem>>, vector<1024x1024xbf16>
    %cst = arith.constant dense<0.000000e+00> : vector<8x1024xf32>
    %2 = tpu.matmul %0, %1, %cst {dimension_numbers = #tpu.dot_dimension_numbers<[1], [0], [0], [1], [0, 0, 1, 1], [], []>} : vector<8x1024xbf16>, vector<1024x1024xbf16>, vector<8x1024xf32> -> vector<8x1024xf32>
    %cst_3 = arith.constant 0.00104058278 : f32
    %3 = vector.broadcast %cst_3 : f32 to vector<8x1024xf32>
    %4 = arith.mulf %2, %3 : vector<8x1024xf32>
    %c0_4 = arith.constant 0 : index
    %c0_5 = arith.constant 0 : index
    %5 = vector.load %arg2[%c0_4, %c0_5] : memref<8x1024xbf16, #tpu.memory_space<vmem>>, vector<8x1024xbf16>
    %6 = arith.extf %5 : vector<8x1024xbf16> to vector<8x1024xf32>
    %7 = arith.extf %0 : vector<8x1024xbf16> to vector<8x1024xf32>
    %8 = math.absf %6 : vector<8x1024xf32>
    %cst_6 = arith.constant 0.000000e+00 : f32
    %9 = vector.broadcast %cst_6 : f32 to vector<8x1024xf32>
    %10 = arith.subf %9, %8 : vector<8x1024xf32>
    %11 = math.exp %10 : vector<8x1024xf32>
    %cst_7 = arith.constant 0.000000e+00 : f32
    %12 = vector.broadcast %cst_7 : f32 to vector<8x1024xf32>
    %13 = arith.maximumf %6, %12 : vector<8x1024xf32>
    %14 = arith.mulf %6, %7 : vector<8x1024xf32>
    %15 = arith.subf %13, %14 : vector<8x1024xf32>
    %16 = math.log1p %11 : vector<8x1024xf32>
    %17 = arith.addf %15, %16 : vector<8x1024xf32>
    %cst_8 = arith.constant dense<0.000000e+00> : vector<8xf32>
    %18 = vector.multi_reduction <add>, %17, %cst_8 [1] : vector<8x1024xf32> to vector<8xf32>
    %19 = vector.shape_cast %18 : vector<8xf32> to vector<8x1xf32>
    %cst_9 = arith.constant dense<0.000000e+00> : vector<1xf32>
    %20 = vector.multi_reduction <add>, %19, %cst_9 [0] : vector<8x1xf32> to vector<1xf32>
    %21 = vector.shape_cast %20 : vector<1xf32> to vector<1x1xf32>
    %c0_10 = arith.constant 0 : index
    %c0_11 = arith.constant 0 : index
    %c0_12 = arith.constant 0 : index
    %22 = vector.load %arg4[%c0_10, %c0_11, %c0_12] : memref<1x1x1xf32, #tpu.memory_space<vmem>>, vector<1x1x1xf32>
    %23 = vector.shape_cast %22 : vector<1x1x1xf32> to vector<1x1xf32>
    %24 = vector.shape_cast %21 : vector<1x1xf32> to vector<1x1x1xf32>
    tpu.vector_store %arg4[%c0_10, %c0_11, %c0_12], %24 {strides = array<i32>} : memref<1x1x1xf32, #tpu.memory_space<vmem>>, vector<1x1x1xf32>,
    %cst_13 = arith.constant 1.000000e+00 : f32
    %25 = vector.broadcast %cst_13 : f32 to vector<8x1024xf32>
    %26 = arith.addf %25, %11 : vector<8x1024xf32>
    %27 = tpu.reciprocal %26 {approx = true} : vector<8x1024xf32> -> vector<8x1024xf32>
    %cst_14 = arith.constant 0.000000e+00 : f32
    %28 = vector.broadcast %cst_14 : f32 to vector<8x1024xf32>
    %29 = arith.cmpf oge, %6, %28 : vector<8x1024xf32>
    %30 = arith.mulf %11, %27 : vector<8x1024xf32>
    %31 = arith.select %29, %27, %30 : vector<8x1024xi1>, vector<8x1024xf32>
    %32 = arith.subf %4, %7 : vector<8x1024xf32>
    %33 = math.absf %32 : vector<8x1024xf32>
    %cst_15 = arith.constant 5.000000e+00 : f32
    %34 = vector.broadcast %cst_15 : f32 to vector<8x1024xf32>
    %35 = arith.mulf %34, %33 : vector<8x1024xf32>
    %cst_16 = arith.constant 1.000000e+00 : f32
    %36 = vector.broadcast %cst_16 : f32 to vector<8x1024xf32>
    %37 = arith.addf %36, %35 : vector<8x1024xf32>
    %38 = arith.mulf %37, %31 : vector<8x1024xf32>
    %39 = arith.mulf %37, %7 : vector<8x1024xf32>
    %40 = arith.mulf %38, %7 : vector<8x1024xf32>
    %cst_17 = arith.constant dense<0.000000e+00> : vector<8xf32>
    %41 = vector.multi_reduction <add>, %40, %cst_17 [1] : vector<8x1024xf32> to vector<8xf32>
    %42 = vector.shape_cast %41 : vector<8xf32> to vector<8x1xf32>
    %43 = arith.addf %38, %39 : vector<8x1024xf32>
    %cst_18 = arith.constant dense<0.000000e+00> : vector<8xf32>
    %44 = vector.multi_reduction <add>, %43, %cst_18 [1] : vector<8x1024xf32> to vector<8xf32>
    %45 = vector.shape_cast %44 : vector<8xf32> to vector<8x1xf32>
    %cst_19 = arith.constant 1.000000e+00 : f32
    %46 = vector.broadcast %cst_19 : f32 to vector<8x1xf32>
    %47 = arith.addf %42, %46 : vector<8x1xf32>
    %48 = arith.subf %45, %42 : vector<8x1xf32>
    %cst_20 = arith.constant 1.000000e+00 : f32
    %49 = vector.broadcast %cst_20 : f32 to vector<8x1xf32>
    %50 = arith.addf %48, %49 : vector<8x1xf32>
    %51 = arith.divf %47, %50 : vector<8x1xf32>
    %cst_21 = arith.constant 1.000000e+00 : f32
    %52 = vector.broadcast %cst_21 : f32 to vector<8x1xf32>
    %53 = arith.subf %52, %51 : vector<8x1xf32>
    %cst_22 = arith.constant dense<0.000000e+00> : vector<1xf32>
    %54 = vector.multi_reduction <add>, %53, %cst_22 [0] : vector<8x1xf32> to vector<1xf32>
    %55 = vector.shape_cast %54 : vector<1xf32> to vector<1x1xf32>
    %c0_23 = arith.constant 0 : index
    %c0_24 = arith.constant 0 : index
    %c0_25 = arith.constant 0 : index
    %56 = vector.load %arg5[%c0_23, %c0_24, %c0_25] : memref<1x1x1xf32, #tpu.memory_space<vmem>>, vector<1x1x1xf32>
    %57 = vector.shape_cast %56 : vector<1x1x1xf32> to vector<1x1xf32>
    %58 = vector.shape_cast %55 : vector<1x1xf32> to vector<1x1x1xf32>
    tpu.vector_store %arg5[%c0_23, %c0_24, %c0_25], %58 {strides = array<i32>} : memref<1x1x1xf32, #tpu.memory_space<vmem>>, vector<1x1x1xf32>,
    return
  }
  func.func @transform_0(%arg0: i32) -> (i32, i32) {
    %c0_i32 = arith.constant 0 : i32
    %c0_i32_0 = arith.constant 0 : i32
    %c0_i32_1 = arith.constant 0 : i32
    return %c0_i32, %c0_i32_0 : i32, i32
  }
  func.func @transform_1(%arg0: i32) -> (i32, i32) {
    %c0_i32 = arith.constant 0 : i32
    %c0_i32_0 = arith.constant 0 : i32
    return %arg0, %c0_i32 : i32, i32
  }
  func.func @transform_2(%arg0: i32) -> (i32, i32) {
    %c0_i32 = arith.constant 0 : i32
    %c0_i32_0 = arith.constant 0 : i32
    return %arg0, %c0_i32 : i32, i32
  }
  func.func @transform_3(%arg0: i32) -> (i32, i32, i32) {
    %c0_i32 = arith.constant 0 : i32
    %c0_i32_0 = arith.constant 0 : i32
    %c0_i32_1 = arith.constant 0 : i32
    return %arg0, %c0_i32, %c0_i32_0 : i32, i32, i32
  }
  func.func @transform_4(%arg0: i32) -> (i32, i32, i32) {
    %c0_i32 = arith.constant 0 : i32
    %c0_i32_0 = arith.constant 0 : i32
    %c0_i32_1 = arith.constant 0 : i32
    return %arg0, %c0_i32, %c0_i32_0 : i32, i32, i32
  }
}

</mosaic_0001>

<bundles_post_ra>
// kernel: tpu_custom_call.1
= control target key start
LH: loop header
LB: loop body
LE: loop exit
PB: predicated region body
PF: predicated region fallthrough
CT: control target
= control target key end

     0   :  { %10 = vsyncpa [#allocation3], 0  ;;  %s7570_s0 = inlined_call_operand.hbm [shape: bf16[1024,1024], index: 0, kind: input, shape index: {}]   ;;  %s7571_s1 = inlined_call_operand.hbm [shape: bf16[8,1024], index: 1, kind: input, shape index: {}]   ;;  %s7572_s2 = inlined_call_operand.hbm [shape: bf16[8,1024], index: 2, kind: input, shape index: {}]   ;;  %s7573_s3 = inlined_call_operand.hbm [shape: f32[1,1,1], index: 3, kind: output, shape index: {0}]   ;;  %s7574_s4 = inlined_call_operand.hbm [shape: f32[1,1,1], index: 4, kind: output, shape index: {1}]  }
   0x1   :  { %11 = vsyncpa [#allocation6], 0 }
   0x2   :  { %12 = vsyncpa [#allocation4], 0  ;;  %s32_s17 = sshll.u32 %s7571_s1, 4  ;;  %s33_s17 = int_to_ptr.hbm [resolvable:$true] %s32_s17 }
   0x3   :  { %13 = vsyncpa [#allocation10], 0  ;;  %s7109_s18 = smov [#allocation5]   ;;  %s18_s22 = sshll.u32 %s7570_s0, 4  ;;  %s19_s22 = int_to_ptr.hbm [resolvable:$true] %s18_s22 }
   0x4   :  { %s34_s19 = sshll.u32 %s7109_s18, 4  ;;  %s7110_s23 = smov [#allocation2]   ;;  %s35_s19 = int_to_ptr.vmem [resolvable:$true] %s34_s19 }
   0x5   :  { %37 = dma.hbm_to_vmem [thread:$0]  %s33_s17, 512, %s35_s19, [#allocation6]  }
   0x6   :  { %s20_s24 = sshll.u32 %s7110_s23, 4  ;;  %s7111_s25 = smov 512   ;;  %s21_s24 = int_to_ptr.vmem [resolvable:$true] %s20_s24 }
   0x7   :  { %s7112_s26 = smov 32   ;;  %s43_s1 = sshll.u32 %s7572_s2, 4  ;;  %s44_s1 = int_to_ptr.hbm [resolvable:$true] %s43_s1 }
   0x8   :  { %26 = dma.hbm_to_vmem [thread:$0]  %s19_s22, 65536, %s21_s24, [#allocation3], %s7111_s25, %s7111_s25, %s7112_s26  }
   0x9   :  { %s7113_s29 = smov [#allocation7]  }
   0xa   :  { %s45_s30 = sshll.u32 %s7113_s29, 4  ;;  %s46_s30 = int_to_ptr.vmem [resolvable:$true] %s45_s30 }
   0xb   :  { %48 = dma.hbm_to_vmem [thread:$0]  %s44_s1, 512, %s46_s30, [#allocation6]  }
   0xc   :  { %7101 = dma.done.wait [#allocation3], 65536  }
   0xd   :  { %7102 = vsyncadd [#allocation3], 4294901760 }
   0xe   :  { %7103 = dma.done.wait [#allocation6], 1024  }
   0xf   :  { %7104 = vsyncadd [#allocation6], 4294966272  ;;  %v4586_v0 = vld [vmem:[#allocation2 + $0x1c0] sm:$0xf]  ;;  %s7114_s0 = smov [#allocation8]   ;;  %s4333_s7 = sshll.u32 %s7573_s3, 4  ;;  %s4334_s7 = int_to_ptr.hbm [resolvable:$true] %s4333_s7 }
  0x10   :  { %v6468_v1 = vld [vmem:[#allocation2 + $0x1dc] sm:$0xf0]  ;;  %s4331_s2 = sshll.u32 %s7114_s0, 4  ;;  %s7115_s3 = smov [#allocation9]   ;;  %s4332_s2 = int_to_ptr.vmem [resolvable:$true] %s4331_s2 }
  0x11   :  { %v4842_v2 = vld [vmem:[#allocation2 + $0x3c0] sm:$0xf]  ;;  %v4587_v3 = vor.u32 %v6468_v1, %v4586_v0  ;;  %s4342_s8 = sshll.u32 %s7115_s3, 4  ;;  %s4344_s11 = sshll.u32 %s7574_s4, 4  ;;  %s4343_s8 = int_to_ptr.vmem [resolvable:$true] %s4342_s8  ;;  %s4345_s11 = int_to_ptr.hbm [resolvable:$true] %s4344_s11 }
  0x12   :  { %v6532_v4 = vld [vmem:[#allocation2 + $0x3dc] sm:$0xf0] }
  0x13   :  { %v5098_v5 = vld [vmem:[#allocation2 + $0x5c0] sm:$0xf]  ;;  %v4843_v7 = vor.u32 %v6532_v4, %v4842_v2  ;;  %3165 = vmatpush.bf16.msra.mxu0 %v4587_v3 }
  0x14   :  { %v6596_v6 = vld [vmem:[#allocation2 + $0x5dc] sm:$0xf0] }
  0x15   :  { %v5099_v8 = vor.u32 %v6596_v6, %v5098_v5  ;;  %v5354_v9 = vld [vmem:[#allocation2 + $0x7c0] sm:$0xf]  ;;  %3178 = vmatpush.bf16.msra.mxu1 %v4843_v7 }
  0x16   :  { %v6660_v10 = vld [vmem:[#allocation2 + $0x7dc] sm:$0xf0] }
  0x17   :  { %v4554_v11 = vld [vmem:[#allocation2 + $0x180] sm:$0xf]  ;;  %v5355_v12 = vor.u32 %v6660_v10, %v5354_v9  ;;  %3191 = vmatpush.bf16.msra.mxu2 %v5099_v8 }
  0x18   :  { %v6460_v13 = vld [vmem:[#allocation2 + $0x19c] sm:$0xf0] }
  0x19   :  { %v4810_v14 = vld [vmem:[#allocation2 + $0x380] sm:$0xf]  ;;  %v4555_v16 = vor.u32 %v6460_v13, %v4554_v11  ;;  %3204 = vmatpush.bf16.msra.mxu3 %v5355_v12 }
  0x1a   :  { %v6524_v15 = vld [vmem:[#allocation2 + $0x39c] sm:$0xf0] }
  0x1b   :  { %v4811_v17 = vor.u32 %v6524_v15, %v4810_v14  ;;  %v5066_v18 = vld [vmem:[#allocation2 + $0x580] sm:$0xf]  ;;  %3166 = vmatpush.bf16.msra.mxu0 %v4555_v16 }
  0x1c   :  { %v6588_v19 = vld [vmem:[#allocation2 + $0x59c] sm:$0xf0] }
  0x1d   :  { %v5322_v20 = vld [vmem:[#allocation2 + $0x780] sm:$0xf]  ;;  %v5067_v21 = vor.u32 %v6588_v19, %v5066_v18  ;;  %3179 = vmatpush.bf16.msra.mxu1 %v4811_v17 }
  0x1e   :  { %v6652_v22 = vld [vmem:[#allocation2 + $0x79c] sm:$0xf0] }
  0x1f   :  { %v4522_v23 = vld [vmem:[#allocation2 + $0x140] sm:$0xf]  ;;  %v5323_v25 = vor.u32 %v6652_v22, %v5322_v20  ;;  %3192 = vmatpush.bf16.msra.mxu2 %v5067_v21 }
  0x20   :  { %v6452_v24 = vld [vmem:[#allocation2 + $0x15c] sm:$0xf0] }
  0x21   :  { %v4778_v26 = vld [vmem:[#allocation2 + $0x340] sm:$0xf]  ;;  %v4523_v29 = vor.u32 %v6452_v24, %v4522_v23  ;;  %3205 = vmatpush.bf16.msra.mxu3 %v5323_v25 }
  0x22   :  { %v6516_v27 = vld [vmem:[#allocation2 + $0x35c] sm:$0xf0] }
  0x23   :  { %v5034_v28 = vld [vmem:[#allocation2 + $0x540] sm:$0xf]  ;;  %v4779_v33 = vor.u32 %v6516_v27, %v4778_v26  ;;  %3167 = vmatpush.bf16.msra.mxu0 %v4523_v29 }
  0x24   :  { %v6580_v30 = vld [vmem:[#allocation2 + $0x55c] sm:$0xf0] }
  0x25   :  { %v5290_v31 = vld [vmem:[#allocation2 + $0x740] sm:$0xf]  ;;  %v5035_v34 = vor.u32 %v6580_v30, %v5034_v28  ;;  %3180 = vmatpush.bf16.msra.mxu1 %v4779_v33 }
  0x26   :  { %v6644_v32 = vld [vmem:[#allocation2 + $0x75c] sm:$0xf0] }
  0x27   :  { %v4490_v35 = vld [vmem:[#allocation2 + $0x100] sm:$0xf]  ;;  %v5291_v38 = vor.u32 %v6644_v32, %v5290_v31  ;;  %3193 = vmatpush.bf16.msra.mxu2 %v5035_v34 }
  0x28   :  { %v6444_v36 = vld [vmem:[#allocation2 + $0x11c] sm:$0xf0] }
  0x29   :  { %v4746_v37 = vld [vmem:[#allocation2 + $0x300] sm:$0xf]  ;;  %v4491_v44 = vor.u32 %v6444_v36, %v4490_v35  ;;  %3206 = vmatpush.bf16.msra.mxu3 %v5291_v38 }
  0x2a   :  { %v6508_v39 = vld [vmem:[#allocation2 + $0x31c] sm:$0xf0] }
  0x2b   :  { %v5002_v40 = vld [vmem:[#allocation2 + $0x500] sm:$0xf]  ;;  %v4747_v45 = vor.u32 %v6508_v39, %v4746_v37  ;;  %3168 = vmatpush.bf16.msra.mxu0 %v4491_v44 }
  0x2c   :  { %v6572_v41 = vld [vmem:[#allocation2 + $0x51c] sm:$0xf0] }
  0x2d   :  { %v5258_v42 = vld [vmem:[#allocation2 + $0x700] sm:$0xf]  ;;  %v5003_v46 = vor.u32 %v6572_v41, %v5002_v40  ;;  %3181 = vmatpush.bf16.msra.mxu1 %v4747_v45 }
  0x2e   :  { %v6636_v43 = vld [vmem:[#allocation2 + $0x71c] sm:$0xf0] }
  0x2f   :  { %v4458_v47 = vld [vmem:[#allocation2 + $0xc0] sm:$0xf]  ;;  %v5259_v50 = vor.u32 %v6636_v43, %v5258_v42  ;;  %3194 = vmatpush.bf16.msra.mxu2 %v5003_v46 }
  0x30   :  { %v6436_v48 = vld [vmem:[#allocation2 + $0xdc] sm:$0xf0] }
  0x31   :  { %v4714_v49 = vld [vmem:[#allocation2 + $0x2c0] sm:$0xf]  ;;  %v4459_v56 = vor.u32 %v6436_v48, %v4458_v47  ;;  %3207 = vmatpush.bf16.msra.mxu3 %v5259_v50 }
  0x32   :  { %v6500_v51 = vld [vmem:[#allocation2 + $0x2dc] sm:$0xf0] }
  0x33   :  { %v4970_v52 = vld [vmem:[#allocation2 + $0x4c0] sm:$0xf]  ;;  %v4715_v57 = vor.u32 %v6500_v51, %v4714_v49  ;;  %3169 = vmatpush.bf16.msra.mxu0 %v4459_v56 }
  0x34   :  { %v6564_v53 = vld [vmem:[#allocation2 + $0x4dc] sm:$0xf0] }
  0x35   :  { %v5226_v54 = vld [vmem:[#allocation2 + $0x6c0] sm:$0xf]  ;;  %v4971_v58 = vor.u32 %v6564_v53, %v4970_v52  ;;  %3182 = vmatpush.bf16.msra.mxu1 %v4715_v57 }
  0x36   :  { %v6628_v55 = vld [vmem:[#allocation2 + $0x6dc] sm:$0xf0] }
  0x37   :  { %v4426_v59 = vld [vmem:[#allocation2 + $0x80] sm:$0xf]  ;;  %v5227_v62 = vor.u32 %v6628_v55, %v5226_v54  ;;  %3195 = vmatpush.bf16.msra.mxu2 %v4971_v58  ;;  %v62_v58 = vld [vmem:[#allocation7 + $0x8] sm:$0xff] }
  0x38   :  { %v6428_v60 = vld [vmem:[#allocation2 + $0x9c] sm:$0xf0] }
  0x39   :  { %v4682_v61 = vld [vmem:[#allocation2 + $0x280] sm:$0xf]  ;;  %v4427_v4 = vor.u32 %v6428_v60, %v4426_v59  ;;  %3208 = vmatpush.bf16.msra.mxu3 %v5227_v62 }
  0x3a   :  { %v6492_v63 = vld [vmem:[#allocation2 + $0x29c] sm:$0xf0] }
  0x3b   :  { %v4938_v0 = vld [vmem:[#allocation2 + $0x480] sm:$0xf]  ;;  %v4683_v5 = vor.u32 %v6492_v63, %v4682_v61  ;;  %3170 = vmatpush.bf16.msra.mxu0 %v4427_v4  ;;  %v583_v63 = vunpack.c.l.b16 %v62_v58 }
  0x3c   :  { %v6556_v1 = vld [vmem:[#allocation2 + $0x49c] sm:$0xf0] }
  0x3d   :  { %v5194_v2 = vld [vmem:[#allocation2 + $0x680] sm:$0xf]  ;;  %v4939_v6 = vor.u32 %v6556_v1, %v4938_v0  ;;  %3183 = vmatpush.bf16.msra.mxu1 %v4683_v5  ;;  %v584_v0 = vunpack.c.h.b16 %v62_v58  ;;  %v7150_v4 = vpack.c.b16 %v583_v63, %v583_v63 }
  0x3e   :  { %v6620_v3 = vld [vmem:[#allocation2 + $0x69c] sm:$0xf0] }
  0x3f   :  { %v4394_v7 = vld [vmem:[#allocation2 + $0x40] sm:$0xf]  ;;  %v5195_v10 = vor.u32 %v6620_v3, %v5194_v2  ;;  %3196 = vmatpush.bf16.msra.mxu2 %v4939_v6  ;;  %v7152_v6 = vpack.c.b16 %v584_v0, %v584_v0 }
  0x40   :  { %v6420_v8 = vld [vmem:[#allocation2 + $0x5c] sm:$0xf0] }
  0x41   :  { %v4650_v9 = vld [vmem:[#allocation2 + $0x240] sm:$0xf]  ;;  %v4395_v16 = vor.u32 %v6420_v8, %v4394_v7  ;;  %3209 = vmatpush.bf16.msra.mxu3 %v5195_v10 }
  0x42   :  { %v6484_v11 = vld [vmem:[#allocation2 + $0x25c] sm:$0xf0] }
  0x43   :  { %v4906_v12 = vld [vmem:[#allocation2 + $0x440] sm:$0xf]  ;;  %v4651_v19 = vor.u32 %v6484_v11, %v4650_v9  ;;  %3171 = vmatpush.bf16.msra.mxu0 %v4395_v16 }
  0x44   :  { %v6548_v13 = vld [vmem:[#allocation2 + $0x45c] sm:$0xf0] }
  0x45   :  { %v5162_v14 = vld [vmem:[#allocation2 + $0x640] sm:$0xf]  ;;  %v4907_v20 = vor.u32 %v6548_v13, %v4906_v12  ;;  %3184 = vmatpush.bf16.msra.mxu1 %v4651_v19 }
  0x46   :  { %v6612_v15 = vld [vmem:[#allocation2 + $0x65c] sm:$0xf0] }
  0x47   :  { %v4362_v17 = vld [vmem:[#allocation2] sm:$0xf]  ;;  %v5163_v24 = vor.u32 %v6612_v15, %v5162_v14  ;;  %3197 = vmatpush.bf16.msra.mxu2 %v4907_v20 }
  0x48   :  { %v6412_v18 = vld [vmem:[#allocation2 + $0x1c] sm:$0xf0] }
  0x49   :  { %v4618_v21 = vld [vmem:[#allocation2 + $0x200] sm:$0xf]  ;;  %v4363_v31 = vor.u32 %v6412_v18, %v4362_v17  ;;  %3210 = vmatpush.bf16.msra.mxu3 %v5163_v24 }
  0x4a   :  { %v6476_v22 = vld [vmem:[#allocation2 + $0x21c] sm:$0xf0] }
  0x4b   :  { %v4874_v23 = vld [vmem:[#allocation2 + $0x400] sm:$0xf]  ;;  %v4619_v35 = vor.u32 %v6476_v22, %v4618_v21  ;;  %3172 = vmatpush.bf16.msra.mxu0 %v4363_v31 }
  0x4c   :  { %v6540_v25 = vld [vmem:[#allocation2 + $0x41c] sm:$0xf0] }
  0x4d   :  { %v5130_v26 = vld [vmem:[#allocation2 + $0x600] sm:$0xf]  ;;  %v4875_v36 = vor.u32 %v6540_v25, %v4874_v23  ;;  %3185 = vmatpush.bf16.msra.mxu1 %v4619_v35 }
  0x4e   :  { %v6604_v27 = vld [vmem:[#allocation2 + $0x61c] sm:$0xf0] }
  0x4f   :  { %v5610_v28 = vld [vmem:[#allocation2 + $0x9c0] sm:$0xf]  ;;  %v5131_v39 = vor.u32 %v6604_v27, %v5130_v26  ;;  %3198 = vmatpush.bf16.msra.mxu2 %v4875_v36 }
  0x50   :  { %v6724_v29 = vld [vmem:[#allocation2 + $0x9dc] sm:$0xf0] }
  0x51   :  { %v5866_v30 = vld [vmem:[#allocation2 + $0xbc0] sm:$0xf]  ;;  %v5611_v40 = vor.u32 %v6724_v29, %v5610_v28  ;;  %3211 = vmatpush.bf16.msra.mxu3 %v5131_v39 }
  0x52   :  { %v6788_v32 = vld [vmem:[#allocation2 + $0xbdc] sm:$0xf0]  ;;  %3199 = vmatmul.bf16.vlgmr.msra.gmra.mxu2 %v7150_v4 }
  0x53   :  { %v6122_v33 = vld [vmem:[#allocation2 + $0xdc0] sm:$0xf]  ;;  %v5867_v41 = vor.u32 %v6788_v32, %v5866_v30  ;;  %3217 = vmatpush.bf16.msrb.mxu0 %v5611_v40 }
  0x54   :  { %v6852_v34 = vld [vmem:[#allocation2 + $0xddc] sm:$0xf0]  ;;  %3212 = vmatmul.bf16.vlgmr.msra.gmra.mxu3 %v7152_v6 }
  0x55   :  { %v6378_v37 = vld [vmem:[#allocation2 + $0xfc0] sm:$0xf]  ;;  %v6123_v42 = vor.u32 %v6852_v34, %v6122_v33  ;;  %3230 = vmatpush.bf16.msrb.mxu1 %v5867_v41 }
  0x56   :  { %v6916_v38 = vld [vmem:[#allocation2 + $0xfdc] sm:$0xf0] }
  0x57   :  { %v5578_v43 = vld [vmem:[#allocation2 + $0x980] sm:$0xf]  ;;  %v6379_v46 = vor.u32 %v6916_v38, %v6378_v37  ;;  %3243 = vmatpush.bf16.msrb.mxu2 %v6123_v42 }
  0x58   :  { %v6716_v44 = vld [vmem:[#allocation2 + $0x99c] sm:$0xf0] }
  0x59   :  { %v5834_v45 = vld [vmem:[#allocation2 + $0xb80] sm:$0xf]  ;;  %v5579_v52 = vor.u32 %v6716_v44, %v5578_v43  ;;  %3256 = vmatpush.bf16.msrb.mxu3 %v6379_v46 }
  0x5a   :  { %v6780_v47 = vld [vmem:[#allocation2 + $0xb9c] sm:$0xf0] }
  0x5b   :  { %v6090_v48 = vld [vmem:[#allocation2 + $0xd80] sm:$0xf]  ;;  %v5835_v54 = vor.u32 %v6780_v47, %v5834_v45  ;;  %3218 = vmatpush.bf16.msrb.mxu0 %v5579_v52 }
  0x5c   :  { %v6844_v49 = vld [vmem:[#allocation2 + $0xd9c] sm:$0xf0] }
  0x5d   :  { %v6346_v50 = vld [vmem:[#allocation2 + $0xf80] sm:$0xf]  ;;  %v6091_v55 = vor.u32 %v6844_v49, %v6090_v48  ;;  %3231 = vmatpush.bf16.msrb.mxu1 %v5835_v54 }
  0x5e   :  { %v6908_v51 = vld [vmem:[#allocation2 + $0xf9c] sm:$0xf0] }
  0x5f   :  { %v5546_v53 = vld [vmem:[#allocation2 + $0x940] sm:$0xf]  ;;  %v6347_v59 = vor.u32 %v6908_v51, %v6346_v50  ;;  %3244 = vmatpush.bf16.msrb.mxu2 %v6091_v55 }
  0x60   :  { %v6708_v56 = vld [vmem:[#allocation2 + $0x95c] sm:$0xf0] }
  0x61   :  { %v5802_v57 = vld [vmem:[#allocation2 + $0xb40] sm:$0xf]  ;;  %v5547_v3 = vor.u32 %v6708_v56, %v5546_v53  ;;  %3257 = vmatpush.bf16.msrb.mxu3 %v6347_v59 }
  0x62   :  { %v6772_v60 = vld [vmem:[#allocation2 + $0xb5c] sm:$0xf0] }
  0x63   :  { %v6058_v61 = vld [vmem:[#allocation2 + $0xd40] sm:$0xf]  ;;  %v5803_v7 = vor.u32 %v6772_v60, %v5802_v57  ;;  %3219 = vmatpush.bf16.msrb.mxu0 %v5547_v3  ;;  %v64_v3 = vld [vmem:[#allocation7 + $0x18] sm:$0xff] }
  0x64   :  { %v6836_v62 = vld [vmem:[#allocation2 + $0xd5c] sm:$0xf0] }
  0x65   :  { %v6314_v1 = vld [vmem:[#allocation2 + $0xf40] sm:$0xf]  ;;  %v6059_v8 = vor.u32 %v6836_v62, %v6058_v61  ;;  %3232 = vmatpush.bf16.msrb.mxu1 %v5803_v7 }
  0x66   :  { %v6900_v2 = vld [vmem:[#allocation2 + $0xf5c] sm:$0xf0] }
  0x67   :  { %v61_v5 = vld [vmem:[#allocation7] sm:$0xff]  ;;  %v6315_v14 = vor.u32 %v6900_v2, %v6314_v1  ;;  %3245 = vmatpush.bf16.msrb.mxu2 %v6059_v8 }
  0x68   :  { %v5514_v9 = vld [vmem:[#allocation2 + $0x900] sm:$0xf]  ;;  %v581_v12 = vunpack.c.l.b16 %v61_v5  ;;  %v582_v13 = vunpack.c.h.b16 %v61_v5 }
  0x69   :  { %v6700_v10 = vld [vmem:[#allocation2 + $0x91c] sm:$0xf0]  ;;  %3258 = vmatpush.bf16.msrb.mxu3 %v6315_v14  ;;  %v4844_v14 = vld [vmem:[#allocation2 + $0x3e0] sm:$0xf0] }
  0x6a   :  { %v5770_v11 = vld [vmem:[#allocation2 + $0xb00] sm:$0xf]  ;;  %v7155_v20 = vpack.c.b16 %v581_v12, %v581_v12  ;;  %v7158_v21 = vpack.c.b16 %v582_v13, %v582_v13  ;;  %v5515_v22 = vor.u32 %v6700_v10, %v5514_v9  ;;  %v63_v9 = vld [vmem:[#allocation7 + $0x10] sm:$0xff]  ;;  %v6464_v10 = vld [vmem:[#allocation2 + $0x1c4] sm:$0xf] }
  0x6b   :  { %v6764_v15 = vld [vmem:[#allocation2 + $0xb1c] sm:$0xf0]  ;;  %v6528_v12 = vld [vmem:[#allocation2 + $0x3c4] sm:$0xf] }
  0x6c   :  { %v6026_v16 = vld [vmem:[#allocation2 + $0xd00] sm:$0xf]  ;;  %v5771_v23 = vor.u32 %v6764_v15, %v5770_v11  ;;  %3173 = vmatmul.bf16.vlgmr.msra.gmra.mxu0 %v7155_v20  ;;  %3186 = vmatmul.bf16.vlgmr.msra.gmra.mxu1 %v7158_v21  ;;  %v4588_v11 = vld [vmem:[#allocation2 + $0x1e0] sm:$0xf0] }
  0x6d   :  { %v6828_v17 = vld [vmem:[#allocation2 + $0xd1c] sm:$0xf0]  ;;  %3220 = vmatpush.bf16.msrb.mxu0 %v5515_v22  ;;  %v6592_v15 = vld [vmem:[#allocation2 + $0x5c4] sm:$0xf] }
  0x6e   :  { %v6282_v18 = vld [vmem:[#allocation2 + $0xf00] sm:$0xf]  ;;  %v6027_v24 = vor.u32 %v6828_v17, %v6026_v16  ;;  %3233 = vmatpush.bf16.msrb.mxu1 %v5771_v23  ;;  %v5100_v16 = vld [vmem:[#allocation2 + $0x5e0] sm:$0xf0]  ;;  %v587_v17 = vunpack.c.l.b16 %v64_v3 }
  0x6f   :  { %v6892_v19 = vld [vmem:[#allocation2 + $0xf1c] sm:$0xf0]  ;;  %v6656_v22 = vld [vmem:[#allocation2 + $0x7c4] sm:$0xf] }
  0x70   :  { %v5482_v25 = vld [vmem:[#allocation2 + $0x8c0] sm:$0xf]  ;;  %v6283_v28 = vor.u32 %v6892_v19, %v6282_v18  ;;  %3246 = vmatpush.bf16.msrb.mxu2 %v6027_v24  ;;  %v5356_v23 = vld [vmem:[#allocation2 + $0x7e0] sm:$0xf0]  ;;  %v585_v24 = vunpack.c.l.b16 %v63_v9 }
  0x71   :  { %v6692_v26 = vld [vmem:[#allocation2 + $0x8dc] sm:$0xf0] }
  0x72   :  { %v5738_v27 = vld [vmem:[#allocation2 + $0xac0] sm:$0xf]  ;;  %v5483_v34 = vor.u32 %v6692_v26, %v5482_v25  ;;  %3259 = vmatpush.bf16.msrb.mxu3 %v6283_v28  ;;  %v588_v25 = vunpack.c.h.b16 %v64_v3  ;;  %v586_v28 = vunpack.c.h.b16 %v63_v9  ;;  %v5260_v3 = vld [vmem:[#allocation2 + $0x720] sm:$0xf0] }
  0x73   :  { %v6756_v29 = vld [vmem:[#allocation2 + $0xadc] sm:$0xf0]  ;;  %v6432_v9 = vld [vmem:[#allocation2 + $0xc4] sm:$0xf] }
  0x74   :  { %v5994_v30 = vld [vmem:[#allocation2 + $0xcc0] sm:$0xf]  ;;  %v5739_v35 = vor.u32 %v6756_v29, %v5738_v27  ;;  %3221 = vmatpush.bf16.msrb.mxu0 %v5483_v34  ;;  %v4591_v27 = vor.u32 %v6464_v10, %v4588_v11  ;;  %v4847_v29 = vor.u32 %v6528_v12, %v4844_v14  ;;  %v5359_v34 = vor.u32 %v6656_v22, %v5356_v23  ;;  %v4460_v10 = vld [vmem:[#allocation2 + $0xe0] sm:$0xf0] }
  0x75   :  { %v6820_v31 = vld [vmem:[#allocation2 + $0xcdc] sm:$0xf0]  ;;  %v6496_v11 = vld [vmem:[#allocation2 + $0x2c4] sm:$0xf] }
  0x76   :  { %v6250_v32 = vld [vmem:[#allocation2 + $0xec0] sm:$0xf]  ;;  %v5995_v36 = vor.u32 %v6820_v31, %v5994_v30  ;;  %3234 = vmatpush.bf16.msrb.mxu1 %v5739_v35  ;;  %v5103_v30 = vor.u32 %v6592_v15, %v5100_v16  ;;  %v6456_v31 = vld [vmem:[#allocation2 + $0x184] sm:$0xf] }
  0x77   :  { %v6884_v33 = vld [vmem:[#allocation2 + $0xedc] sm:$0xf0]  ;;  %v4812_v35 = vld [vmem:[#allocation2 + $0x3a0] sm:$0xf0] }
  0x78   :  { %v5450_v37 = vld [vmem:[#allocation2 + $0x880] sm:$0xf]  ;;  %v6251_v40 = vor.u32 %v6884_v33, %v6250_v32  ;;  %3247 = vmatpush.bf16.msrb.mxu2 %v5995_v36  ;;  %v4556_v32 = vld [vmem:[#allocation2 + $0x1a0] sm:$0xf0] }
  0x79   :  { %v6684_v38 = vld [vmem:[#allocation2 + $0x89c] sm:$0xf0]  ;;  %v6520_v33 = vld [vmem:[#allocation2 + $0x384] sm:$0xf] }
  0x7a   :  { %v5706_v39 = vld [vmem:[#allocation2 + $0xa80] sm:$0xf]  ;;  %v5451_v46 = vor.u32 %v6684_v38, %v5450_v37  ;;  %3260 = vmatpush.bf16.msrb.mxu3 %v6251_v40  ;;  %v6584_v36 = vld [vmem:[#allocation2 + $0x584] sm:$0xf]  ;;  %v7162_v38 = vpack.c.b16 %v587_v17, %v587_v17 }
  0x7b   :  { %v6748_v41 = vld [vmem:[#allocation2 + $0xa9c] sm:$0xf0]  ;;  %v5068_v37 = vld [vmem:[#allocation2 + $0x5a0] sm:$0xf0] }
  0x7c   :  { %v5962_v42 = vld [vmem:[#allocation2 + $0xc80] sm:$0xf]  ;;  %v5707_v47 = vor.u32 %v6748_v41, %v5706_v39  ;;  %3222 = vmatpush.bf16.msrb.mxu0 %v5451_v46  ;;  %v6648_v39 = vld [vmem:[#allocation2 + $0x784] sm:$0xf]  ;;  %v7164_v41 = vpack.c.b16 %v585_v24, %v585_v24  ;;  %v5071_v46 = vor.u32 %v6584_v36, %v5068_v37 }
  0x7d   :  { %v6812_v43 = vld [vmem:[#allocation2 + $0xc9c] sm:$0xf0]  ;;  %v5324_v40 = vld [vmem:[#allocation2 + $0x7a0] sm:$0xf0] }
  0x7e   :  { %v6218_v44 = vld [vmem:[#allocation2 + $0xe80] sm:$0xf]  ;;  %v5963_v48 = vor.u32 %v6812_v43, %v5962_v42  ;;  %3235 = vmatpush.bf16.msrb.mxu1 %v5707_v47  ;;  %v7166_v42 = vpack.c.b16 %v588_v25, %v588_v25  ;;  %v4559_v43 = vor.u32 %v6456_v31, %v4556_v32  ;;  %v6448_v47 = vld [vmem:[#allocation2 + $0x144] sm:$0xf] }
  0x7f   :  { %v6876_v45 = vld [vmem:[#allocation2 + $0xe9c] sm:$0xf0]  ;;  %v6560_v14 = vld [vmem:[#allocation2 + $0x4c4] sm:$0xf] }
  0x80   :  { %v5418_v49 = vld [vmem:[#allocation2 + $0x840] sm:$0xf]  ;;  %v6219_v52 = vor.u32 %v6876_v45, %v6218_v44  ;;  %3248 = vmatpush.bf16.msrb.mxu2 %v5963_v48  ;;  %v7168_v44 = vpack.c.b16 %v586_v28, %v586_v28  ;;  %v4815_v45 = vor.u32 %v6520_v33, %v4812_v35  ;;  %v4524_v48 = vld [vmem:[#allocation2 + $0x160] sm:$0xf0] }
  0x81   :  { %v6676_v50 = vld [vmem:[#allocation2 + $0x85c] sm:$0xf0]  ;;  %v4972_v15 = vld [vmem:[#allocation2 + $0x4e0] sm:$0xf0] }
  0x82   :  { %v5674_v51 = vld [vmem:[#allocation2 + $0xa40] sm:$0xf]  ;;  %v5419_v59 = vor.u32 %v6676_v50, %v5418_v49  ;;  %3261 = vmatpush.bf16.msrb.mxu3 %v6219_v52  ;;  %v6512_v49 = vld [vmem:[#allocation2 + $0x344] sm:$0xf]  ;;  %v5327_v50 = vor.u32 %v6648_v39, %v5324_v40  ;;  %v4975_v22 = vor.u32 %v6560_v14, %v4972_v15 }
  0x83   :  { %v6740_v53 = vld [vmem:[#allocation2 + $0xa5c] sm:$0xf0]  ;;  %v6576_v52 = vld [vmem:[#allocation2 + $0x544] sm:$0xf] }
  0x84   :  { %v5930_v54 = vld [vmem:[#allocation2 + $0xc40] sm:$0xf]  ;;  %v5675_v63 = vor.u32 %v6740_v53, %v5674_v51  ;;  %3223 = vmatpush.bf16.msrb.mxu0 %v5419_v59  ;;  %v4780_v51 = vld [vmem:[#allocation2 + $0x360] sm:$0xf0] }
  0x85   :  { %v6804_v55 = vld [vmem:[#allocation2 + $0xc5c] sm:$0xf0]  ;;  %v5036_v53 = vld [vmem:[#allocation2 + $0x560] sm:$0xf0] }
  0x86   :  { %v6186_v56 = vld [vmem:[#allocation2 + $0xe40] sm:$0xf]  ;;  %v5931_v0 = vor.u32 %v6804_v55, %v5930_v54  ;;  %3236 = vmatpush.bf16.msrb.mxu1 %v5675_v63  ;;  %v6640_v54 = vld [vmem:[#allocation2 + $0x744] sm:$0xf] }
  0x87   :  { %v6868_v57 = vld [vmem:[#allocation2 + $0xe5c] sm:$0xf0]  ;;  %v5292_v55 = vld [vmem:[#allocation2 + $0x760] sm:$0xf0] }
  0x88   :  { %v5386_v58 = vld [vmem:[#allocation2 + $0x800] sm:$0xf]  ;;  %v6187_v5 = vor.u32 %v6868_v57, %v6186_v56  ;;  %3249 = vmatpush.bf16.msrb.mxu2 %v5931_v0  ;;  %v4527_v56 = vor.u32 %v6448_v47, %v4524_v48  ;;  %v4783_v57 = vor.u32 %v6512_v49, %v4780_v51  ;;  %v6440_v59 = vld [vmem:[#allocation2 + $0x104] sm:$0xf] }
  0x89   :  { %v6668_v60 = vld [vmem:[#allocation2 + $0x81c] sm:$0xf0]  ;;  %v4748_v63 = vld [vmem:[#allocation2 + $0x320] sm:$0xf0] }
  0x8a   :  { %v5642_v61 = vld [vmem:[#allocation2 + $0xa00] sm:$0xf]  ;;  %v5387_v13 = vor.u32 %v6668_v60, %v5386_v58  ;;  %3262 = vmatpush.bf16.msrb.mxu3 %v6187_v5  ;;  %v5039_v58 = vor.u32 %v6576_v52, %v5036_v53  ;;  %v4492_v60 = vld [vmem:[#allocation2 + $0x120] sm:$0xf0] }
  0x8b   :  { %v6732_v62 = vld [vmem:[#allocation2 + $0xa1c] sm:$0xf0]  ;;  %v6568_v0 = vld [vmem:[#allocation2 + $0x504] sm:$0xf]  ;;  %v4495_v5 = vor.u32 %v6440_v59, %v4492_v60 }
  0x8c   :  { %v5898_v1 = vld [vmem:[#allocation2 + $0xc00] sm:$0xf]  ;;  %v5643_v18 = vor.u32 %v6732_v62, %v5642_v61  ;;  %3224 = vmatpush.bf16.msrb.mxu0 %v5387_v13  ;;  %v6504_v61 = vld [vmem:[#allocation2 + $0x304] sm:$0xf]  ;;  %v5295_v62 = vor.u32 %v6640_v54, %v5292_v55 }
  0x8d   :  { %v6796_v2 = vld [vmem:[#allocation2 + $0xc1c] sm:$0xf0]  ;;  %v4716_v13 = vld [vmem:[#allocation2 + $0x2e0] sm:$0xf0] }
  0x8e   :  { %v6154_v7 = vld [vmem:[#allocation2 + $0xe00] sm:$0xf]  ;;  %v5899_v19 = vor.u32 %v6796_v2, %v5898_v1  ;;  %3237 = vmatpush.bf16.msrb.mxu1 %v5643_v18  ;;  %v5004_v1 = vld [vmem:[#allocation2 + $0x520] sm:$0xf0]  ;;  %v4463_v18 = vor.u32 %v6432_v9, %v4460_v10 }
  0x8f   :  { %v6860_v8 = vld [vmem:[#allocation2 + $0xe1c] sm:$0xf0]  ;;  %3225 = vmatmul.bf16.vlgmr.msrb.gmra.mxu0 %v7164_v41  ;;  %v6632_v2 = vld [vmem:[#allocation2 + $0x704] sm:$0xf] }
  0x90   :  { %v6155_v26 = vor.u32 %v6860_v8, %v6154_v7  ;;  %3250 = vmatpush.bf16.msrb.mxu2 %v5899_v19  ;;  %3269 = vmatpush.bf16.msra.mxu0 %v4591_v27  ;;  %v4751_v7 = vor.u32 %v6504_v61, %v4748_v63  ;;  %v5007_v8 = vor.u32 %v6568_v0, %v5004_v1  ;;  %v6624_v16 = vld [vmem:[#allocation2 + $0x6c4] sm:$0xf] }
  0x91   :  { %3238 = vmatmul.bf16.vlgmr.msrb.gmra.mxu1 %v7168_v44  ;;  %v5263_v12 = vor.u32 %v6632_v2, %v5260_v3  ;;  %v5228_v17 = vld [vmem:[#allocation2 + $0x6e0] sm:$0xf0]  ;;  %v4719_v19 = vor.u32 %v6496_v11, %v4716_v13 }
  0x92   :  { %3263 = vmatpush.bf16.msrb.mxu3 %v6155_v26  ;;  %3282 = vmatpush.bf16.msra.mxu1 %v4847_v29  ;;  %v6424_v23 = vld [vmem:[#allocation2 + $0x84] sm:$0xf]  ;;  %v5231_v26 = vor.u32 %v6624_v16, %v5228_v17 }
  0x93   :  { %3251 = vmatmul.bf16.vlgmr.msrb.gmra.mxu2 %v7162_v38  ;;  %v4428_v24 = vld [vmem:[#allocation2 + $0xa0] sm:$0xf0] }
  0x94   :  { %3295 = vmatpush.bf16.msra.mxu2 %v5103_v30  ;;  %3270 = vmatpush.bf16.msra.mxu0 %v4559_v43  ;;  %v6488_v25 = vld [vmem:[#allocation2 + $0x284] sm:$0xf]  ;;  %v4431_v32 = vor.u32 %v6424_v23, %v4428_v24 }
  0x95   :  { %3264 = vmatmul.bf16.vlgmr.msrb.gmra.mxu3 %v7166_v42  ;;  %v4684_v27 = vld [vmem:[#allocation2 + $0x2a0] sm:$0xf0] }
  0x96   :  { %3308 = vmatpush.bf16.msra.mxu3 %v5359_v34  ;;  %3283 = vmatpush.bf16.msra.mxu1 %v4815_v45  ;;  %v6552_v28 = vld [vmem:[#allocation2 + $0x484] sm:$0xf]  ;;  %v4687_v33 = vor.u32 %v6488_v25, %v4684_v27 }
  0x97   :  { %v4940_v29 = vld [vmem:[#allocation2 + $0x4a0] sm:$0xf0] }
  0x98   :  { %3296 = vmatpush.bf16.msra.mxu2 %v5071_v46  ;;  %3271 = vmatpush.bf16.msra.mxu0 %v4527_v56  ;;  %v6616_v30 = vld [vmem:[#allocation2 + $0x684] sm:$0xf]  ;;  %v4943_v34 = vor.u32 %v6552_v28, %v4940_v29 }
  0x99   :  { %v5196_v31 = vld [vmem:[#allocation2 + $0x6a0] sm:$0xf0] }
  0x9a   :  { %3309 = vmatpush.bf16.msra.mxu3 %v5327_v50  ;;  %3284 = vmatpush.bf16.msra.mxu1 %v4783_v57  ;;  %v6416_v35 = vld [vmem:[#allocation2 + $0x44] sm:$0xf]  ;;  %v5199_v39 = vor.u32 %v6616_v30, %v5196_v31 }
  0x9b   :  { %v4396_v36 = vld [vmem:[#allocation2 + $0x60] sm:$0xf0] }
  0x9c   :  { %3297 = vmatpush.bf16.msra.mxu2 %v5039_v58  ;;  %3272 = vmatpush.bf16.msra.mxu0 %v4495_v5  ;;  %v6480_v37 = vld [vmem:[#allocation2 + $0x244] sm:$0xf]  ;;  %v4399_v48 = vor.u32 %v6416_v35, %v4396_v36 }
  0x9d   :  { %v4652_v40 = vld [vmem:[#allocation2 + $0x260] sm:$0xf0] }
  0x9e   :  { %3310 = vmatpush.bf16.msra.mxu3 %v5295_v62  ;;  %3285 = vmatpush.bf16.msra.mxu1 %v4751_v7  ;;  %v6544_v43 = vld [vmem:[#allocation2 + $0x444] sm:$0xf]  ;;  %v4655_v51 = vor.u32 %v6480_v37, %v4652_v40 }
  0x9f   :  { %v4908_v45 = vld [vmem:[#allocation2 + $0x460] sm:$0xf0] }
  0xa0   :  { %3298 = vmatpush.bf16.msra.mxu2 %v5007_v8  ;;  %3273 = vmatpush.bf16.msra.mxu0 %v4463_v18  ;;  %v6608_v46 = vld [vmem:[#allocation2 + $0x644] sm:$0xf]  ;;  %v4911_v52 = vor.u32 %v6544_v43, %v4908_v45 }
  0xa1   :  { %v5164_v47 = vld [vmem:[#allocation2 + $0x660] sm:$0xf0] }
  0xa2   :  { %3311 = vmatpush.bf16.msra.mxu3 %v5263_v12  ;;  %3286 = vmatpush.bf16.msra.mxu1 %v4719_v19  ;;  %v6408_v49 = vld [vmem:[#allocation2 + $0x4] sm:$0xf]  ;;  %v5167_v56 = vor.u32 %v6608_v46, %v5164_v47 }
  0xa3   :  { %v4364_v50 = vld [vmem:[#allocation2 + $0x20] sm:$0xf0] }
  0xa4   :  { %3299 = vmatpush.bf16.msra.mxu2 %v4975_v22  ;;  %3274 = vmatpush.bf16.msra.mxu0 %v4431_v32  ;;  %v6472_v53 = vld [vmem:[#allocation2 + $0x204] sm:$0xf]  ;;  %v4367_v63 = vor.u32 %v6408_v49, %v4364_v50 }
  0xa5   :  { %v4620_v54 = vld [vmem:[#allocation2 + $0x220] sm:$0xf0] }
  0xa6   :  { %3312 = vmatpush.bf16.msra.mxu3 %v5231_v26  ;;  %3287 = vmatpush.bf16.msra.mxu1 %v4687_v33  ;;  %v6536_v55 = vld [vmem:[#allocation2 + $0x404] sm:$0xf]  ;;  %v4623_v3 = vor.u32 %v6472_v53, %v4620_v54 }
  0xa7   :  { %v4876_v57 = vld [vmem:[#allocation2 + $0x420] sm:$0xf0] }
  0xa8   :  { %3300 = vmatpush.bf16.msra.mxu2 %v4943_v34  ;;  %v6600_v58 = vld [vmem:[#allocation2 + $0x604] sm:$0xf]  ;;  %3275 = vmatpush.bf16.msra.mxu0 %v4399_v48  ;;  %v4879_v5 = vor.u32 %v6536_v55, %v4876_v57 }
  0xa9   :  { %v5132_v59 = vld [vmem:[#allocation2 + $0x620] sm:$0xf0] }
  0xaa   :  { %3313 = vmatpush.bf16.msra.mxu3 %v5199_v39  ;;  %v6720_v60 = vld [vmem:[#allocation2 + $0x9c4] sm:$0xf]  ;;  %3288 = vmatpush.bf16.msra.mxu1 %v4655_v51  ;;  %v5135_v9 = vor.u32 %v6600_v58, %v5132_v59 }
  0xab   :  { %v5612_v61 = vld [vmem:[#allocation2 + $0x9e0] sm:$0xf0] }
  0xac   :  { %v6784_v62 = vld [vmem:[#allocation2 + $0xbc4] sm:$0xf]  ;;  %3301 = vmatpush.bf16.msra.mxu2 %v4911_v52  ;;  %v5615_v10 = vor.u32 %v6720_v60, %v5612_v61  ;;  %3276 = vmatpush.bf16.msra.mxu0 %v4367_v63 }
  0xad   :  { %v5868_v0 = vld [vmem:[#allocation2 + $0xbe0] sm:$0xf0] }
  0xae   :  { %v6848_v1 = vld [vmem:[#allocation2 + $0xdc4] sm:$0xf]  ;;  %3314 = vmatpush.bf16.msra.mxu3 %v5167_v56  ;;  %v5871_v11 = vor.u32 %v6784_v62, %v5868_v0  ;;  %3289 = vmatpush.bf16.msra.mxu1 %v4623_v3 }
  0xaf   :  { %v6124_v2 = vld [vmem:[#allocation2 + $0xde0] sm:$0xf0]  ;;  %3277 = vmatmul.bf16.vlgmr.msra.gmra.mxu0 %v7155_v20 }
  0xb0   :  { %v6912_v7 = vld [vmem:[#allocation2 + $0xfc4] sm:$0xf]  ;;  %v6127_v12 = vor.u32 %v6848_v1, %v6124_v2  ;;  %3302 = vmatpush.bf16.msra.mxu2 %v4879_v5  ;;  %3321 = vmatpush.bf16.msrb.mxu0 %v5615_v10 }
  0xb1   :  { %v6380_v8 = vld [vmem:[#allocation2 + $0xfe0] sm:$0xf0]  ;;  %3290 = vmatmul.bf16.vlgmr.msra.gmra.mxu1 %v7158_v21 }
  0xb2   :  { %v6712_v13 = vld [vmem:[#allocation2 + $0x984] sm:$0xf]  ;;  %v6383_v16 = vor.u32 %v6912_v7, %v6380_v8  ;;  %3315 = vmatpush.bf16.msra.mxu3 %v5135_v9  ;;  %3334 = vmatpush.bf16.msrb.mxu1 %v5871_v11 }
  0xb3   :  { %v5580_v14 = vld [vmem:[#allocation2 + $0x9a0] sm:$0xf0]  ;;  %3303 = vmatmul.bf16.vlgmr.msra.gmra.mxu2 %v7150_v4 }
  0xb4   :  { %v6776_v15 = vld [vmem:[#allocation2 + $0xb84] sm:$0xf]  ;;  %v5583_v24 = vor.u32 %v6712_v13, %v5580_v14  ;;  %3347 = vmatpush.bf16.msrb.mxu2 %v6127_v12 }
  0xb5   :  { %v5836_v17 = vld [vmem:[#allocation2 + $0xba0] sm:$0xf0]  ;;  %3316 = vmatmul.bf16.vlgmr.msra.gmra.mxu3 %v7152_v6 }
  0xb6   :  { %v6840_v18 = vld [vmem:[#allocation2 + $0xd84] sm:$0xf]  ;;  %v5839_v25 = vor.u32 %v6776_v15, %v5836_v17  ;;  %3360 = vmatpush.bf16.msrb.mxu3 %v6383_v16  ;;  %3322 = vmatpush.bf16.msrb.mxu0 %v5583_v24 }
  0xb7   :  { %v6092_v19 = vld [vmem:[#allocation2 + $0xda0] sm:$0xf0] }
  0xb8   :  { %v6904_v22 = vld [vmem:[#allocation2 + $0xf84] sm:$0xf]  ;;  %v6095_v26 = vor.u32 %v6840_v18, %v6092_v19  ;;  %3335 = vmatpush.bf16.msrb.mxu1 %v5839_v25 }
  0xb9   :  { %v6348_v23 = vld [vmem:[#allocation2 + $0xfa0] sm:$0xf0] }
  0xba   :  { %v6704_v27 = vld [vmem:[#allocation2 + $0x944] sm:$0xf]  ;;  %v6351_v30 = vor.u32 %v6904_v22, %v6348_v23  ;;  %3348 = vmatpush.bf16.msrb.mxu2 %v6095_v26 }
  0xbb   :  { %v5548_v28 = vld [vmem:[#allocation2 + $0x960] sm:$0xf0] }
  0xbc   :  { %v6768_v29 = vld [vmem:[#allocation2 + $0xb44] sm:$0xf]  ;;  %v5551_v36 = vor.u32 %v6704_v27, %v5548_v28  ;;  %3361 = vmatpush.bf16.msrb.mxu3 %v6351_v30 }
  0xbd   :  { %v5804_v31 = vld [vmem:[#allocation2 + $0xb60] sm:$0xf0] }
  0xbe   :  { %v6832_v32 = vld [vmem:[#allocation2 + $0xd44] sm:$0xf]  ;;  %v5807_v37 = vor.u32 %v6768_v29, %v5804_v31  ;;  %3323 = vmatpush.bf16.msrb.mxu0 %v5551_v36 }
  0xbf   :  { %v6060_v33 = vld [vmem:[#allocation2 + $0xd60] sm:$0xf0] }
  0xc0   :  { %v6896_v34 = vld [vmem:[#allocation2 + $0xf44] sm:$0xf]  ;;  %v6063_v39 = vor.u32 %v6832_v32, %v6060_v33  ;;  %3336 = vmatpush.bf16.msrb.mxu1 %v5807_v37 }
  0xc1   :  { %v6316_v35 = vld [vmem:[#allocation2 + $0xf60] sm:$0xf0] }
  0xc2   :  { %v6696_v40 = vld [vmem:[#allocation2 + $0x904] sm:$0xf]  ;;  %v6319_v46 = vor.u32 %v6896_v34, %v6316_v35  ;;  %3349 = vmatpush.bf16.msrb.mxu2 %v6063_v39 }
  0xc3   :  { %v5516_v43 = vld [vmem:[#allocation2 + $0x920] sm:$0xf0] }
  0xc4   :  { %v6760_v45 = vld [vmem:[#allocation2 + $0xb04] sm:$0xf]  ;;  %v5519_v52 = vor.u32 %v6696_v40, %v5516_v43  ;;  %3362 = vmatpush.bf16.msrb.mxu3 %v6319_v46  ;;  %v4594_v43 = vld [vmem:[#allocation2 + $0x1c8] sm:$0xf] }
  0xc5   :  { %v5772_v47 = vld [vmem:[#allocation2 + $0xb20] sm:$0xf0]  ;;  %v4850_v46 = vld [vmem:[#allocation2 + $0x3c8] sm:$0xf] }
  0xc6   :  { %v6824_v48 = vld [vmem:[#allocation2 + $0xd04] sm:$0xf]  ;;  %v5775_v53 = vor.u32 %v6760_v45, %v5772_v47  ;;  %3324 = vmatpush.bf16.msrb.mxu0 %v5519_v52  ;;  %v6469_v45 = vld [vmem:[#allocation2 + $0x1e4] sm:$0xf0] }
  0xc7   :  { %v6028_v49 = vld [vmem:[#allocation2 + $0xd20] sm:$0xf0] }
  0xc8   :  { %v6888_v50 = vld [vmem:[#allocation2 + $0xf04] sm:$0xf]  ;;  %v6031_v54 = vor.u32 %v6824_v48, %v6028_v49  ;;  %3337 = vmatpush.bf16.msrb.mxu1 %v5775_v53  ;;  %v6533_v48 = vld [vmem:[#allocation2 + $0x3e4] sm:$0xf0] }
  0xc9   :  { %v6284_v51 = vld [vmem:[#allocation2 + $0xf20] sm:$0xf0]  ;;  %v5106_v49 = vld [vmem:[#allocation2 + $0x5c8] sm:$0xf] }
  0xca   :  { %v6688_v55 = vld [vmem:[#allocation2 + $0x8c4] sm:$0xf]  ;;  %v6287_v58 = vor.u32 %v6888_v50, %v6284_v51  ;;  %3350 = vmatpush.bf16.msrb.mxu2 %v6031_v54  ;;  %v6597_v50 = vld [vmem:[#allocation2 + $0x5e4] sm:$0xf0] }
  0xcb   :  { %v5484_v56 = vld [vmem:[#allocation2 + $0x8e0] sm:$0xf0]  ;;  %v5362_v53 = vld [vmem:[#allocation2 + $0x7c8] sm:$0xf] }
  0xcc   :  { %v6752_v57 = vld [vmem:[#allocation2 + $0xac4] sm:$0xf]  ;;  %v5487_v0 = vor.u32 %v6688_v55, %v5484_v56  ;;  %3363 = vmatpush.bf16.msrb.mxu3 %v6287_v58  ;;  %v6661_v54 = vld [vmem:[#allocation2 + $0x7e4] sm:$0xf0]  ;;  %v4595_v56 = vor.u32 %v6469_v45, %v4594_v43  ;;  %v5107_v58 = vor.u32 %v6597_v50, %v5106_v49 }
  0xcd   :  { %v5740_v59 = vld [vmem:[#allocation2 + $0xae0] sm:$0xf0]  ;;  %v4978_v43 = vld [vmem:[#allocation2 + $0x4c8] sm:$0xf] }
  0xce   :  { %v6816_v60 = vld [vmem:[#allocation2 + $0xcc4] sm:$0xf]  ;;  %v5743_v1 = vor.u32 %v6752_v57, %v5740_v59  ;;  %3325 = vmatpush.bf16.msrb.mxu0 %v5487_v0  ;;  %v4851_v57 = vor.u32 %v6533_v48, %v4850_v46  ;;  %v4562_v59 = vld [vmem:[#allocation2 + $0x188] sm:$0xf] }
  0xcf   :  { %v5996_v61 = vld [vmem:[#allocation2 + $0xce0] sm:$0xf0]  ;;  %v5074_v0 = vld [vmem:[#allocation2 + $0x588] sm:$0xf] }
  0xd0   :  { %v6880_v62 = vld [vmem:[#allocation2 + $0xec4] sm:$0xf]  ;;  %v5999_v2 = vor.u32 %v6816_v60, %v5996_v61  ;;  %3338 = vmatpush.bf16.msrb.mxu1 %v5743_v1  ;;  %v6461_v60 = vld [vmem:[#allocation2 + $0x1a4] sm:$0xf0] }
  0xd1   :  { %v6252_v63 = vld [vmem:[#allocation2 + $0xee0] sm:$0xf0]  ;;  %v4818_v61 = vld [vmem:[#allocation2 + $0x388] sm:$0xf] }
  0xd2   :  { %v6680_v3 = vld [vmem:[#allocation2 + $0x884] sm:$0xf]  ;;  %v6255_v8 = vor.u32 %v6880_v62, %v6252_v63  ;;  %3351 = vmatpush.bf16.msrb.mxu2 %v5999_v2  ;;  %v5363_v62 = vor.u32 %v6661_v54, %v5362_v53  ;;  %v6525_v63 = vld [vmem:[#allocation2 + $0x3a4] sm:$0xf0] }
  0xd3   :  { %v5452_v5 = vld [vmem:[#allocation2 + $0x8a0] sm:$0xf0]  ;;  %v6589_v1 = vld [vmem:[#allocation2 + $0x5a4] sm:$0xf0] }
  0xd4   :  { %v6744_v7 = vld [vmem:[#allocation2 + $0xa84] sm:$0xf]  ;;  %v5455_v14 = vor.u32 %v6680_v3, %v5452_v5  ;;  %3364 = vmatpush.bf16.msrb.mxu3 %v6255_v8  ;;  %v5330_v2 = vld [vmem:[#allocation2 + $0x788] sm:$0xf]  ;;  %v4563_v5 = vor.u32 %v6461_v60, %v4562_v59  ;;  %v5075_v8 = vor.u32 %v6589_v1, %v5074_v0 }
  0xd5   :  { %v5708_v9 = vld [vmem:[#allocation2 + $0xaa0] sm:$0xf0]  ;;  %v6653_v3 = vld [vmem:[#allocation2 + $0x7a4] sm:$0xf0] }
  0xd6   :  { %v6808_v10 = vld [vmem:[#allocation2 + $0xc84] sm:$0xf]  ;;  %v5711_v15 = vor.u32 %v6744_v7, %v5708_v9  ;;  %3326 = vmatpush.bf16.msrb.mxu0 %v5455_v14  ;;  %v4819_v7 = vor.u32 %v6525_v63, %v4818_v61  ;;  %v4530_v9 = vld [vmem:[#allocation2 + $0x148] sm:$0xf] }
  0xd7   :  { %v5964_v11 = vld [vmem:[#allocation2 + $0xca0] sm:$0xf0]  ;;  %v5042_v14 = vld [vmem:[#allocation2 + $0x548] sm:$0xf] }
  0xd8   :  { %v6872_v12 = vld [vmem:[#allocation2 + $0xe84] sm:$0xf]  ;;  %v5967_v16 = vor.u32 %v6808_v10, %v5964_v11  ;;  %3339 = vmatpush.bf16.msrb.mxu1 %v5711_v15  ;;  %v6453_v10 = vld [vmem:[#allocation2 + $0x164] sm:$0xf0] }
  0xd9   :  { %v6220_v13 = vld [vmem:[#allocation2 + $0xea0] sm:$0xf0]  ;;  %v4786_v11 = vld [vmem:[#allocation2 + $0x348] sm:$0xf] }
  0xda   :  { %v6672_v17 = vld [vmem:[#allocation2 + $0x844] sm:$0xf]  ;;  %v6223_v22 = vor.u32 %v6872_v12, %v6220_v13  ;;  %3352 = vmatpush.bf16.msrb.mxu2 %v5967_v16  ;;  %v5331_v12 = vor.u32 %v6653_v3, %v5330_v2  ;;  %v6517_v13 = vld [vmem:[#allocation2 + $0x364] sm:$0xf0] }
  0xdb   :  { %v5420_v18 = vld [vmem:[#allocation2 + $0x860] sm:$0xf0]  ;;  %v6581_v15 = vld [vmem:[#allocation2 + $0x564] sm:$0xf0] }
  0xdc   :  { %v6736_v19 = vld [vmem:[#allocation2 + $0xa44] sm:$0xf]  ;;  %v5423_v28 = vor.u32 %v6672_v17, %v5420_v18  ;;  %3365 = vmatpush.bf16.msrb.mxu3 %v6223_v22  ;;  %v5298_v16 = vld [vmem:[#allocation2 + $0x748] sm:$0xf]  ;;  %v4531_v18 = vor.u32 %v6453_v10, %v4530_v9  ;;  %v5043_v22 = vor.u32 %v6581_v15, %v5042_v14 }
  0xdd   :  { %v5676_v23 = vld [vmem:[#allocation2 + $0xa60] sm:$0xf0]  ;;  %v6645_v17 = vld [vmem:[#allocation2 + $0x764] sm:$0xf0] }
  0xde   :  { %v6800_v24 = vld [vmem:[#allocation2 + $0xc44] sm:$0xf]  ;;  %v5679_v31 = vor.u32 %v6736_v19, %v5676_v23  ;;  %3327 = vmatpush.bf16.msrb.mxu0 %v5423_v28  ;;  %v4787_v19 = vor.u32 %v6517_v13, %v4786_v11  ;;  %v4498_v23 = vld [vmem:[#allocation2 + $0x108] sm:$0xf] }
  0xdf   :  { %v5932_v25 = vld [vmem:[#allocation2 + $0xc60] sm:$0xf0]  ;;  %v5010_v28 = vld [vmem:[#allocation2 + $0x508] sm:$0xf] }
  0xe0   :  { %v6864_v26 = vld [vmem:[#allocation2 + $0xe44] sm:$0xf]  ;;  %v5935_v32 = vor.u32 %v6800_v24, %v5932_v25  ;;  %3340 = vmatpush.bf16.msrb.mxu1 %v5679_v31  ;;  %v6445_v24 = vld [vmem:[#allocation2 + $0x124] sm:$0xf0] }
  0xe1   :  { %v6188_v27 = vld [vmem:[#allocation2 + $0xe60] sm:$0xf0]  ;;  %v4754_v25 = vld [vmem:[#allocation2 + $0x308] sm:$0xf] }
  0xe2   :  { %v6664_v29 = vld [vmem:[#allocation2 + $0x804] sm:$0xf]  ;;  %v6191_v36 = vor.u32 %v6864_v26, %v6188_v27  ;;  %3353 = vmatpush.bf16.msrb.mxu2 %v5935_v32  ;;  %v5299_v26 = vor.u32 %v6645_v17, %v5298_v16  ;;  %v6509_v27 = vld [vmem:[#allocation2 + $0x324] sm:$0xf0]  ;;  %v4499_v32 = vor.u32 %v6445_v24, %v4498_v23 }
  0xe3   :  { %v5388_v30 = vld [vmem:[#allocation2 + $0x820] sm:$0xf0]  ;;  %v6637_v31 = vld [vmem:[#allocation2 + $0x724] sm:$0xf0] }
  0xe4   :  { %v6728_v33 = vld [vmem:[#allocation2 + $0xa04] sm:$0xf]  ;;  %v5391_v47 = vor.u32 %v6664_v29, %v5388_v30  ;;  %3366 = vmatpush.bf16.msrb.mxu3 %v6191_v36  ;;  %v6573_v29 = vld [vmem:[#allocation2 + $0x524] sm:$0xf0] }
  0xe5   :  { %v5644_v34 = vld [vmem:[#allocation2 + $0xa20] sm:$0xf0]  ;;  %v5266_v30 = vld [vmem:[#allocation2 + $0x708] sm:$0xf] }
  0xe6   :  { %v6792_v35 = vld [vmem:[#allocation2 + $0xc04] sm:$0xf]  ;;  %v5647_v51 = vor.u32 %v6728_v33, %v5644_v34  ;;  %3328 = vmatpush.bf16.msrb.mxu0 %v5391_v47  ;;  %v4755_v33 = vor.u32 %v6509_v27, %v4754_v25  ;;  %v5011_v34 = vor.u32 %v6573_v29, %v5010_v28  ;;  %v6437_v36 = vld [vmem:[#allocation2 + $0xe4] sm:$0xf0] }
  0xe7   :  { %v5900_v37 = vld [vmem:[#allocation2 + $0xc20] sm:$0xf0]  ;;  %v6565_v45 = vld [vmem:[#allocation2 + $0x4e4] sm:$0xf0] }
  0xe8   :  { %v6856_v39 = vld [vmem:[#allocation2 + $0xe04] sm:$0xf]  ;;  %v5903_v52 = vor.u32 %v6792_v35, %v5900_v37  ;;  %3341 = vmatpush.bf16.msrb.mxu1 %v5647_v51  ;;  %v4466_v35 = vld [vmem:[#allocation2 + $0xc8] sm:$0xf]  ;;  %v4979_v50 = vor.u32 %v6565_v45, %v4978_v43 }
  0xe9   :  { %v6156_v40 = vld [vmem:[#allocation2 + $0xe20] sm:$0xf0]  ;;  %3329 = vmatmul.bf16.vlgmr.msrb.gmra.mxu0 %v7164_v41  ;;  %v4722_v37 = vld [vmem:[#allocation2 + $0x2c8] sm:$0xf]  ;;  %v4467_v48 = vor.u32 %v6437_v36, %v4466_v35 }
  0xea   :  { %v6159_v55 = vor.u32 %v6856_v39, %v6156_v40  ;;  %3354 = vmatpush.bf16.msrb.mxu2 %v5903_v52  ;;  %3373 = vmatpush.bf16.msra.mxu0 %v4595_v56  ;;  %v5267_v39 = vor.u32 %v6637_v31, %v5266_v30  ;;  %v6501_v40 = vld [vmem:[#allocation2 + $0x2e4] sm:$0xf0] }
  0xeb   :  { %3342 = vmatmul.bf16.vlgmr.msrb.gmra.mxu1 %v7168_v44  ;;  %v5234_v46 = vld [vmem:[#allocation2 + $0x6c8] sm:$0xf]  ;;  %v4723_v49 = vor.u32 %v6501_v40, %v4722_v37 }
  0xec   :  { %3367 = vmatpush.bf16.msrb.mxu3 %v6159_v55  ;;  %3386 = vmatpush.bf16.msra.mxu1 %v4851_v57  ;;  %v6629_v47 = vld [vmem:[#allocation2 + $0x6e4] sm:$0xf0] }
  0xed   :  { %3355 = vmatmul.bf16.vlgmr.msrb.gmra.mxu2 %v7162_v38  ;;  %v4434_v51 = vld [vmem:[#allocation2 + $0x88] sm:$0xf]  ;;  %v5235_v54 = vor.u32 %v6629_v47, %v5234_v46 }
  0xee   :  { %3399 = vmatpush.bf16.msra.mxu2 %v5107_v58  ;;  %3374 = vmatpush.bf16.msra.mxu0 %v4563_v5  ;;  %v6429_v52 = vld [vmem:[#allocation2 + $0xa4] sm:$0xf0] }
  0xef   :  { %3368 = vmatmul.bf16.vlgmr.msrb.gmra.mxu3 %v7166_v42  ;;  %v4690_v53 = vld [vmem:[#allocation2 + $0x288] sm:$0xf]  ;;  %v4435_v60 = vor.u32 %v6429_v52, %v4434_v51 }
  0xf0   :  { %3412 = vmatpush.bf16.msra.mxu3 %v5363_v62  ;;  %3387 = vmatpush.bf16.msra.mxu1 %v4819_v7  ;;  %v6493_v55 = vld [vmem:[#allocation2 + $0x2a4] sm:$0xf0] }
  0xf1   :  { %v4946_v56 = vld [vmem:[#allocation2 + $0x488] sm:$0xf]  ;;  %v4691_v61 = vor.u32 %v6493_v55, %v4690_v53 }
  0xf2   :  { %3400 = vmatpush.bf16.msra.mxu2 %v5075_v8  ;;  %3375 = vmatpush.bf16.msra.mxu0 %v4531_v18  ;;  %v6557_v57 = vld [vmem:[#allocation2 + $0x4a4] sm:$0xf0] }
  0xf3   :  { %v5202_v58 = vld [vmem:[#allocation2 + $0x688] sm:$0xf]  ;;  %v4947_v62 = vor.u32 %v6557_v57, %v4946_v56 }
  0xf4   :  { %3413 = vmatpush.bf16.msra.mxu3 %v5331_v12  ;;  %3388 = vmatpush.bf16.msra.mxu1 %v4787_v19  ;;  %v6621_v59 = vld [vmem:[#allocation2 + $0x6a4] sm:$0xf0] }
  0xf5   :  { %v4402_v63 = vld [vmem:[#allocation2 + $0x48] sm:$0xf]  ;;  %v5203_v2 = vor.u32 %v6621_v59, %v5202_v58 }
  0xf6   :  { %3401 = vmatpush.bf16.msra.mxu2 %v5043_v22  ;;  %3376 = vmatpush.bf16.msra.mxu0 %v4499_v32  ;;  %v6421_v0 = vld [vmem:[#allocation2 + $0x64] sm:$0xf0] }
  0xf7   :  { %v4658_v1 = vld [vmem:[#allocation2 + $0x248] sm:$0xf]  ;;  %v4403_v10 = vor.u32 %v6421_v0, %v4402_v63 }
  0xf8   :  { %3414 = vmatpush.bf16.msra.mxu3 %v5299_v26  ;;  %3389 = vmatpush.bf16.msra.mxu1 %v4755_v33  ;;  %v6485_v3 = vld [vmem:[#allocation2 + $0x264] sm:$0xf0] }
  0xf9   :  { %v4914_v5 = vld [vmem:[#allocation2 + $0x448] sm:$0xf]  ;;  %v4659_v13 = vor.u32 %v6485_v3, %v4658_v1 }
  0xfa   :  { %3402 = vmatpush.bf16.msra.mxu2 %v5011_v34  ;;  %3377 = vmatpush.bf16.msra.mxu0 %v4467_v48  ;;  %v6549_v7 = vld [vmem:[#allocation2 + $0x464] sm:$0xf0] }
  0xfb   :  { %v5170_v8 = vld [vmem:[#allocation2 + $0x648] sm:$0xf]  ;;  %v4915_v14 = vor.u32 %v6549_v7, %v4914_v5 }
  0xfc   :  { %3415 = vmatpush.bf16.msra.mxu3 %v5267_v39  ;;  %3390 = vmatpush.bf16.msra.mxu1 %v4723_v49  ;;  %v6613_v9 = vld [vmem:[#allocation2 + $0x664] sm:$0xf0] }
  0xfd   :  { %v4370_v11 = vld [vmem:[#allocation2 + $0x8] sm:$0xf]  ;;  %v5171_v18 = vor.u32 %v6613_v9, %v5170_v8 }
  0xfe   :  { %3403 = vmatpush.bf16.msra.mxu2 %v4979_v50  ;;  %3378 = vmatpush.bf16.msra.mxu0 %v4435_v60  ;;  %v6413_v12 = vld [vmem:[#allocation2 + $0x24] sm:$0xf0] }
  0xff   :  { %v4626_v15 = vld [vmem:[#allocation2 + $0x208] sm:$0xf]  ;;  %v4371_v27 = vor.u32 %v6413_v12, %v4370_v11 }
 0x100   :  { %3416 = vmatpush.bf16.msra.mxu3 %v5235_v54  ;;  %3391 = vmatpush.bf16.msra.mxu1 %v4691_v61  ;;  %v6477_v16 = vld [vmem:[#allocation2 + $0x224] sm:$0xf0] }
 0x101   :  { %v4882_v17 = vld [vmem:[#allocation2 + $0x408] sm:$0xf]  ;;  %v4627_v31 = vor.u32 %v6477_v16, %v4626_v15 }
 0x102   :  { %3404 = vmatpush.bf16.msra.mxu2 %v4947_v62  ;;  %v6541_v19 = vld [vmem:[#allocation2 + $0x424] sm:$0xf0]  ;;  %3379 = vmatpush.bf16.msra.mxu0 %v4403_v10 }
 0x103   :  { %v5138_v22 = vld [vmem:[#allocation2 + $0x608] sm:$0xf]  ;;  %v4883_v32 = vor.u32 %v6541_v19, %v4882_v17 }
 0x104   :  { %3417 = vmatpush.bf16.msra.mxu3 %v5203_v2  ;;  %v6605_v23 = vld [vmem:[#allocation2 + $0x624] sm:$0xf0]  ;;  %3392 = vmatpush.bf16.msra.mxu1 %v4659_v13 }
 0x105   :  { %v5618_v24 = vld [vmem:[#allocation2 + $0x9c8] sm:$0xf]  ;;  %v5139_v35 = vor.u32 %v6605_v23, %v5138_v22 }
 0x106   :  { %v6725_v25 = vld [vmem:[#allocation2 + $0x9e4] sm:$0xf0]  ;;  %3405 = vmatpush.bf16.msra.mxu2 %v4915_v14  ;;  %3380 = vmatpush.bf16.msra.mxu0 %v4371_v27 }
 0x107   :  { %v5874_v26 = vld [vmem:[#allocation2 + $0xbc8] sm:$0xf]  ;;  %v5619_v36 = vor.u32 %v6725_v25, %v5618_v24 }
 0x108   :  { %v6789_v28 = vld [vmem:[#allocation2 + $0xbe4] sm:$0xf0]  ;;  %3418 = vmatpush.bf16.msra.mxu3 %v5171_v18  ;;  %3393 = vmatpush.bf16.msra.mxu1 %v4627_v31 }
 0x109   :  { %v6130_v29 = vld [vmem:[#allocation2 + $0xdc8] sm:$0xf]  ;;  %v5875_v37 = vor.u32 %v6789_v28, %v5874_v26  ;;  %3381 = vmatmul.bf16.vlgmr.msra.gmra.mxu0 %v7155_v20 }
 0x10a   :  { %v6853_v30 = vld [vmem:[#allocation2 + $0xde4] sm:$0xf0]  ;;  %3406 = vmatpush.bf16.msra.mxu2 %v4883_v32  ;;  %3425 = vmatpush.bf16.msrb.mxu0 %v5619_v36 }
 0x10b   :  { %v6386_v33 = vld [vmem:[#allocation2 + $0xfc8] sm:$0xf]  ;;  %v6131_v39 = vor.u32 %v6853_v30, %v6130_v29  ;;  %3394 = vmatmul.bf16.vlgmr.msra.gmra.mxu1 %v7158_v21 }
 0x10c   :  { %v6917_v34 = vld [vmem:[#allocation2 + $0xfe4] sm:$0xf0]  ;;  %3419 = vmatpush.bf16.msra.mxu3 %v5139_v35  ;;  %3438 = vmatpush.bf16.msrb.mxu1 %v5875_v37 }
 0x10d   :  { %v5586_v40 = vld [vmem:[#allocation2 + $0x988] sm:$0xf]  ;;  %v6387_v46 = vor.u32 %v6917_v34, %v6386_v33  ;;  %3407 = vmatmul.bf16.vlgmr.msra.gmra.mxu2 %v7150_v4 }
 0x10e   :  { %v6717_v43 = vld [vmem:[#allocation2 + $0x9a4] sm:$0xf0]  ;;  %3451 = vmatpush.bf16.msrb.mxu2 %v6131_v39 }
 0x10f   :  { %v5842_v45 = vld [vmem:[#allocation2 + $0xb88] sm:$0xf]  ;;  %v5587_v52 = vor.u32 %v6717_v43, %v5586_v40  ;;  %3420 = vmatmul.bf16.vlgmr.msra.gmra.mxu3 %v7152_v6  ;;  %v3174_v43 = vpop.f32.mrf.mxu0 }
 0x110   :  { %v6781_v47 = vld [vmem:[#allocation2 + $0xba4] sm:$0xf0]  ;;  %3464 = vmatpush.bf16.msrb.mxu3 %v6387_v46  ;;  %v3187_v46 = vpop.f32.mrf.mxu1 }
 0x111   :  { %v6098_v48 = vld [vmem:[#allocation2 + $0xd88] sm:$0xf]  ;;  %v5843_v53 = vor.u32 %v6781_v47, %v5842_v45  ;;  %3426 = vmatpush.bf16.msrb.mxu0 %v5587_v52  ;;  %v3188_v52 = vadd.f32 %v3187_v46, %v3174_v43  ;;  %v5076_v43 = vld [vmem:[#allocation2 + $0x5a8] sm:$0xf0] }
 0x112   :  { %v6845_v49 = vld [vmem:[#allocation2 + $0xda4] sm:$0xf0]  ;;  %v5332_v46 = vld [vmem:[#allocation2 + $0x7a8] sm:$0xf0] }
 0x113   :  { %v6354_v50 = vld [vmem:[#allocation2 + $0xf88] sm:$0xf]  ;;  %v6099_v54 = vor.u32 %v6845_v49, %v6098_v48  ;;  %3439 = vmatpush.bf16.msrb.mxu1 %v5843_v53  ;;  %v3200_v53 = vpop.f32.mrf.mxu2 }
 0x114   :  { %v6909_v51 = vld [vmem:[#allocation2 + $0xfa4] sm:$0xf0] }
 0x115   :  { %v5554_v55 = vld [vmem:[#allocation2 + $0x948] sm:$0xf]  ;;  %v6355_v58 = vor.u32 %v6909_v51, %v6354_v50  ;;  %3452 = vmatpush.bf16.msrb.mxu2 %v6099_v54 }
 0x116   :  { %v6709_v56 = vld [vmem:[#allocation2 + $0x964] sm:$0xf0] }
 0x117   :  { %v5810_v57 = vld [vmem:[#allocation2 + $0xb48] sm:$0xf]  ;;  %v5555_v0 = vor.u32 %v6709_v56, %v5554_v55  ;;  %3465 = vmatpush.bf16.msrb.mxu3 %v6355_v58  ;;  %v3213_v58 = vpop.f32.mrf.mxu3 }
 0x118   :  { %v6773_v59 = vld [vmem:[#allocation2 + $0xb64] sm:$0xf0] }
 0x119   :  { %v6066_v60 = vld [vmem:[#allocation2 + $0xd48] sm:$0xf]  ;;  %v5811_v1 = vor.u32 %v6773_v59, %v5810_v57  ;;  %3427 = vmatpush.bf16.msrb.mxu0 %v5555_v0 }
 0x11a   :  { %v6837_v61 = vld [vmem:[#allocation2 + $0xd64] sm:$0xf0] }
 0x11b   :  { %v6322_v62 = vld [vmem:[#allocation2 + $0xf48] sm:$0xf]  ;;  %v6067_v2 = vor.u32 %v6837_v61, %v6066_v60  ;;  %3440 = vmatpush.bf16.msrb.mxu1 %v5811_v1  ;;  %v3201_v61 = vadd.f32 %v3200_v53, %v3188_v52  ;;  %v6513_v52 = vld [vmem:[#allocation2 + $0x34c] sm:$0xf] }
 0x11c   :  { %v6901_v63 = vld [vmem:[#allocation2 + $0xf64] sm:$0xf0] }
 0x11d   :  { %v5522_v3 = vld [vmem:[#allocation2 + $0x908] sm:$0xf]  ;;  %v6323_v8 = vor.u32 %v6901_v63, %v6322_v62  ;;  %3453 = vmatpush.bf16.msrb.mxu2 %v6067_v2 }
 0x11e   :  { %v6701_v5 = vld [vmem:[#allocation2 + $0x924] sm:$0xf0] }
 0x11f   :  { %v5778_v7 = vld [vmem:[#allocation2 + $0xb08] sm:$0xf]  ;;  %v5523_v14 = vor.u32 %v6701_v5, %v5522_v3  ;;  %3466 = vmatpush.bf16.msrb.mxu3 %v6323_v8  ;;  %v7186_v8 = vadd.f32 %v3213_v58, %v3201_v61  ;;  %v5300_v58 = vld [vmem:[#allocation2 + $0x768] sm:$0xf0] }
 0x120   :  { %v6765_v9 = vld [vmem:[#allocation2 + $0xb24] sm:$0xf0] }
 0x121   :  { %v6034_v10 = vld [vmem:[#allocation2 + $0xd08] sm:$0xf]  ;;  %v5779_v15 = vor.u32 %v6765_v9, %v5778_v7  ;;  %3428 = vmatpush.bf16.msrb.mxu0 %v5523_v14  ;;  %v4596_v14 = vld [vmem:[#allocation2 + $0x1e8] sm:$0xf0] }
 0x122   :  { %v6829_v11 = vld [vmem:[#allocation2 + $0xd24] sm:$0xf0] }
 0x123   :  { %v6290_v12 = vld [vmem:[#allocation2 + $0xf08] sm:$0xf]  ;;  %v6035_v16 = vor.u32 %v6829_v11, %v6034_v10  ;;  %3441 = vmatpush.bf16.msrb.mxu1 %v5779_v15  ;;  %v6529_v15 = vld [vmem:[#allocation2 + $0x3cc] sm:$0xf] }
 0x124   :  { %v6893_v13 = vld [vmem:[#allocation2 + $0xf24] sm:$0xf0] }
 0x125   :  { %v5490_v17 = vld [vmem:[#allocation2 + $0x8c8] sm:$0xf]  ;;  %v6291_v22 = vor.u32 %v6893_v13, %v6290_v12  ;;  %3454 = vmatpush.bf16.msrb.mxu2 %v6035_v16  ;;  %v6465_v13 = vld [vmem:[#allocation2 + $0x1cc] sm:$0xf]  ;;  %v3176_v16 = vpop.f32.mrf.mxu0 }
 0x126   :  { %v6693_v18 = vld [vmem:[#allocation2 + $0x8e4] sm:$0xf0]  ;;  %v6497_v16 = vld [vmem:[#allocation2 + $0x2cc] sm:$0xf] }
 0x127   :  { %v5746_v19 = vld [vmem:[#allocation2 + $0xac8] sm:$0xf]  ;;  %v5491_v28 = vor.u32 %v6693_v18, %v5490_v17  ;;  %3467 = vmatpush.bf16.msrb.mxu3 %v6291_v22  ;;  %v4852_v18 = vld [vmem:[#allocation2 + $0x3e8] sm:$0xf0] }
 0x128   :  { %v6757_v23 = vld [vmem:[#allocation2 + $0xae4] sm:$0xf0]  ;;  %v5108_v22 = vld [vmem:[#allocation2 + $0x5e8] sm:$0xf0] }
 0x129   :  { %v6002_v24 = vld [vmem:[#allocation2 + $0xcc8] sm:$0xf]  ;;  %v5747_v29 = vor.u32 %v6757_v23, %v5746_v19  ;;  %3429 = vmatpush.bf16.msrb.mxu0 %v5491_v28  ;;  %v6593_v19 = vld [vmem:[#allocation2 + $0x5cc] sm:$0xf]  ;;  %v3189_v23 = vpop.f32.mrf.mxu1  ;;  %v3202_v28 = vpop.f32.mrf.mxu2 }
 0x12a   :  { %v6821_v25 = vld [vmem:[#allocation2 + $0xce4] sm:$0xf0]  ;;  %v6561_v23 = vld [vmem:[#allocation2 + $0x4cc] sm:$0xf] }
 0x12b   :  { %v6258_v26 = vld [vmem:[#allocation2 + $0xec8] sm:$0xf]  ;;  %v6003_v30 = vor.u32 %v6821_v25, %v6002_v24  ;;  %3442 = vmatpush.bf16.msrb.mxu1 %v5747_v29 }
 0x12c   :  { %v6885_v27 = vld [vmem:[#allocation2 + $0xee4] sm:$0xf0] }
 0x12d   :  { %v5458_v31 = vld [vmem:[#allocation2 + $0x888] sm:$0xf]  ;;  %v6259_v34 = vor.u32 %v6885_v27, %v6258_v26  ;;  %3455 = vmatpush.bf16.msrb.mxu2 %v6003_v30  ;;  %v6657_v26 = vld [vmem:[#allocation2 + $0x7cc] sm:$0xf]  ;;  %v4599_v30 = vor.u32 %v6465_v13, %v4596_v14 }
 0x12e   :  { %v6685_v32 = vld [vmem:[#allocation2 + $0x8a4] sm:$0xf0]  ;;  %v5364_v27 = vld [vmem:[#allocation2 + $0x7e8] sm:$0xf0] }
 0x12f   :  { %v5714_v33 = vld [vmem:[#allocation2 + $0xa88] sm:$0xf]  ;;  %v5459_v45 = vor.u32 %v6685_v32, %v5458_v31  ;;  %3468 = vmatpush.bf16.msrb.mxu3 %v6259_v34  ;;  %v3215_v31 = vpop.f32.mrf.mxu3  ;;  %v4855_v32 = vor.u32 %v6529_v15, %v4852_v18  ;;  %v6457_v34 = vld [vmem:[#allocation2 + $0x18c] sm:$0xf] }
 0x130   :  { %v6749_v35 = vld [vmem:[#allocation2 + $0xaa4] sm:$0xf0]  ;;  %v6433_v14 = vld [vmem:[#allocation2 + $0xcc] sm:$0xf] }
 0x131   :  { %v5970_v36 = vld [vmem:[#allocation2 + $0xc88] sm:$0xf]  ;;  %v5715_v47 = vor.u32 %v6749_v35, %v5714_v33  ;;  %3430 = vmatpush.bf16.msrb.mxu0 %v5459_v45  ;;  %v5111_v33 = vor.u32 %v6593_v19, %v5108_v22  ;;  %v4564_v35 = vld [vmem:[#allocation2 + $0x1a8] sm:$0xf0]  ;;  %v3239_v18 = vpop.f32.mrf.mxu1 }
 0x132   :  { %v6813_v37 = vld [vmem:[#allocation2 + $0xca4] sm:$0xf0]  ;;  %v6649_v45 = vld [vmem:[#allocation2 + $0x78c] sm:$0xf] }
 0x133   :  { %v6226_v39 = vld [vmem:[#allocation2 + $0xe88] sm:$0xf]  ;;  %v5971_v48 = vor.u32 %v6813_v37, %v5970_v36  ;;  %3443 = vmatpush.bf16.msrb.mxu1 %v5715_v47  ;;  %v6521_v36 = vld [vmem:[#allocation2 + $0x38c] sm:$0xf]  ;;  %v5367_v37 = vor.u32 %v6657_v26, %v5364_v27  ;;  %v4567_v47 = vor.u32 %v6457_v34, %v4564_v35  ;;  %v5335_v53 = vor.u32 %v6649_v45, %v5332_v46  ;;  %v3252_v34 = vpop.f32.mrf.mxu2 }
 0x134   :  { %v6877_v40 = vld [vmem:[#allocation2 + $0xea4] sm:$0xf0]  ;;  %v4468_v15 = vld [vmem:[#allocation2 + $0xe8] sm:$0xf0] }
 0x135   :  { %v5426_v49 = vld [vmem:[#allocation2 + $0x848] sm:$0xf]  ;;  %v6227_v54 = vor.u32 %v6877_v40, %v6226_v39  ;;  %3456 = vmatpush.bf16.msrb.mxu2 %v5971_v48  ;;  %v4820_v39 = vld [vmem:[#allocation2 + $0x3a8] sm:$0xf0]  ;;  %v4471_v28 = vor.u32 %v6433_v14, %v4468_v15 }
 0x136   :  { %v6677_v50 = vld [vmem:[#allocation2 + $0x864] sm:$0xf0]  ;;  %v6585_v40 = vld [vmem:[#allocation2 + $0x58c] sm:$0xf]  ;;  %v4823_v48 = vor.u32 %v6521_v36, %v4820_v39 }
 0x137   :  { %v5682_v51 = vld [vmem:[#allocation2 + $0xa48] sm:$0xf]  ;;  %v5427_v62 = vor.u32 %v6677_v50, %v5426_v49  ;;  %3469 = vmatpush.bf16.msrb.mxu3 %v6227_v54  ;;  %v5079_v49 = vor.u32 %v6585_v40, %v5076_v43  ;;  %v6449_v50 = vld [vmem:[#allocation2 + $0x14c] sm:$0xf]  ;;  %v3265_v40 = vpop.f32.mrf.mxu3 }
 0x138   :  { %v6741_v55 = vld [vmem:[#allocation2 + $0xa64] sm:$0xf0]  ;;  %v4788_v54 = vld [vmem:[#allocation2 + $0x368] sm:$0xf0] }
 0x139   :  { %v5938_v56 = vld [vmem:[#allocation2 + $0xc48] sm:$0xf]  ;;  %v5683_v1 = vor.u32 %v6741_v55, %v5682_v51  ;;  %3431 = vmatpush.bf16.msrb.mxu0 %v5427_v62  ;;  %v4532_v51 = vld [vmem:[#allocation2 + $0x168] sm:$0xf0] }
 0x13a   :  { %v6805_v57 = vld [vmem:[#allocation2 + $0xc64] sm:$0xf0]  ;;  %v6577_v55 = vld [vmem:[#allocation2 + $0x54c] sm:$0xf] }
 0x13b   :  { %v6194_v59 = vld [vmem:[#allocation2 + $0xe48] sm:$0xf]  ;;  %v5939_v2 = vor.u32 %v6805_v57, %v5938_v56  ;;  %3444 = vmatpush.bf16.msrb.mxu1 %v5683_v1  ;;  %v5044_v56 = vld [vmem:[#allocation2 + $0x568] sm:$0xf0] }
 0x13c   :  { %v6869_v60 = vld [vmem:[#allocation2 + $0xe64] sm:$0xf0]  ;;  %v6641_v57 = vld [vmem:[#allocation2 + $0x74c] sm:$0xf]  ;;  %v5047_v61 = vor.u32 %v6577_v55, %v5044_v56 }
 0x13d   :  { %v5394_v63 = vld [vmem:[#allocation2 + $0x808] sm:$0xf]  ;;  %v6195_v9 = vor.u32 %v6869_v60, %v6194_v59  ;;  %3457 = vmatpush.bf16.msrb.mxu2 %v5939_v2  ;;  %v4535_v59 = vor.u32 %v6449_v50, %v4532_v51  ;;  %v4791_v60 = vor.u32 %v6513_v52, %v4788_v54  ;;  %v6441_v62 = vld [vmem:[#allocation2 + $0x10c] sm:$0xf]  ;;  %v5303_v1 = vor.u32 %v6641_v57, %v5300_v58  ;;  %v3241_v54 = vpop.f32.mrf.mxu1 }
 0x13e   :  { %v6669_v0 = vld [vmem:[#allocation2 + $0x824] sm:$0xf0]  ;;  %v4756_v2 = vld [vmem:[#allocation2 + $0x328] sm:$0xf0] }
 0x13f   :  { %v5650_v3 = vld [vmem:[#allocation2 + $0xa08] sm:$0xf]  ;;  %v5395_v17 = vor.u32 %v6669_v0, %v5394_v63  ;;  %3470 = vmatpush.bf16.msrb.mxu3 %v6195_v9  ;;  %v4500_v63 = vld [vmem:[#allocation2 + $0x128] sm:$0xf0] }
 0x140   :  { %v6733_v5 = vld [vmem:[#allocation2 + $0xa24] sm:$0xf0]  ;;  %v6505_v0 = vld [vmem:[#allocation2 + $0x30c] sm:$0xf] }
 0x141   :  { %v5906_v7 = vld [vmem:[#allocation2 + $0xc08] sm:$0xf]  ;;  %v5651_v24 = vor.u32 %v6733_v5, %v5650_v3  ;;  %3432 = vmatpush.bf16.msrb.mxu0 %v5395_v17  ;;  %v6569_v3 = vld [vmem:[#allocation2 + $0x50c] sm:$0xf] }
 0x142   :  { %v6797_v10 = vld [vmem:[#allocation2 + $0xc24] sm:$0xf0]  ;;  %v5012_v5 = vld [vmem:[#allocation2 + $0x528] sm:$0xf0] }
 0x143   :  { %v6162_v11 = vld [vmem:[#allocation2 + $0xe08] sm:$0xf]  ;;  %v5907_v25 = vor.u32 %v6797_v10, %v5906_v7  ;;  %3445 = vmatpush.bf16.msrb.mxu1 %v5651_v24  ;;  %v6633_v7 = vld [vmem:[#allocation2 + $0x70c] sm:$0xf]  ;;  %v4503_v10 = vor.u32 %v6441_v62, %v4500_v63  ;;  %v5015_v13 = vor.u32 %v6569_v3, %v5012_v5 }
 0x144   :  { %v6861_v12 = vld [vmem:[#allocation2 + $0xe24] sm:$0xf0]  ;;  %3433 = vmatmul.bf16.vlgmr.msrb.gmra.mxu0 %v7164_v41  ;;  %v5268_v9 = vld [vmem:[#allocation2 + $0x728] sm:$0xf0] }
 0x145   :  { %v6163_v29 = vor.u32 %v6861_v12, %v6162_v11  ;;  %3458 = vmatpush.bf16.msrb.mxu2 %v5907_v25  ;;  %3477 = vmatpush.bf16.msra.mxu0 %v4599_v30  ;;  %v3226_v11 = vpop.f32.mrf.mxu0  ;;  %v4759_v12 = vor.u32 %v6505_v0, %v4756_v2  ;;  %v5271_v19 = vor.u32 %v6633_v7, %v5268_v9  ;;  %v4724_v22 = vld [vmem:[#allocation2 + $0x2e8] sm:$0xf0]  ;;  %v3254_v7 = vpop.f32.mrf.mxu2 }
 0x146   :  { %3446 = vmatmul.bf16.vlgmr.msrb.gmra.mxu1 %v7168_v44  ;;  %v3227_v17 = vadd.f32 %v3226_v11, %v7186_v8  ;;  %v4980_v24 = vld [vmem:[#allocation2 + $0x4e8] sm:$0xf0] }
 0x147   :  { %3471 = vmatpush.bf16.msrb.mxu3 %v6163_v29  ;;  %3490 = vmatpush.bf16.msra.mxu1 %v4855_v32  ;;  %v6625_v25 = vld [vmem:[#allocation2 + $0x6cc] sm:$0xf]  ;;  %v4727_v29 = vor.u32 %v6497_v16, %v4724_v22  ;;  %v4983_v30 = vor.u32 %v6561_v23, %v4980_v24 }
 0x148   :  { %3459 = vmatmul.bf16.vlgmr.msrb.gmra.mxu2 %v7162_v38  ;;  %v5236_v26 = vld [vmem:[#allocation2 + $0x6e8] sm:$0xf0]  ;;  %v3240_v27 = vadd.f32 %v3239_v18, %v3227_v17 }
 0x149   :  { %3503 = vmatpush.bf16.msra.mxu2 %v5111_v33  ;;  %3478 = vmatpush.bf16.msra.mxu0 %v4567_v47  ;;  %v6425_v31 = vld [vmem:[#allocation2 + $0x8c] sm:$0xf]  ;;  %v5239_v8 = vor.u32 %v6625_v25, %v5236_v26 }
 0x14a   :  { %3472 = vmatmul.bf16.vlgmr.msrb.gmra.mxu3 %v7166_v42  ;;  %v4436_v32 = vld [vmem:[#allocation2 + $0xa8] sm:$0xf0]  ;;  %v3253_v39 = vadd.f32 %v3252_v34, %v3240_v27 }
 0x14b   :  { %3516 = vmatpush.bf16.msra.mxu3 %v5367_v37  ;;  %3491 = vmatpush.bf16.msra.mxu1 %v4823_v48  ;;  %v6489_v33 = vld [vmem:[#allocation2 + $0x28c] sm:$0xf]  ;;  %v4439_v46 = vor.u32 %v6425_v31, %v4436_v32 }
 0x14c   :  { %v4692_v35 = vld [vmem:[#allocation2 + $0x2a8] sm:$0xf0]  ;;  %v7193_v47 = vadd.f32 %v3265_v40, %v3253_v39  ;;  %v7195_v40 = vld [vmem:[#allocation5] sm:$0xff] }
 0x14d   :  { %3504 = vmatpush.bf16.msra.mxu2 %v5079_v49  ;;  %3479 = vmatpush.bf16.msra.mxu0 %v4535_v59  ;;  %v6553_v36 = vld [vmem:[#allocation2 + $0x48c] sm:$0xf]  ;;  %v3228_v48 = vpop.f32.mrf.mxu0  ;;  %v4695_v49 = vor.u32 %v6489_v33, %v4692_v35 }
 0x14e   :  { %v4948_v37 = vld [vmem:[#allocation2 + $0x4a8] sm:$0xf0] }
 0x14f   :  { %3517 = vmatpush.bf16.msra.mxu3 %v5335_v53  ;;  %3492 = vmatpush.bf16.msra.mxu1 %v4791_v60  ;;  %v6617_v43 = vld [vmem:[#allocation2 + $0x68c] sm:$0xf]  ;;  %v4951_v50 = vor.u32 %v6553_v36, %v4948_v37 }
 0x150   :  { %v5204_v45 = vld [vmem:[#allocation2 + $0x6a8] sm:$0xf0] }
 0x151   :  { %3505 = vmatpush.bf16.msra.mxu2 %v5047_v61  ;;  %3480 = vmatpush.bf16.msra.mxu0 %v4503_v10  ;;  %v6417_v51 = vld [vmem:[#allocation2 + $0x4c] sm:$0xf]  ;;  %v5207_v55 = vor.u32 %v6617_v43, %v5204_v45 }
 0x152   :  { %v4404_v52 = vld [vmem:[#allocation2 + $0x68] sm:$0xf0] }
 0x153   :  { %3518 = vmatpush.bf16.msra.mxu3 %v5303_v1  ;;  %3493 = vmatpush.bf16.msra.mxu1 %v4759_v12  ;;  %v6481_v53 = vld [vmem:[#allocation2 + $0x24c] sm:$0xf]  ;;  %v4407_v61 = vor.u32 %v6417_v51, %v4404_v52 }
 0x154   :  { %v4660_v56 = vld [vmem:[#allocation2 + $0x268] sm:$0xf0] }
 0x155   :  { %3506 = vmatpush.bf16.msra.mxu2 %v5015_v13  ;;  %3481 = vmatpush.bf16.msra.mxu0 %v4471_v28  ;;  %v6545_v57 = vld [vmem:[#allocation2 + $0x44c] sm:$0xf]  ;;  %v4663_v0 = vor.u32 %v6481_v53, %v4660_v56  ;;  %v3267_v13 = vpop.f32.mrf.mxu3 }
 0x156   :  { %v4916_v58 = vld [vmem:[#allocation2 + $0x468] sm:$0xf0] }
 0x157   :  { %3519 = vmatpush.bf16.msra.mxu3 %v5271_v19  ;;  %3494 = vmatpush.bf16.msra.mxu1 %v4727_v29  ;;  %v6609_v59 = vld [vmem:[#allocation2 + $0x64c] sm:$0xf]  ;;  %v4919_v1 = vor.u32 %v6545_v57, %v4916_v58  ;;  %v7201_v57 = vunpack.c.l.bf16 %v7195_v40 }
 0x158   :  { %v5172_v60 = vld [vmem:[#allocation2 + $0x668] sm:$0xf0] }
 0x159   :  { %3507 = vmatpush.bf16.msra.mxu2 %v4983_v30  ;;  %3482 = vmatpush.bf16.msra.mxu0 %v4439_v46  ;;  %v6409_v62 = vld [vmem:[#allocation2 + $0xc] sm:$0xf]  ;;  %v5175_v9 = vor.u32 %v6609_v59, %v5172_v60  ;;  %vm4194_vm0 = vcmp.ge.f32.partialorder %v7201_v57, 0.0 }
 0x15a   :  { %v4372_v63 = vld [vmem:[#allocation2 + $0x28] sm:$0xf0] }
 0x15b   :  { %3520 = vmatpush.bf16.msra.mxu3 %v5239_v8  ;;  %3495 = vmatpush.bf16.msra.mxu1 %v4695_v49  ;;  %v6473_v2 = vld [vmem:[#allocation2 + $0x20c] sm:$0xf]  ;;  %v4375_v17 = vor.u32 %v6409_v62, %v4372_v63 }
 0x15c   :  { %v4628_v3 = vld [vmem:[#allocation2 + $0x228] sm:$0xf0] }
 0x15d   :  { %3508 = vmatpush.bf16.msra.mxu2 %v4951_v50  ;;  %v6537_v5 = vld [vmem:[#allocation2 + $0x40c] sm:$0xf]  ;;  %3483 = vmatpush.bf16.msra.mxu0 %v4407_v61  ;;  %v4631_v23 = vor.u32 %v6473_v2, %v4628_v3 }
 0x15e   :  { %v4884_v10 = vld [vmem:[#allocation2 + $0x428] sm:$0xf0] }
 0x15f   :  { %3521 = vmatpush.bf16.msra.mxu3 %v5207_v55  ;;  %v6601_v11 = vld [vmem:[#allocation2 + $0x60c] sm:$0xf]  ;;  %3496 = vmatpush.bf16.msra.mxu1 %v4663_v0  ;;  %v4887_v24 = vor.u32 %v6537_v5, %v4884_v10 }
 0x160   :  { %v5140_v12 = vld [vmem:[#allocation2 + $0x628] sm:$0xf0] }
 0x161   :  { %v6721_v14 = vld [vmem:[#allocation2 + $0x9cc] sm:$0xf]  ;;  %3509 = vmatpush.bf16.msra.mxu2 %v4919_v1  ;;  %v5143_v27 = vor.u32 %v6601_v11, %v5140_v12  ;;  %3484 = vmatpush.bf16.msra.mxu0 %v4375_v17  ;;  %v3278_v11 = vpop.f32.mrf.mxu0  ;;  %v3291_v17 = vpop.f32.mrf.mxu1 }
 0x162   :  { %v5620_v15 = vld [vmem:[#allocation2 + $0x9e8] sm:$0xf0] }
 0x163   :  { %v6785_v16 = vld [vmem:[#allocation2 + $0xbcc] sm:$0xf]  ;;  %3522 = vmatpush.bf16.msra.mxu3 %v5175_v9  ;;  %v5623_v28 = vor.u32 %v6721_v14, %v5620_v15  ;;  %3497 = vmatpush.bf16.msra.mxu1 %v4631_v23  ;;  %v4025_v9 = vand.u32 2147483647, %v7201_v57 }
 0x164   :  { %v5876_v18 = vld [vmem:[#allocation2 + $0xbe8] sm:$0xf0]  ;;  %3485 = vmatmul.bf16.vlgmr.msra.gmra.mxu0 %v7155_v20 }
 0x165   :  { %v6849_v19 = vld [vmem:[#allocation2 + $0xdcc] sm:$0xf]  ;;  %v5879_v29 = vor.u32 %v6785_v16, %v5876_v18  ;;  %3510 = vmatpush.bf16.msra.mxu2 %v4887_v24  ;;  %3529 = vmatpush.bf16.msrb.mxu0 %v5623_v28  ;;  %v3292_v24 = vadd.f32 %v3291_v17, %v3278_v11 }
 0x166   :  { %v6132_v22 = vld [vmem:[#allocation2 + $0xde8] sm:$0xf0]  ;;  %3498 = vmatmul.bf16.vlgmr.msra.gmra.mxu1 %v7158_v21 }
 0x167   :  { %v6913_v25 = vld [vmem:[#allocation2 + $0xfcc] sm:$0xf]  ;;  %v6135_v30 = vor.u32 %v6849_v19, %v6132_v22  ;;  %3523 = vmatpush.bf16.msra.mxu3 %v5143_v27  ;;  %3542 = vmatpush.bf16.msrb.mxu1 %v5879_v29  ;;  %v4033_v27 = vsub.f32 0.0, %v4025_v9 }
 0x168   :  { %v6388_v26 = vld [vmem:[#allocation2 + $0xfe8] sm:$0xf0]  ;;  %3511 = vmatmul.bf16.vlgmr.msra.gmra.mxu2 %v7150_v4 }
 0x169   :  { %v6713_v31 = vld [vmem:[#allocation2 + $0x98c] sm:$0xf]  ;;  %v6391_v34 = vor.u32 %v6913_v25, %v6388_v26  ;;  %3555 = vmatpush.bf16.msrb.mxu2 %v6135_v30 }
 0x16a   :  { %v5588_v32 = vld [vmem:[#allocation2 + $0x9a8] sm:$0xf0]  ;;  %3524 = vmatmul.bf16.vlgmr.msra.gmra.mxu3 %v7152_v6 }
 0x16b   :  { %v6777_v33 = vld [vmem:[#allocation2 + $0xb8c] sm:$0xf]  ;;  %v5591_v43 = vor.u32 %v6713_v31, %v5588_v32  ;;  %3568 = vmatpush.bf16.msrb.mxu3 %v6391_v34  ;;  %v3304_v34 = vpop.f32.mrf.mxu2 }
 0x16c   :  { %v5844_v8 = vld [vmem:[#allocation2 + $0xba8] sm:$0xf0] }
 0x16d   :  { %v6841_v35 = vld [vmem:[#allocation2 + $0xd8c] sm:$0xf]  ;;  %v5847_v45 = vor.u32 %v6777_v33, %v5844_v8  ;;  %3530 = vmatpush.bf16.msrb.mxu0 %v5591_v43  ;;  %v7206_v8 = vunpack.c.h.bf16 %v7195_v40  ;;  %v3305_v43 = vadd.f32 %v3304_v34, %v3292_v24  ;;  %v4858_v24 = vld [vmem:[#allocation2 + $0x3d0] sm:$0xf] }
 0x16e   :  { %v6100_v36 = vld [vmem:[#allocation2 + $0xda8] sm:$0xf0] }
 0x16f   :  { %v6905_v37 = vld [vmem:[#allocation2 + $0xf8c] sm:$0xf]  ;;  %v6103_v46 = vor.u32 %v6841_v35, %v6100_v36  ;;  %3543 = vmatpush.bf16.msrb.mxu1 %v5847_v45  ;;  %v3317_v45 = vpop.f32.mrf.mxu3  ;;  %vm4195_vm1 = vcmp.ge.f32.partialorder %v7206_v8, 0.0 }
 0x170   :  { %v6356_v39 = vld [vmem:[#allocation2 + $0xfa8] sm:$0xf0] }
 0x171   :  { %v6705_v48 = vld [vmem:[#allocation2 + $0x94c] sm:$0xf]  ;;  %v6359_v51 = vor.u32 %v6905_v37, %v6356_v39  ;;  %3556 = vmatpush.bf16.msrb.mxu2 %v6103_v46 }
 0x172   :  { %v5556_v49 = vld [vmem:[#allocation2 + $0x968] sm:$0xf0] }
 0x173   :  { %v6769_v50 = vld [vmem:[#allocation2 + $0xb4c] sm:$0xf]  ;;  %v5559_v58 = vor.u32 %v6705_v48, %v5556_v49  ;;  %3569 = vmatpush.bf16.msrb.mxu3 %v6359_v51  ;;  %v4041_v49 = vmul.f32 1.442695, %v4033_v27  ;;  %v5114_v27 = vld [vmem:[#allocation2 + $0x5d0] sm:$0xf] }
 0x174   :  { %v5812_v52 = vld [vmem:[#allocation2 + $0xb68] sm:$0xf0] }
 0x175   :  { %v6833_v53 = vld [vmem:[#allocation2 + $0xd4c] sm:$0xf]  ;;  %v5815_v59 = vor.u32 %v6769_v50, %v5812_v52  ;;  %3531 = vmatpush.bf16.msrb.mxu0 %v5559_v58  ;;  %v7208_v52 = vadd.f32 %v3317_v45, %v3305_v43  ;;  %v3293_v58 = vpop.f32.mrf.mxu1  ;;  %6927 = vpow2.f32 %v4041_v49  ;;  %v4570_v43 = vld [vmem:[#allocation2 + $0x190] sm:$0xf] }
 0x176   :  { %v6068_v54 = vld [vmem:[#allocation2 + $0xd68] sm:$0xf0]  ;;  %v6462_v45 = vld [vmem:[#allocation2 + $0x1ac] sm:$0xf0] }
 0x177   :  { %v6897_v55 = vld [vmem:[#allocation2 + $0xf4c] sm:$0xf]  ;;  %v6071_v60 = vor.u32 %v6833_v53, %v6068_v54  ;;  %3544 = vmatpush.bf16.msrb.mxu1 %v5815_v59  ;;  %v3280_v53 = vpop.f32.mrf.mxu0  ;;  %v4026_v59 = vand.u32 2147483647, %v7206_v8  ;;  %v6526_v49 = vld [vmem:[#allocation2 + $0x3ac] sm:$0xf0] }
 0x178   :  { %v6324_v56 = vld [vmem:[#allocation2 + $0xf68] sm:$0xf0]  ;;  %v3997_v53 = vmul.f32 0.0010405828, %v7193_v47 }
 0x179   :  { %v6697_v61 = vld [vmem:[#allocation2 + $0x90c] sm:$0xf]  ;;  %v6327_v0 = vor.u32 %v6897_v55, %v6324_v56  ;;  %3557 = vmatpush.bf16.msrb.mxu2 %v6071_v60 }
 0x17a   :  { %v5524_v62 = vld [vmem:[#allocation2 + $0x928] sm:$0xf0] }
 0x17b   :  { %v6761_v63 = vld [vmem:[#allocation2 + $0xb0c] sm:$0xf]  ;;  %v5527_v10 = vor.u32 %v6697_v61, %v5524_v62  ;;  %3570 = vmatpush.bf16.msrb.mxu3 %v6327_v0 }
 0x17c   :  { %v5780_v1 = vld [vmem:[#allocation2 + $0xb28] sm:$0xf0] }
 0x17d   :  { %v6825_v2 = vld [vmem:[#allocation2 + $0xd0c] sm:$0xf]  ;;  %v5783_v12 = vor.u32 %v6761_v63, %v5780_v1  ;;  %3532 = vmatpush.bf16.msrb.mxu0 %v5527_v10 }
 0x17e   :  { %v6036_v3 = vld [vmem:[#allocation2 + $0xd28] sm:$0xf0] }
 0x17f   :  { %v6889_v5 = vld [vmem:[#allocation2 + $0xf0c] sm:$0xf]  ;;  %v6039_v13 = vor.u32 %v6825_v2, %v6036_v3  ;;  %3545 = vmatpush.bf16.msrb.mxu1 %v5783_v12 }
 0x180   :  { %v6292_v7 = vld [vmem:[#allocation2 + $0xf28] sm:$0xf0] }
 0x181   :  { %v6689_v14 = vld [vmem:[#allocation2 + $0x8cc] sm:$0xf]  ;;  %v6295_v18 = vor.u32 %v6889_v5, %v6292_v7  ;;  %3558 = vmatpush.bf16.msrb.mxu2 %v6039_v13  ;;  %v3306_v13 = vpop.f32.mrf.mxu2 }
 0x182   :  { %v5492_v15 = vld [vmem:[#allocation2 + $0x8e8] sm:$0xf0] }
 0x183   :  { %v6753_v16 = vld [vmem:[#allocation2 + $0xacc] sm:$0xf]  ;;  %v5495_v28 = vor.u32 %v6689_v14, %v5492_v15  ;;  %3571 = vmatpush.bf16.msrb.mxu3 %v6295_v18  ;;  %v4034_v14 = vsub.f32 0.0, %v4026_v59  ;;  %v4571_v59 = vor.u32 %v6462_v45, %v4570_v43  ;;  %v4986_v43 = vld [vmem:[#allocation2 + $0x4d0] sm:$0xf] }
 0x184   :  { %v5748_v19 = vld [vmem:[#allocation2 + $0xae8] sm:$0xf0]  ;;  %v6566_v45 = vld [vmem:[#allocation2 + $0x4ec] sm:$0xf0] }
 0x185   :  { %v6817_v22 = vld [vmem:[#allocation2 + $0xccc] sm:$0xf]  ;;  %v5751_v29 = vor.u32 %v6753_v16, %v5748_v19  ;;  %3533 = vmatpush.bf16.msrb.mxu0 %v5495_v28  ;;  %v3319_v19 = vpop.f32.mrf.mxu3  ;;  %v6598_v28 = vld [vmem:[#allocation2 + $0x5ec] sm:$0xf0] }
 0x186   :  { %v6004_v23 = vld [vmem:[#allocation2 + $0xce8] sm:$0xf0]  ;;  %v5018_v19 = vld [vmem:[#allocation2 + $0x510] sm:$0xf] }
 0x187   :  { %v6881_v25 = vld [vmem:[#allocation2 + $0xecc] sm:$0xf]  ;;  %v6007_v30 = vor.u32 %v6817_v22, %v6004_v23  ;;  %3546 = vmatpush.bf16.msrb.mxu1 %v5751_v29  ;;  %v4602_v22 = vld [vmem:[#allocation2 + $0x1d0] sm:$0xf] }
 0x188   :  { %v6260_v26 = vld [vmem:[#allocation2 + $0xee8] sm:$0xf0]  ;;  %v6470_v23 = vld [vmem:[#allocation2 + $0x1ec] sm:$0xf0] }
 0x189   :  { %v6681_v31 = vld [vmem:[#allocation2 + $0x88c] sm:$0xf]  ;;  %v6263_v35 = vor.u32 %v6881_v25, %v6260_v26  ;;  %3559 = vmatpush.bf16.msrb.mxu2 %v6007_v30  ;;  %v6534_v26 = vld [vmem:[#allocation2 + $0x3ec] sm:$0xf0] }
 0x18a   :  { %v5460_v32 = vld [vmem:[#allocation2 + $0x8a8] sm:$0xf0] }
 0x18b   :  { %v6745_v33 = vld [vmem:[#allocation2 + $0xa8c] sm:$0xf]  ;;  %v5463_v50 = vor.u32 %v6681_v31, %v5460_v32  ;;  %3572 = vmatpush.bf16.msrb.mxu3 %v6263_v35  ;;  %v5370_v31 = vld [vmem:[#allocation2 + $0x7d0] sm:$0xf]  ;;  %v4603_v35 = vor.u32 %v6470_v23, %v4602_v22 }
 0x18c   :  { %v5716_v36 = vld [vmem:[#allocation2 + $0xaa8] sm:$0xf0]  ;;  %v6662_v32 = vld [vmem:[#allocation2 + $0x7ec] sm:$0xf0] }
 0x18d   :  { %v6809_v37 = vld [vmem:[#allocation2 + $0xc8c] sm:$0xf]  ;;  %v5719_v40 = vor.u32 %v6745_v33, %v5716_v36  ;;  %3534 = vmatpush.bf16.msrb.mxu0 %v5463_v50  ;;  %v4043_v33 = vmul.f32 1.442695, %v4034_v14  ;;  %v7211_v36 = vpop.eup %6927  ;;  %v5082_v50 = vld [vmem:[#allocation2 + $0x590] sm:$0xf] }
 0x18e   :  { %v5972_v39 = vld [vmem:[#allocation2 + $0xca8] sm:$0xf0]  ;;  %v7220_v58 = vadd.f32 1.0, %v7211_v36  ;;  %v4506_v14 = vld [vmem:[#allocation2 + $0x110] sm:$0xf] }
 0x18f   :  { %v6873_v46 = vld [vmem:[#allocation2 + $0xe8c] sm:$0xf]  ;;  %v5975_v54 = vor.u32 %v6809_v37, %v5972_v39  ;;  %3547 = vmatpush.bf16.msrb.mxu1 %v5719_v40  ;;  %v4859_v37 = vor.u32 %v6534_v26, %v4858_v24  ;;  %v5115_v39 = vor.u32 %v6598_v28, %v5114_v27  ;;  %v7214_v40 = vld [vmem:[#allocation7] sm:$0xff]  ;;  %6929 = vpow2.f32 %v4043_v33  ;;  %v6574_v22 = vld [vmem:[#allocation2 + $0x52c] sm:$0xf0]  ;;  %v3330_v27 = vpop.f32.mrf.mxu0 }
 0x190   :  { %v6228_v48 = vld [vmem:[#allocation2 + $0xea8] sm:$0xf0]  ;;  %6931 = vrcp.f32 %v7220_v58  ;;  %v5274_v24 = vld [vmem:[#allocation2 + $0x710] sm:$0xf] }
 0x191   :  { %v6673_v51 = vld [vmem:[#allocation2 + $0x84c] sm:$0xf]  ;;  %v6231_v60 = vor.u32 %v6873_v46, %v6228_v48  ;;  %3560 = vmatpush.bf16.msrb.mxu2 %v5975_v54  ;;  %v4826_v46 = vld [vmem:[#allocation2 + $0x390] sm:$0xf]  ;;  %v5371_v48 = vor.u32 %v6662_v32, %v5370_v31  ;;  %v7217_v54 = vunpack.c.l.bf16 %v7214_v40  ;;  %v3331_v31 = vadd.f32 %v3330_v27, %v7208_v52  ;;  %v3343_v32 = vpop.f32.mrf.mxu1 }
 0x192   :  { %v5428_v55 = vld [vmem:[#allocation2 + $0x868] sm:$0xf0]  ;;  %v4474_v33 = vld [vmem:[#allocation2 + $0xd0] sm:$0xf] }
 0x193   :  { %v6737_v56 = vld [vmem:[#allocation2 + $0xa4c] sm:$0xf]  ;;  %v5431_v2 = vor.u32 %v6673_v51, %v5428_v55  ;;  %3573 = vmatpush.bf16.msrb.mxu3 %v6231_v60  ;;  %v6590_v51 = vld [vmem:[#allocation2 + $0x5ac] sm:$0xf0]  ;;  %v4827_v60 = vor.u32 %v6526_v49, %v4826_v46 }
 0x194   :  { %v5684_v61 = vld [vmem:[#allocation2 + $0xa68] sm:$0xf0]  ;;  %v5338_v55 = vld [vmem:[#allocation2 + $0x790] sm:$0xf]  ;;  %v5083_v47 = vor.u32 %v6590_v51, %v5082_v50 }
 0x195   :  { %v6801_v62 = vld [vmem:[#allocation2 + $0xc4c] sm:$0xf]  ;;  %v5687_v9 = vor.u32 %v6737_v56, %v5684_v61  ;;  %3535 = vmatpush.bf16.msrb.mxu0 %v5431_v2  ;;  %v6654_v56 = vld [vmem:[#allocation2 + $0x7ac] sm:$0xf0] }
 0x196   :  { %v5940_v63 = vld [vmem:[#allocation2 + $0xc68] sm:$0xf0]  ;;  %v4538_v61 = vld [vmem:[#allocation2 + $0x150] sm:$0xf] }
 0x197   :  { %v6865_v0 = vld [vmem:[#allocation2 + $0xe4c] sm:$0xf]  ;;  %v5943_v10 = vor.u32 %v6801_v62, %v5940_v63  ;;  %3548 = vmatpush.bf16.msrb.mxu1 %v5687_v9  ;;  %v6454_v62 = vld [vmem:[#allocation2 + $0x16c] sm:$0xf0] }
 0x198   :  { %v6196_v1 = vld [vmem:[#allocation2 + $0xe68] sm:$0xf0]  ;;  %v4794_v63 = vld [vmem:[#allocation2 + $0x350] sm:$0xf] }
 0x199   :  { %v6665_v3 = vld [vmem:[#allocation2 + $0x80c] sm:$0xf]  ;;  %v6199_v15 = vor.u32 %v6865_v0, %v6196_v1  ;;  %3561 = vmatpush.bf16.msrb.mxu2 %v5943_v10  ;;  %v5339_v0 = vor.u32 %v6654_v56, %v5338_v55  ;;  %v6518_v1 = vld [vmem:[#allocation2 + $0x36c] sm:$0xf0]  ;;  %v4539_v10 = vor.u32 %v6454_v62, %v4538_v61  ;;  %v4987_v55 = vor.u32 %v6566_v45, %v4986_v43  ;;  %v3356_v56 = vpop.f32.mrf.mxu2 }
 0x19a   :  { %v5396_v5 = vld [vmem:[#allocation2 + $0x828] sm:$0xf0]  ;;  %v5050_v2 = vld [vmem:[#allocation2 + $0x550] sm:$0xf] }
 0x19b   :  { %v6729_v7 = vld [vmem:[#allocation2 + $0xa0c] sm:$0xf]  ;;  %v5399_v25 = vor.u32 %v6665_v3, %v5396_v5  ;;  %3574 = vmatpush.bf16.msrb.mxu3 %v6199_v15  ;;  %v6582_v3 = vld [vmem:[#allocation2 + $0x56c] sm:$0xf0]  ;;  %v4218_v5 = vsub.f32 %v3997_v53, %v7217_v54 }
 0x19c   :  { %v5652_v11 = vld [vmem:[#allocation2 + $0xa28] sm:$0xf0]  ;;  %v6646_v9 = vld [vmem:[#allocation2 + $0x76c] sm:$0xf0]  ;;  %v5051_v13 = vor.u32 %v6582_v3, %v5050_v2 }
 0x19d   :  { %v6793_v12 = vld [vmem:[#allocation2 + $0xc0c] sm:$0xf]  ;;  %v5655_v29 = vor.u32 %v6729_v7, %v5652_v11  ;;  %3536 = vmatpush.bf16.msrb.mxu0 %v5399_v25  ;;  %v5306_v7 = vld [vmem:[#allocation2 + $0x750] sm:$0xf]  ;;  %v7227_v11 = vpop.eup %6929  ;;  %v4226_v23 = vand.u32 2147483647, %v4218_v5 }
 0x19e   :  { %v5908_v16 = vld [vmem:[#allocation2 + $0xc28] sm:$0xf0]  ;;  %v6446_v15 = vld [vmem:[#allocation2 + $0x12c] sm:$0xf0]  ;;  %v7231_v28 = vadd.f32 1.0, %v7227_v11  ;;  %v6932_v51 = vpop.eup %6931 }
 0x19f   :  { %v6857_v17 = vld [vmem:[#allocation2 + $0xe0c] sm:$0xf]  ;;  %v5911_v30 = vor.u32 %v6793_v12, %v5908_v16  ;;  %3549 = vmatpush.bf16.msrb.mxu1 %v5655_v29  ;;  %v4795_v12 = vor.u32 %v6518_v1, %v4794_v63  ;;  %v4762_v16 = vld [vmem:[#allocation2 + $0x310] sm:$0xf]  ;;  %v4507_v26 = vor.u32 %v6446_v15, %v4506_v14  ;;  %v4234_v46 = vmul.f32 5.0, %v4226_v23  ;;  %v3369_v63 = vpop.f32.mrf.mxu3  ;;  %v3332_v15 = vpop.f32.mrf.mxu0 }
 0x1a0   :  { %v6164_v18 = vld [vmem:[#allocation2 + $0xe28] sm:$0xf0]  ;;  %3537 = vmatmul.bf16.vlgmr.msrb.gmra.mxu0 %v7164_v41  ;;  %v6638_v25 = vld [vmem:[#allocation2 + $0x72c] sm:$0xf0]  ;;  %6933 = vrcp.f32 %v7231_v28  ;;  %v4202_v3 = vmul.f32 %v6932_v51, %v7211_v36  ;;  %v3345_v23 = vpop.f32.mrf.mxu1 }
 0x1a1   :  { %v6167_v34 = vor.u32 %v6857_v17, %v6164_v18  ;;  %3562 = vmatpush.bf16.msrb.mxu2 %v5911_v30  ;;  %3581 = vmatpush.bf16.msra.mxu0 %v4603_v35  ;;  %v5307_v17 = vor.u32 %v6646_v9, %v5306_v7  ;;  %v6510_v18 = vld [vmem:[#allocation2 + $0x32c] sm:$0xf0]  ;;  %v5019_v30 = vor.u32 %v6574_v22, %v5018_v19  ;;  %v4242_v5 = vadd.f32 1.0, %v4234_v46 }
 0x1a2   :  { %3550 = vmatmul.bf16.vlgmr.msrb.gmra.mxu1 %v7168_v44  ;;  %v4763_v29 = vor.u32 %v6510_v18, %v4762_v16  ;;  %v4730_v35 = vld [vmem:[#allocation2 + $0x2d0] sm:$0xf] }
 0x1a3   :  { %3575 = vmatpush.bf16.msrb.mxu3 %v6167_v34  ;;  %3594 = vmatpush.bf16.msra.mxu1 %v4859_v37  ;;  %v6438_v34 = vld [vmem:[#allocation2 + $0xec] sm:$0xf0]  ;;  %v5275_v37 = vor.u32 %v6638_v25, %v5274_v24 }
 0x1a4   :  { %3563 = vmatmul.bf16.vlgmr.msrb.gmra.mxu2 %v7162_v38  ;;  %v5242_v49 = vld [vmem:[#allocation2 + $0x6d0] sm:$0xf]  ;;  %v4475_v53 = vor.u32 %v6438_v34, %v4474_v33 }
 0x1a5   :  { %3607 = vmatpush.bf16.msra.mxu2 %v5115_v39  ;;  %3582 = vmatpush.bf16.msra.mxu0 %v4571_v59  ;;  %v6502_v39 = vld [vmem:[#allocation2 + $0x2ec] sm:$0xf0] }
 0x1a6   :  { %3576 = vmatmul.bf16.vlgmr.msrb.gmra.mxu3 %v7166_v42  ;;  %v6630_v50 = vld [vmem:[#allocation2 + $0x6ec] sm:$0xf0]  ;;  %v4731_v52 = vor.u32 %v6502_v39, %v4730_v35  ;;  %v6934_v24 = vpop.eup %6933 }
 0x1a7   :  { %3620 = vmatpush.bf16.msra.mxu3 %v5371_v48  ;;  %3595 = vmatpush.bf16.msra.mxu1 %v4827_v60  ;;  %v3344_v48 = vadd.f32 %v3343_v32, %v3331_v31  ;;  %v4442_v59 = vld [vmem:[#allocation2 + $0x90] sm:$0xf]  ;;  %v5243_v61 = vor.u32 %v6630_v50, %v5242_v49  ;;  %v4210_v32 = vsel %vm4194_vm0, %v6932_v51, %v4202_v3 }
 0x1a8   :  { %v6430_v60 = vld [vmem:[#allocation2 + $0xac] sm:$0xf0]  ;;  %v4203_v43 = vmul.f32 %v6934_v24, %v7227_v11 }
 0x1a9   :  { %3608 = vmatpush.bf16.msra.mxu2 %v5083_v47  ;;  %3583 = vmatpush.bf16.msra.mxu0 %v4539_v10  ;;  %v4698_v47 = vld [vmem:[#allocation2 + $0x290] sm:$0xf]  ;;  %v3357_v62 = vadd.f32 %v3356_v56, %v3344_v48 }
 0x1aa   :  { %v4954_v1 = vld [vmem:[#allocation2 + $0x490] sm:$0xf] }
 0x1ab   :  { %3621 = vmatpush.bf16.msra.mxu3 %v5339_v0  ;;  %3596 = vmatpush.bf16.msra.mxu1 %v4795_v12  ;;  %v6494_v0 = vld [vmem:[#allocation2 + $0x2ac] sm:$0xf0]  ;;  %v3370_v10 = vadd.f32 %v3369_v63, %v3357_v62  ;;  %v7238_v12 = vunpack.c.h.bf16 %v7214_v40  ;;  %v4250_v62 = vmul.f32 %v4242_v5, %v4210_v32  ;;  %v4258_v63 = vmul.f32 %v4242_v5, %v7217_v54 }
 0x1ac   :  { %v6558_v2 = vld [vmem:[#allocation2 + $0x4ac] sm:$0xf0]  ;;  %v4699_v16 = vor.u32 %v6494_v0, %v4698_v47 }
 0x1ad   :  { %3609 = vmatpush.bf16.msra.mxu2 %v5051_v13  ;;  %3584 = vmatpush.bf16.msra.mxu0 %v4507_v26  ;;  %v5210_v7 = vld [vmem:[#allocation2 + $0x690] sm:$0xf]  ;;  %v4443_v13 = vor.u32 %v6430_v60, %v4442_v59  ;;  %v3998_v25 = vmul.f32 0.0010405828, %v3370_v10  ;;  %v3371_v59 = vpop.f32.mrf.mxu3 }
 0x1ae   :  { %v6622_v9 = vld [vmem:[#allocation2 + $0x6ac] sm:$0xf0] }
 0x1af   :  { %3622 = vmatpush.bf16.msra.mxu3 %v5307_v17  ;;  %3597 = vmatpush.bf16.msra.mxu1 %v4763_v29  ;;  %v4410_v14 = vld [vmem:[#allocation2 + $0x50] sm:$0xf]  ;;  %v4955_v17 = vor.u32 %v6558_v2, %v4954_v1  ;;  %v5211_v26 = vor.u32 %v6622_v9, %v5210_v7  ;;  %v4219_v33 = vsub.f32 %v3998_v25, %v7238_v12 }
 0x1b0   :  { %v6422_v18 = vld [vmem:[#allocation2 + $0x6c] sm:$0xf0]  ;;  %v4211_v7 = vsel %vm4195_vm1, %v6934_v24, %v4203_v43  ;;  %vm4176_vm1 = vcmask 0  }
 0x1b1   :  { %3610 = vmatpush.bf16.msra.mxu2 %v5019_v30  ;;  %3585 = vmatpush.bf16.msra.mxu0 %v4475_v53  ;;  %v4666_v19 = vld [vmem:[#allocation2 + $0x250] sm:$0xf]  ;;  %v4411_v34 = vor.u32 %v6422_v18, %v4410_v14  ;;  %v3358_v53 = vpop.f32.mrf.mxu2 }
 0x1b2   :  { %v6486_v22 = vld [vmem:[#allocation2 + $0x26c] sm:$0xf0] }
 0x1b3   :  { %3623 = vmatpush.bf16.msra.mxu3 %v5275_v37  ;;  %3598 = vmatpush.bf16.msra.mxu1 %v4731_v52  ;;  %v4922_v27 = vld [vmem:[#allocation2 + $0x450] sm:$0xf]  ;;  %v4667_v45 = vor.u32 %v6486_v22, %v4666_v19  ;;  %v4227_v52 = vand.u32 2147483647, %v4219_v33 }
 0x1b4   :  { %v6550_v40 = vld [vmem:[#allocation2 + $0x46c] sm:$0xf0] }
 0x1b5   :  { %3611 = vmatpush.bf16.msra.mxu2 %v4987_v55  ;;  %v5178_v29 = vld [vmem:[#allocation2 + $0x650] sm:$0xf]  ;;  %3586 = vmatpush.bf16.msra.mxu0 %v4443_v13  ;;  %v4923_v46 = vor.u32 %v6550_v40, %v4922_v27  ;;  %v4235_v0 = vmul.f32 5.0, %v4227_v52 }
 0x1b6   :  { %v6614_v30 = vld [vmem:[#allocation2 + $0x66c] sm:$0xf0] }
 0x1b7   :  { %3624 = vmatpush.bf16.msra.mxu3 %v5243_v61  ;;  %v4378_v31 = vld [vmem:[#allocation2 + $0x10] sm:$0xf]  ;;  %3599 = vmatpush.bf16.msra.mxu1 %v4699_v16  ;;  %v5179_v51 = vor.u32 %v6614_v30, %v5178_v29  ;;  %v4243_v15 = vadd.f32 1.0, %v4235_v0  ;;  %v4266_v30 = vmul.f32 %v4250_v62, %v7217_v54 }
 0x1b8   :  { %v6414_v35 = vld [vmem:[#allocation2 + $0x2c] sm:$0xf0] }
 0x1b9   :  { %v4634_v37 = vld [vmem:[#allocation2 + $0x210] sm:$0xf]  ;;  %3612 = vmatpush.bf16.msra.mxu2 %v4955_v17  ;;  %3587 = vmatpush.bf16.msra.mxu0 %v4411_v34  ;;  %v4379_v1 = vor.u32 %v6414_v35, %v4378_v31  ;;  %v4251_v25 = vmul.f32 %v4243_v15, %v4211_v7  ;;  %v4283_v31 = vadd.f32 %v4258_v63, %v4250_v62 }
 0x1ba   :  { %v6478_v39 = vld [vmem:[#allocation2 + $0x22c] sm:$0xf0] }
 0x1bb   :  { %v4890_v48 = vld [vmem:[#allocation2 + $0x410] sm:$0xf]  ;;  %3625 = vmatpush.bf16.msra.mxu3 %v5211_v26  ;;  %3600 = vmatpush.bf16.msra.mxu1 %v4667_v45  ;;  %v4635_v9 = vor.u32 %v6478_v39, %v4634_v37  ;;  %v4259_v26 = vmul.f32 %v4243_v15, %v7238_v12  ;;  %v4267_v34 = vmul.f32 %v4251_v25, %v7238_v12  ;;  %v3382_v15 = vpop.f32.mrf.mxu0 }
 0x1bc   :  { %v6542_v49 = vld [vmem:[#allocation2 + $0x42c] sm:$0xf0] }
 0x1bd   :  { %v5146_v50 = vld [vmem:[#allocation2 + $0x610] sm:$0xf]  ;;  %3613 = vmatpush.bf16.msra.mxu2 %v4923_v46  ;;  %v4891_v10 = vor.u32 %v6542_v49, %v4890_v48  ;;  %3588 = vmatpush.bf16.msra.mxu0 %v4379_v1  ;;  %v4284_v35 = vadd.f32 %v4259_v26, %v4251_v25  ;;  %v7251_v49 = vadd.f32 %v4267_v34, %v4266_v30 }
 0x1be   :  { %v6606_v55 = vld [vmem:[#allocation2 + $0x62c] sm:$0xf0] }
 0x1bf   :  { %v5626_v56 = vld [vmem:[#allocation2 + $0x9d0] sm:$0xf]  ;;  %3626 = vmatpush.bf16.msra.mxu3 %v5179_v51  ;;  %v5147_v16 = vor.u32 %v6606_v55, %v5146_v50  ;;  %3601 = vmatpush.bf16.msra.mxu1 %v4635_v9  ;;  %v7253_v50 = vadd.f32 %v4284_v35, %v4283_v31 }
 0x1c0   :  { %v6726_v60 = vld [vmem:[#allocation2 + $0x9ec] sm:$0xf0]  ;;  %3589 = vmatmul.bf16.vlgmr.msra.gmra.mxu0 %v7155_v20 }
 0x1c1   :  { %v5882_v47 = vld [vmem:[#allocation2 + $0xbd0] sm:$0xf]  ;;  %v5627_v17 = vor.u32 %v6726_v60, %v5626_v56  ;;  %3614 = vmatpush.bf16.msra.mxu2 %v4891_v10 }
 0x1c2   :  { %v6790_v61 = vld [vmem:[#allocation2 + $0xbec] sm:$0xf0]  ;;  %3602 = vmatmul.bf16.vlgmr.msra.gmra.mxu1 %v7158_v21 }
 0x1c3   :  { %v6138_v2 = vld [vmem:[#allocation2 + $0xdd0] sm:$0xf]  ;;  %v5883_v18 = vor.u32 %v6790_v61, %v5882_v47  ;;  %3627 = vmatpush.bf16.msra.mxu3 %v5147_v16  ;;  %3633 = vmatpush.bf16.msrb.mxu0 %v5627_v17 }
 0x1c4   :  { %v6854_v3 = vld [vmem:[#allocation2 + $0xdec] sm:$0xf0]  ;;  %3615 = vmatmul.bf16.vlgmr.msra.gmra.mxu2 %v7150_v4 }
 0x1c5   :  { %v6394_v13 = vld [vmem:[#allocation2 + $0xfd0] sm:$0xf]  ;;  %v6139_v5 = vor.u32 %v6854_v3, %v6138_v2  ;;  %3646 = vmatpush.bf16.msrb.mxu1 %v5883_v18 }
 0x1c6   :  { %v6918_v14 = vld [vmem:[#allocation2 + $0xfec] sm:$0xf0]  ;;  %3628 = vmatmul.bf16.vlgmr.msra.gmra.mxu3 %v7152_v6 }
 0x1c7   :  { %v5594_v19 = vld [vmem:[#allocation2 + $0x990] sm:$0xf]  ;;  %v6395_v24 = vor.u32 %v6918_v14, %v6394_v13  ;;  %3659 = vmatpush.bf16.msrb.mxu2 %v6139_v5 }
 0x1c8   :  { %v6718_v22 = vld [vmem:[#allocation2 + $0x9ac] sm:$0xf0] }
 0x1c9   :  { %v5850_v23 = vld [vmem:[#allocation2 + $0xb90] sm:$0xf]  ;;  %v5595_v37 = vor.u32 %v6718_v22, %v5594_v19  ;;  %3672 = vmatpush.bf16.msrb.mxu3 %v6395_v24  ;;  %v3395_v22 = vpop.f32.mrf.mxu1 }
 0x1ca   :  { %v6782_v27 = vld [vmem:[#allocation2 + $0xbac] sm:$0xf0]  ;;  %v3396_v24 = vadd.f32 %v3395_v22, %v3382_v15 }
 0x1cb   :  { %v6106_v40 = vld [vmem:[#allocation2 + $0xd90] sm:$0xf]  ;;  %v5851_v39 = vor.u32 %v6782_v27, %v5850_v23  ;;  %3634 = vmatpush.bf16.msrb.mxu0 %v5595_v37  ;;  %v7259_v27 = vld [vmem:[#allocation5 + $0x8] sm:$0xff]  ;;  %v3408_v37 = vpop.f32.mrf.mxu2 }
 0x1cc   :  { %v6846_v29 = vld [vmem:[#allocation2 + $0xdac] sm:$0xf0] }
 0x1cd   :  { %v6362_v32 = vld [vmem:[#allocation2 + $0xf90] sm:$0xf]  ;;  %v6107_v43 = vor.u32 %v6846_v29, %v6106_v40  ;;  %3647 = vmatpush.bf16.msrb.mxu1 %v5851_v39  ;;  %v7262_v39 = vunpack.c.l.bf16 %v7259_v27 }
 0x1ce   :  { %v6910_v33 = vld [vmem:[#allocation2 + $0xfac] sm:$0xf0] }
 0x1cf   :  { %v5562_v45 = vld [vmem:[#allocation2 + $0x950] sm:$0xf]  ;;  %v6363_v53 = vor.u32 %v6910_v33, %v6362_v32  ;;  %3660 = vmatpush.bf16.msrb.mxu2 %v6107_v43  ;;  %vm4196_vm2 = vcmp.ge.f32.partialorder %v7262_v39, 0.0 }
 0x1d0   :  { %v6710_v46 = vld [vmem:[#allocation2 + $0x96c] sm:$0xf0] }
 0x1d1   :  { %v5818_v48 = vld [vmem:[#allocation2 + $0xb50] sm:$0xf]  ;;  %v5563_v60 = vor.u32 %v6710_v46, %v5562_v45  ;;  %3673 = vmatpush.bf16.msrb.mxu3 %v6363_v53  ;;  %v3409_v53 = vadd.f32 %v3408_v37, %v3396_v24  ;;  %v4860_v37 = vld [vmem:[#allocation2 + $0x3f0] sm:$0xf0] }
 0x1d2   :  { %v6774_v52 = vld [vmem:[#allocation2 + $0xb6c] sm:$0xf0] }
 0x1d3   :  { %v6074_v51 = vld [vmem:[#allocation2 + $0xd50] sm:$0xf]  ;;  %v5819_v47 = vor.u32 %v6774_v52, %v5818_v48  ;;  %3635 = vmatpush.bf16.msrb.mxu0 %v5563_v60  ;;  %v3421_v52 = vpop.f32.mrf.mxu3 }
 0x1d4   :  { %v6838_v55 = vld [vmem:[#allocation2 + $0xd6c] sm:$0xf0]  ;;  %v7264_v60 = vadd.f32 %v3421_v52, %v3409_v53  ;;  %v6658_v53 = vld [vmem:[#allocation2 + $0x7d4] sm:$0xf] }
 0x1d5   :  { %v6330_v56 = vld [vmem:[#allocation2 + $0xf50] sm:$0xf]  ;;  %v6075_v61 = vor.u32 %v6838_v55, %v6074_v51  ;;  %3648 = vmatpush.bf16.msrb.mxu1 %v5819_v47  ;;  %v3384_v47 = vpop.f32.mrf.mxu0  ;;  %v5372_v52 = vld [vmem:[#allocation2 + $0x7f0] sm:$0xf0] }
 0x1d6   :  { %v6902_v59 = vld [vmem:[#allocation2 + $0xf6c] sm:$0xf0] }
 0x1d7   :  { %v5530_v62 = vld [vmem:[#allocation2 + $0x910] sm:$0xf]  ;;  %v6331_v1 = vor.u32 %v6902_v59, %v6330_v56  ;;  %3661 = vmatpush.bf16.msrb.mxu2 %v6075_v61 }
 0x1d8   :  { %v6702_v63 = vld [vmem:[#allocation2 + $0x92c] sm:$0xf0] }
 0x1d9   :  { %v5786_v0 = vld [vmem:[#allocation2 + $0xb10] sm:$0xf]  ;;  %v5531_v13 = vor.u32 %v6702_v63, %v5530_v62  ;;  %3674 = vmatpush.bf16.msrb.mxu3 %v6331_v1  ;;  %v3397_v1 = vpop.f32.mrf.mxu1 }
 0x1da   :  { %v6766_v2 = vld [vmem:[#allocation2 + $0xb2c] sm:$0xf0]  ;;  %v4828_v1 = vld [vmem:[#allocation2 + $0x3b0] sm:$0xf0] }
 0x1db   :  { %v6042_v3 = vld [vmem:[#allocation2 + $0xd10] sm:$0xf]  ;;  %v5787_v16 = vor.u32 %v6766_v2, %v5786_v0  ;;  %3636 = vmatpush.bf16.msrb.mxu0 %v5531_v13  ;;  %v4027_v2 = vand.u32 2147483647, %v7262_v39 }
 0x1dc   :  { %v6830_v7 = vld [vmem:[#allocation2 + $0xd2c] sm:$0xf0] }
 0x1dd   :  { %v6298_v9 = vld [vmem:[#allocation2 + $0xf10] sm:$0xf]  ;;  %v6043_v17 = vor.u32 %v6830_v7, %v6042_v3  ;;  %3649 = vmatpush.bf16.msrb.mxu1 %v5787_v16 }
 0x1de   :  { %v6894_v10 = vld [vmem:[#allocation2 + $0xf2c] sm:$0xf0] }
 0x1df   :  { %v5498_v14 = vld [vmem:[#allocation2 + $0x8d0] sm:$0xf]  ;;  %v6299_v23 = vor.u32 %v6894_v10, %v6298_v9  ;;  %3662 = vmatpush.bf16.msrb.mxu2 %v6043_v17 }
 0x1e0   :  { %v6694_v18 = vld [vmem:[#allocation2 + $0x8ec] sm:$0xf0] }
 0x1e1   :  { %v5754_v5 = vld [vmem:[#allocation2 + $0xad0] sm:$0xf]  ;;  %v5499_v30 = vor.u32 %v6694_v18, %v5498_v14  ;;  %3675 = vmatpush.bf16.msrb.mxu3 %v6299_v23 }
 0x1e2   :  { %v6758_v19 = vld [vmem:[#allocation2 + $0xaec] sm:$0xf0] }
 0x1e3   :  { %v6010_v25 = vld [vmem:[#allocation2 + $0xcd0] sm:$0xf]  ;;  %v5755_v31 = vor.u32 %v6758_v19, %v5754_v5  ;;  %3637 = vmatpush.bf16.msrb.mxu0 %v5499_v30 }
 0x1e4   :  { %v6822_v26 = vld [vmem:[#allocation2 + $0xcec] sm:$0xf0] }
 0x1e5   :  { %v6266_v40 = vld [vmem:[#allocation2 + $0xed0] sm:$0xf]  ;;  %v6011_v32 = vor.u32 %v6822_v26, %v6010_v25  ;;  %3650 = vmatpush.bf16.msrb.mxu1 %v5755_v31  ;;  %v3410_v25 = vpop.f32.mrf.mxu2  ;;  %v4035_v26 = vsub.f32 0.0, %v4027_v2  ;;  %v3423_v31 = vpop.f32.mrf.mxu3  ;;  %v6586_v2 = vld [vmem:[#allocation2 + $0x594] sm:$0xf] }
 0x1e6   :  { %v6886_v29 = vld [vmem:[#allocation2 + $0xeec] sm:$0xf0]  ;;  %v5308_v25 = vld [vmem:[#allocation2 + $0x770] sm:$0xf0] }
 0x1e7   :  { %v5466_v33 = vld [vmem:[#allocation2 + $0x890] sm:$0xf]  ;;  %v6267_v43 = vor.u32 %v6886_v29, %v6266_v40  ;;  %3663 = vmatpush.bf16.msrb.mxu2 %v6011_v32  ;;  %v6466_v32 = vld [vmem:[#allocation2 + $0x1d4] sm:$0xf] }
 0x1e8   :  { %v6686_v34 = vld [vmem:[#allocation2 + $0x8ac] sm:$0xf0]  ;;  %v4508_v31 = vld [vmem:[#allocation2 + $0x130] sm:$0xf0] }
 0x1e9   :  { %v5722_v35 = vld [vmem:[#allocation2 + $0xa90] sm:$0xf]  ;;  %v5467_v56 = vor.u32 %v6686_v34, %v5466_v33  ;;  %3676 = vmatpush.bf16.msrb.mxu3 %v6267_v43  ;;  %v4604_v33 = vld [vmem:[#allocation2 + $0x1f0] sm:$0xf0] }
 0x1ea   :  { %v6750_v45 = vld [vmem:[#allocation2 + $0xaac] sm:$0xf0]  ;;  %v6530_v34 = vld [vmem:[#allocation2 + $0x3d4] sm:$0xf] }
 0x1eb   :  { %v5978_v46 = vld [vmem:[#allocation2 + $0xc90] sm:$0xf]  ;;  %v5723_v61 = vor.u32 %v6750_v45, %v5722_v35  ;;  %3638 = vmatpush.bf16.msrb.mxu0 %v5467_v56  ;;  %v6594_v43 = vld [vmem:[#allocation2 + $0x5d4] sm:$0xf]  ;;  %v4607_v56 = vor.u32 %v6466_v32, %v4604_v33 }
 0x1ec   :  { %v6814_v48 = vld [vmem:[#allocation2 + $0xcac] sm:$0xf0]  ;;  %v5116_v45 = vld [vmem:[#allocation2 + $0x5f0] sm:$0xf0] }
 0x1ed   :  { %v6234_v51 = vld [vmem:[#allocation2 + $0xe90] sm:$0xf]  ;;  %v5979_v62 = vor.u32 %v6814_v48, %v5978_v46  ;;  %3651 = vmatpush.bf16.msrb.mxu1 %v5723_v61  ;;  %v5119_v47 = vor.u32 %v6594_v43, %v5116_v45  ;;  %v6458_v61 = vld [vmem:[#allocation2 + $0x194] sm:$0xf] }
 0x1ee   :  { %v6878_v55 = vld [vmem:[#allocation2 + $0xeac] sm:$0xf0]  ;;  %v6506_v32 = vld [vmem:[#allocation2 + $0x314] sm:$0xf] }
 0x1ef   :  { %v5434_v59 = vld [vmem:[#allocation2 + $0x850] sm:$0xf]  ;;  %v6235_v3 = vor.u32 %v6878_v55, %v6234_v51  ;;  %3664 = vmatpush.bf16.msrb.mxu2 %v5979_v62  ;;  %v4045_v51 = vmul.f32 1.442695, %v4035_v26  ;;  %v4572_v62 = vld [vmem:[#allocation2 + $0x1b0] sm:$0xf0] }
 0x1f0   :  { %v6678_v63 = vld [vmem:[#allocation2 + $0x86c] sm:$0xf0]  ;;  %v6634_v43 = vld [vmem:[#allocation2 + $0x714] sm:$0xf] }
 0x1f1   :  { %v5690_v0 = vld [vmem:[#allocation2 + $0xa50] sm:$0xf]  ;;  %v5435_v15 = vor.u32 %v6678_v63, %v5434_v59  ;;  %3677 = vmatpush.bf16.msrb.mxu3 %v6235_v3  ;;  %v4863_v59 = vor.u32 %v6530_v34, %v4860_v37  ;;  %v6522_v63 = vld [vmem:[#allocation2 + $0x394] sm:$0xf]  ;;  %6935 = vpow2.f32 %v4045_v51 }
 0x1f2   :  { %v6742_v7 = vld [vmem:[#allocation2 + $0xa6c] sm:$0xf0]  ;;  %v5084_v3 = vld [vmem:[#allocation2 + $0x5b0] sm:$0xf0] }
 0x1f3   :  { %v5946_v9 = vld [vmem:[#allocation2 + $0xc50] sm:$0xf]  ;;  %v5691_v5 = vor.u32 %v6742_v7, %v5690_v0  ;;  %3639 = vmatpush.bf16.msrb.mxu0 %v5435_v15  ;;  %v5375_v0 = vor.u32 %v6658_v53, %v5372_v52  ;;  %v6650_v7 = vld [vmem:[#allocation2 + $0x794] sm:$0xf] }
 0x1f4   :  { %v6806_v10 = vld [vmem:[#allocation2 + $0xc6c] sm:$0xf0]  ;;  %v6450_v15 = vld [vmem:[#allocation2 + $0x154] sm:$0xf] }
 0x1f5   :  { %v6202_v13 = vld [vmem:[#allocation2 + $0xe50] sm:$0xf]  ;;  %v5947_v19 = vor.u32 %v6806_v10, %v5946_v9  ;;  %3652 = vmatpush.bf16.msrb.mxu1 %v5691_v5  ;;  %v5340_v9 = vld [vmem:[#allocation2 + $0x7b0] sm:$0xf0]  ;;  %v4575_v10 = vor.u32 %v6458_v61, %v4572_v62 }
 0x1f6   :  { %v6870_v14 = vld [vmem:[#allocation2 + $0xe6c] sm:$0xf0]  ;;  %v4796_v5 = vld [vmem:[#allocation2 + $0x370] sm:$0xf0] }
 0x1f7   :  { %v5402_v16 = vld [vmem:[#allocation2 + $0x810] sm:$0xf]  ;;  %v6203_v24 = vor.u32 %v6870_v14, %v6202_v13  ;;  %3665 = vmatpush.bf16.msrb.mxu2 %v5947_v19  ;;  %v4831_v13 = vor.u32 %v6522_v63, %v4828_v1  ;;  %v5087_v14 = vor.u32 %v6586_v2, %v5084_v3  ;;  %v6578_v19 = vld [vmem:[#allocation2 + $0x554] sm:$0xf] }
 0x1f8   :  { %v6670_v17 = vld [vmem:[#allocation2 + $0x82c] sm:$0xf0]  ;;  %v4764_v34 = vld [vmem:[#allocation2 + $0x330] sm:$0xf0] }
 0x1f9   :  { %v5658_v18 = vld [vmem:[#allocation2 + $0xa10] sm:$0xf]  ;;  %v5403_v35 = vor.u32 %v6670_v17, %v5402_v16  ;;  %3678 = vmatpush.bf16.msrb.mxu3 %v6203_v24  ;;  %v4540_v16 = vld [vmem:[#allocation2 + $0x170] sm:$0xf0]  ;;  %v7271_v24 = vpop.eup %6935  ;;  %v4767_v52 = vor.u32 %v6506_v32, %v4764_v34 }
 0x1fa   :  { %v6734_v22 = vld [vmem:[#allocation2 + $0xa2c] sm:$0xf0]  ;;  %v6514_v17 = vld [vmem:[#allocation2 + $0x354] sm:$0xf]  ;;  %v4543_v26 = vor.u32 %v6450_v15, %v4540_v16  ;;  %v7274_v53 = vadd.f32 1.0, %v7271_v24 }
 0x1fb   :  { %v5914_v23 = vld [vmem:[#allocation2 + $0xc10] sm:$0xf]  ;;  %v5659_v46 = vor.u32 %v6734_v22, %v5658_v18  ;;  %3640 = vmatpush.bf16.msrb.mxu0 %v5403_v35  ;;  %v5343_v18 = vor.u32 %v6650_v7, %v5340_v9  ;;  %v5052_v22 = vld [vmem:[#allocation2 + $0x570] sm:$0xf0] }
 0x1fc   :  { %v6798_v40 = vld [vmem:[#allocation2 + $0xc2c] sm:$0xf0]  ;;  %v6570_v35 = vld [vmem:[#allocation2 + $0x514] sm:$0xf]  ;;  %6937 = vrcp.f32 %v7274_v53 }
 0x1fd   :  { %v6170_v29 = vld [vmem:[#allocation2 + $0xe10] sm:$0xf]  ;;  %v5915_v48 = vor.u32 %v6798_v40, %v5914_v23  ;;  %3653 = vmatpush.bf16.msrb.mxu1 %v5659_v46  ;;  %v6642_v23 = vld [vmem:[#allocation2 + $0x754] sm:$0xf]  ;;  %v4799_v40 = vor.u32 %v6514_v17, %v4796_v5  ;;  %v3473_v5 = vpop.f32.mrf.mxu3 }
 0x1fe   :  { %v6862_v30 = vld [vmem:[#allocation2 + $0xe2c] sm:$0xf0]  ;;  %3641 = vmatmul.bf16.vlgmr.msrb.gmra.mxu0 %v7164_v41  ;;  %v5311_v33 = vor.u32 %v6642_v23, %v5308_v25  ;;  %v5020_v37 = vld [vmem:[#allocation2 + $0x530] sm:$0xf0] }
 0x1ff   :  { %v6171_v55 = vor.u32 %v6862_v30, %v6170_v29  ;;  %3666 = vmatpush.bf16.msrb.mxu2 %v5915_v48  ;;  %3685 = vmatpush.bf16.msra.mxu0 %v4607_v56  ;;  %v5055_v29 = vor.u32 %v6578_v19, %v5052_v22  ;;  %v6442_v30 = vld [vmem:[#allocation2 + $0x114] sm:$0xf]  ;;  %v3434_v48 = vpop.f32.mrf.mxu0  ;;  %v5023_v51 = vor.u32 %v6570_v35, %v5020_v37  ;;  %v3447_v56 = vpop.f32.mrf.mxu1 }
 0x200   :  { %3654 = vmatmul.bf16.vlgmr.msrb.gmra.mxu1 %v7168_v44  ;;  %v5276_v45 = vld [vmem:[#allocation2 + $0x730] sm:$0xf0]  ;;  %v4511_v46 = vor.u32 %v6442_v30, %v4508_v31 }
 0x201   :  { %3679 = vmatpush.bf16.msrb.mxu3 %v6171_v55  ;;  %3698 = vmatpush.bf16.msra.mxu1 %v4863_v59  ;;  %v3435_v55 = vadd.f32 %v3434_v48, %v7264_v60  ;;  %v6434_v59 = vld [vmem:[#allocation2 + $0xd4] sm:$0xf]  ;;  %v5279_v62 = vor.u32 %v6634_v43, %v5276_v45 }
 0x202   :  { %3667 = vmatmul.bf16.vlgmr.msrb.gmra.mxu2 %v7162_v38  ;;  %v6498_v61 = vld [vmem:[#allocation2 + $0x2d4] sm:$0xf]  ;;  %v6938_v48 = vpop.eup %6937 }
 0x203   :  { %3711 = vmatpush.bf16.msra.mxu2 %v5119_v47  ;;  %3686 = vmatpush.bf16.msra.mxu0 %v4575_v10  ;;  %v4476_v47 = vld [vmem:[#allocation2 + $0xf0] sm:$0xf0]  ;;  %v3448_v2 = vadd.f32 %v3447_v56, %v3435_v55 }
 0x204   :  { %3680 = vmatmul.bf16.vlgmr.msrb.gmra.mxu3 %v7166_v42  ;;  %v4732_v63 = vld [vmem:[#allocation2 + $0x2f0] sm:$0xf0]  ;;  %v4479_v9 = vor.u32 %v6434_v59, %v4476_v47 }
 0x205   :  { %3724 = vmatpush.bf16.msra.mxu3 %v5375_v0  ;;  %3699 = vmatpush.bf16.msra.mxu1 %v4831_v13  ;;  %v6562_v0 = vld [vmem:[#allocation2 + $0x4d4] sm:$0xf]  ;;  %v4735_v10 = vor.u32 %v6498_v61, %v4732_v63  ;;  %v3460_v13 = vpop.f32.mrf.mxu2 }
 0x206   :  { %v4988_v1 = vld [vmem:[#allocation2 + $0x4f0] sm:$0xf0] }
 0x207   :  { %3712 = vmatpush.bf16.msra.mxu2 %v5087_v14  ;;  %3687 = vmatpush.bf16.msra.mxu0 %v4543_v26  ;;  %v6626_v3 = vld [vmem:[#allocation2 + $0x6d4] sm:$0xf]  ;;  %v4991_v60 = vor.u32 %v6562_v0, %v4988_v1 }
 0x208   :  { %v5244_v7 = vld [vmem:[#allocation2 + $0x6f0] sm:$0xf0] }
 0x209   :  { %3725 = vmatpush.bf16.msra.mxu3 %v5343_v18  ;;  %3700 = vmatpush.bf16.msra.mxu1 %v4799_v40  ;;  %v6426_v14 = vld [vmem:[#allocation2 + $0x94] sm:$0xf]  ;;  %v5247_v17 = vor.u32 %v6626_v3, %v5244_v7  ;;  %v3461_v18 = vadd.f32 %v3460_v13, %v3448_v2  ;;  %v4204_v3 = vmul.f32 %v6938_v48, %v7271_v24 }
 0x20a   :  { %v4444_v15 = vld [vmem:[#allocation2 + $0xb0] sm:$0xf0] }
 0x20b   :  { %3713 = vmatpush.bf16.msra.mxu2 %v5055_v29  ;;  %3688 = vmatpush.bf16.msra.mxu0 %v4511_v46  ;;  %v6490_v16 = vld [vmem:[#allocation2 + $0x294] sm:$0xf]  ;;  %v3474_v40 = vadd.f32 %v3473_v5, %v3461_v18  ;;  %v7278_v29 = vld [vmem:[#allocation7 + $0x8] sm:$0xff]  ;;  %v4447_v31 = vor.u32 %v6426_v14, %v4444_v15  ;;  %v3449_v46 = vpop.f32.mrf.mxu1  ;;  %v3475_v5 = vpop.f32.mrf.mxu3 }
 0x20c   :  { %v4700_v19 = vld [vmem:[#allocation2 + $0x2b0] sm:$0xf0]  ;;  %v7281_v30 = vunpack.c.l.bf16 %v7278_v29 }
 0x20d   :  { %3726 = vmatpush.bf16.msra.mxu3 %v5311_v33  ;;  %3701 = vmatpush.bf16.msra.mxu1 %v4767_v52  ;;  %v6554_v22 = vld [vmem:[#allocation2 + $0x494] sm:$0xf]  ;;  %v3436_v33 = vpop.f32.mrf.mxu0  ;;  %v4703_v34 = vor.u32 %v6490_v16, %v4700_v19  ;;  %v3999_v52 = vmul.f32 0.0010405828, %v3474_v40  ;;  %v3462_v14 = vpop.f32.mrf.mxu2 }
 0x20e   :  { %v4956_v23 = vld [vmem:[#allocation2 + $0x4b0] sm:$0xf0] }
 0x20f   :  { %3714 = vmatpush.bf16.msra.mxu2 %v5023_v51  ;;  %v6618_v25 = vld [vmem:[#allocation2 + $0x694] sm:$0xf]  ;;  %3689 = vmatpush.bf16.msra.mxu0 %v4479_v9  ;;  %v4959_v35 = vor.u32 %v6554_v22, %v4956_v23 }
 0x210   :  { %v5212_v26 = vld [vmem:[#allocation2 + $0x6b0] sm:$0xf0] }
 0x211   :  { %3727 = vmatpush.bf16.msra.mxu3 %v5279_v62  ;;  %v6418_v32 = vld [vmem:[#allocation2 + $0x54] sm:$0xf]  ;;  %3702 = vmatpush.bf16.msra.mxu1 %v4735_v10  ;;  %v5215_v51 = vor.u32 %v6618_v25, %v5212_v26  ;;  %v4220_v62 = vsub.f32 %v3999_v52, %v7281_v30 }
 0x212   :  { %v4412_v37 = vld [vmem:[#allocation2 + $0x70] sm:$0xf0] }
 0x213   :  { %3715 = vmatpush.bf16.msra.mxu2 %v4991_v60  ;;  %v6482_v43 = vld [vmem:[#allocation2 + $0x254] sm:$0xf]  ;;  %3690 = vmatpush.bf16.msra.mxu0 %v4447_v31  ;;  %v4415_v63 = vor.u32 %v6418_v32, %v4412_v37  ;;  %v4228_v15 = vand.u32 2147483647, %v4220_v62  ;;  %v4212_v32 = vsel %vm4196_vm2, %v6938_v48, %v4204_v3 }
 0x214   :  { %v4668_v45 = vld [vmem:[#allocation2 + $0x270] sm:$0xf0] }
 0x215   :  { %3728 = vmatpush.bf16.msra.mxu3 %v5247_v17  ;;  %v6546_v55 = vld [vmem:[#allocation2 + $0x454] sm:$0xf]  ;;  %3703 = vmatpush.bf16.msra.mxu1 %v4703_v34  ;;  %v4671_v7 = vor.u32 %v6482_v43, %v4668_v45  ;;  %v4236_v25 = vmul.f32 5.0, %v4228_v15 }
 0x216   :  { %v4924_v56 = vld [vmem:[#allocation2 + $0x470] sm:$0xf0] }
 0x217   :  { %v6610_v59 = vld [vmem:[#allocation2 + $0x654] sm:$0xf]  ;;  %3716 = vmatpush.bf16.msra.mxu2 %v4959_v35  ;;  %v4927_v9 = vor.u32 %v6546_v55, %v4924_v56  ;;  %3691 = vmatpush.bf16.msra.mxu0 %v4415_v63  ;;  %v4244_v43 = vadd.f32 1.0, %v4236_v25 }
 0x218   :  { %v5180_v47 = vld [vmem:[#allocation2 + $0x670] sm:$0xf0] }
 0x219   :  { %v6410_v61 = vld [vmem:[#allocation2 + $0x14] sm:$0xf]  ;;  %3729 = vmatpush.bf16.msra.mxu3 %v5215_v51  ;;  %v5183_v16 = vor.u32 %v6610_v59, %v5180_v47  ;;  %3704 = vmatpush.bf16.msra.mxu1 %v4671_v7  ;;  %v4252_v47 = vmul.f32 %v4244_v43, %v4212_v32 }
 0x21a   :  { %v4380_v0 = vld [vmem:[#allocation2 + $0x30] sm:$0xf0] }
 0x21b   :  { %v6474_v1 = vld [vmem:[#allocation2 + $0x214] sm:$0xf]  ;;  %v4383_v26 = vor.u32 %v6410_v61, %v4380_v0  ;;  %3717 = vmatpush.bf16.msra.mxu2 %v4927_v9  ;;  %v4260_v61 = vmul.f32 %v4244_v43, %v7281_v30  ;;  %v4268_v3 = vmul.f32 %v4252_v47, %v7281_v30 }
 0x21c   :  { %v4636_v2 = vld [vmem:[#allocation2 + $0x230] sm:$0xf0] }
 0x21d   :  { %v6538_v10 = vld [vmem:[#allocation2 + $0x414] sm:$0xf]  ;;  %v4639_v33 = vor.u32 %v6474_v1, %v4636_v2  ;;  %3730 = vmatpush.bf16.msra.mxu3 %v5183_v16  ;;  %3692 = vmatpush.bf16.msra.mxu0 %v4383_v26  ;;  %v4285_v7 = vadd.f32 %v4260_v61, %v4252_v47  ;;  %v3499_v61 = vpop.f32.mrf.mxu1 }
 0x21e   :  { %v4892_v60 = vld [vmem:[#allocation2 + $0x430] sm:$0xf0] }
 0x21f   :  { %v6602_v13 = vld [vmem:[#allocation2 + $0x614] sm:$0xf]  ;;  %v4895_v34 = vor.u32 %v6538_v10, %v4892_v60  ;;  %3705 = vmatpush.bf16.msra.mxu1 %v4639_v33  ;;  %v7291_v16 = vadd.f32 %v7253_v50, %v4285_v7 }
 0x220   :  { %v5148_v17 = vld [vmem:[#allocation2 + $0x630] sm:$0xf0]  ;;  %3693 = vmatmul.bf16.vlgmr.msra.gmra.mxu0 %v7155_v20 }
 0x221   :  { %v6722_v18 = vld [vmem:[#allocation2 + $0x9d4] sm:$0xf]  ;;  %v5151_v45 = vor.u32 %v6602_v13, %v5148_v17  ;;  %3718 = vmatpush.bf16.msra.mxu2 %v4895_v34 }
 0x222   :  { %v5628_v19 = vld [vmem:[#allocation2 + $0x9f0] sm:$0xf0]  ;;  %3706 = vmatmul.bf16.vlgmr.msra.gmra.mxu1 %v7158_v21 }
 0x223   :  { %v6786_v22 = vld [vmem:[#allocation2 + $0xbd4] sm:$0xf]  ;;  %v5631_v46 = vor.u32 %v6722_v18, %v5628_v19  ;;  %3731 = vmatpush.bf16.msra.mxu3 %v5151_v45 }
 0x224   :  { %v5884_v23 = vld [vmem:[#allocation2 + $0xbf0] sm:$0xf0]  ;;  %3719 = vmatmul.bf16.vlgmr.msra.gmra.mxu2 %v7150_v4 }
 0x225   :  { %v6850_v40 = vld [vmem:[#allocation2 + $0xdd4] sm:$0xf]  ;;  %v5887_v52 = vor.u32 %v6786_v22, %v5884_v23  ;;  %3737 = vmatpush.bf16.msrb.mxu0 %v5631_v46  ;;  %v7295_v22 = vadd.f32 %v7251_v49, %v4268_v3 }
 0x226   :  { %v6140_v31 = vld [vmem:[#allocation2 + $0xdf0] sm:$0xf0]  ;;  %3732 = vmatmul.bf16.vlgmr.msra.gmra.mxu3 %v7152_v6 }
 0x227   :  { %v6914_v35 = vld [vmem:[#allocation2 + $0xfd4] sm:$0xf]  ;;  %v6143_v51 = vor.u32 %v6850_v40, %v6140_v31  ;;  %3750 = vmatpush.bf16.msrb.mxu1 %v5887_v52  ;;  %v3486_v52 = vpop.f32.mrf.mxu0 }
 0x228   :  { %v6396_v37 = vld [vmem:[#allocation2 + $0xff0] sm:$0xf0] }
 0x229   :  { %v6714_v55 = vld [vmem:[#allocation2 + $0x994] sm:$0xf]  ;;  %v6399_v48 = vor.u32 %v6914_v35, %v6396_v37  ;;  %3763 = vmatpush.bf16.msrb.mxu2 %v6143_v51 }
 0x22a   :  { %v5596_v56 = vld [vmem:[#allocation2 + $0x9b0] sm:$0xf0] }
 0x22b   :  { %v6778_v59 = vld [vmem:[#allocation2 + $0xb94] sm:$0xf]  ;;  %v5599_v9 = vor.u32 %v6714_v55, %v5596_v56  ;;  %3776 = vmatpush.bf16.msrb.mxu3 %v6399_v48 }
 0x22c   :  { %v5852_v62 = vld [vmem:[#allocation2 + $0xbb0] sm:$0xf0] }
 0x22d   :  { %v6842_v63 = vld [vmem:[#allocation2 + $0xd94] sm:$0xf]  ;;  %v5855_v10 = vor.u32 %v6778_v59, %v5852_v62  ;;  %3738 = vmatpush.bf16.msrb.mxu0 %v5599_v9 }
 0x22e   :  { %v6108_v0 = vld [vmem:[#allocation2 + $0xdb0] sm:$0xf0] }
 0x22f   :  { %v6906_v1 = vld [vmem:[#allocation2 + $0xf94] sm:$0xf]  ;;  %v6111_v60 = vor.u32 %v6842_v63, %v6108_v0  ;;  %3751 = vmatpush.bf16.msrb.mxu1 %v5855_v10 }
 0x230   :  { %v6364_v2 = vld [vmem:[#allocation2 + $0xfb0] sm:$0xf0] }
 0x231   :  { %v6706_v13 = vld [vmem:[#allocation2 + $0x954] sm:$0xf]  ;;  %v6367_v17 = vor.u32 %v6906_v1, %v6364_v2  ;;  %3764 = vmatpush.bf16.msrb.mxu2 %v6111_v60  ;;  %v3500_v1 = vadd.f32 %v3499_v61, %v3486_v52 }
 0x232   :  { %v5564_v14 = vld [vmem:[#allocation2 + $0x970] sm:$0xf0] }
 0x233   :  { %v6770_v15 = vld [vmem:[#allocation2 + $0xb54] sm:$0xf]  ;;  %v5567_v26 = vor.u32 %v6706_v13, %v5564_v14  ;;  %3777 = vmatpush.bf16.msrb.mxu3 %v6367_v17  ;;  %v7301_v17 = vunpack.c.h.bf16 %v7259_v27 }
 0x234   :  { %v5820_v18 = vld [vmem:[#allocation2 + $0xb70] sm:$0xf0] }
 0x235   :  { %v6834_v5 = vld [vmem:[#allocation2 + $0xd54] sm:$0xf]  ;;  %v5823_v50 = vor.u32 %v6770_v15, %v5820_v18  ;;  %3739 = vmatpush.bf16.msrb.mxu0 %v5567_v26  ;;  %v3512_v15 = vpop.f32.mrf.mxu2  ;;  %v3525_v26 = vpop.f32.mrf.mxu3  ;;  %vm4197_vm3 = vcmp.ge.f32.partialorder %v7301_v17, 0.0 }
 0x236   :  { %v6076_v19 = vld [vmem:[#allocation2 + $0xd70] sm:$0xf0] }
 0x237   :  { %v6898_v23 = vld [vmem:[#allocation2 + $0xf54] sm:$0xf]  ;;  %v6079_v40 = vor.u32 %v6834_v5, %v6076_v19  ;;  %3752 = vmatpush.bf16.msrb.mxu1 %v5823_v50 }
 0x238   :  { %v6332_v25 = vld [vmem:[#allocation2 + $0xf70] sm:$0xf0] }
 0x239   :  { %v6698_v31 = vld [vmem:[#allocation2 + $0x914] sm:$0xf]  ;;  %v6335_v49 = vor.u32 %v6898_v23, %v6332_v25  ;;  %3765 = vmatpush.bf16.msrb.mxu2 %v6079_v40  ;;  %v3513_v25 = vadd.f32 %v3512_v15, %v3500_v1  ;;  %v4610_v15 = vld [vmem:[#allocation2 + $0x1d8] sm:$0xf] }
 0x23a   :  { %v5532_v32 = vld [vmem:[#allocation2 + $0x930] sm:$0xf0] }
 0x23b   :  { %v6762_v33 = vld [vmem:[#allocation2 + $0xb14] sm:$0xf]  ;;  %v5535_v46 = vor.u32 %v6698_v31, %v5532_v32  ;;  %3778 = vmatpush.bf16.msrb.mxu3 %v6335_v49  ;;  %v3488_v49 = vpop.f32.mrf.mxu0 }
 0x23c   :  { %v5788_v34 = vld [vmem:[#allocation2 + $0xb30] sm:$0xf0] }
 0x23d   :  { %v6826_v35 = vld [vmem:[#allocation2 + $0xd14] sm:$0xf]  ;;  %v5791_v51 = vor.u32 %v6762_v33, %v5788_v34  ;;  %3740 = vmatpush.bf16.msrb.mxu0 %v5535_v46  ;;  %v7303_v33 = vadd.f32 %v3525_v26, %v3513_v25  ;;  %v5122_v25 = vld [vmem:[#allocation2 + $0x5d8] sm:$0xf] }
 0x23e   :  { %v6044_v37 = vld [vmem:[#allocation2 + $0xd30] sm:$0xf0]  ;;  %v6599_v26 = vld [vmem:[#allocation2 + $0x5f4] sm:$0xf0] }
 0x23f   :  { %v6890_v43 = vld [vmem:[#allocation2 + $0xf14] sm:$0xf]  ;;  %v6047_v55 = vor.u32 %v6826_v35, %v6044_v37  ;;  %3753 = vmatpush.bf16.msrb.mxu1 %v5791_v51 }
 0x240   :  { %v6300_v45 = vld [vmem:[#allocation2 + $0xf30] sm:$0xf0] }
 0x241   :  { %v6690_v56 = vld [vmem:[#allocation2 + $0x8d4] sm:$0xf]  ;;  %v6303_v48 = vor.u32 %v6890_v43, %v6300_v45  ;;  %3766 = vmatpush.bf16.msrb.mxu2 %v6047_v55  ;;  %v3501_v43 = vpop.f32.mrf.mxu1  ;;  %v4028_v45 = vand.u32 2147483647, %v7301_v17 }
 0x242   :  { %v5500_v59 = vld [vmem:[#allocation2 + $0x8f0] sm:$0xf0]  ;;  %v4578_v43 = vld [vmem:[#allocation2 + $0x198] sm:$0xf] }
 0x243   :  { %v6754_v47 = vld [vmem:[#allocation2 + $0xad4] sm:$0xf]  ;;  %v5503_v7 = vor.u32 %v6690_v56, %v5500_v59  ;;  %3779 = vmatpush.bf16.msrb.mxu3 %v6303_v48 }
 0x244   :  { %v5756_v62 = vld [vmem:[#allocation2 + $0xaf0] sm:$0xf0] }
 0x245   :  { %v6818_v63 = vld [vmem:[#allocation2 + $0xcd4] sm:$0xf]  ;;  %v5759_v9 = vor.u32 %v6754_v47, %v5756_v62  ;;  %3741 = vmatpush.bf16.msrb.mxu0 %v5503_v7  ;;  %v4036_v7 = vsub.f32 0.0, %v4028_v45  ;;  %v6463_v45 = vld [vmem:[#allocation2 + $0x1b4] sm:$0xf0] }
 0x246   :  { %v6012_v0 = vld [vmem:[#allocation2 + $0xcf0] sm:$0xf0] }
 0x247   :  { %v6882_v2 = vld [vmem:[#allocation2 + $0xed4] sm:$0xf]  ;;  %v6015_v10 = vor.u32 %v6818_v63, %v6012_v0  ;;  %3754 = vmatpush.bf16.msrb.mxu1 %v5759_v9  ;;  %v4047_v49 = vmul.f32 1.442695, %v4036_v7  ;;  %v5058_v7 = vld [vmem:[#allocation2 + $0x558] sm:$0xf] }
 0x248   :  { %v6268_v3 = vld [vmem:[#allocation2 + $0xef0] sm:$0xf0] }
 0x249   :  { %v6682_v60 = vld [vmem:[#allocation2 + $0x894] sm:$0xf]  ;;  %v6271_v18 = vor.u32 %v6882_v2, %v6268_v3  ;;  %3767 = vmatpush.bf16.msrb.mxu2 %v6015_v10  ;;  %v3514_v3 = vpop.f32.mrf.mxu2  ;;  %6939 = vpow2.f32 %v4047_v49 }
 0x24a   :  { %v5468_v13 = vld [vmem:[#allocation2 + $0x8b0] sm:$0xf0]  ;;  %v6519_v3 = vld [vmem:[#allocation2 + $0x374] sm:$0xf0] }
 0x24b   :  { %v6746_v14 = vld [vmem:[#allocation2 + $0xa94] sm:$0xf]  ;;  %v5471_v31 = vor.u32 %v6682_v60, %v5468_v13  ;;  %3780 = vmatpush.bf16.msrb.mxu3 %v6271_v18  ;;  %v6471_v18 = vld [vmem:[#allocation2 + $0x1f4] sm:$0xf0] }
 0x24c   :  { %v5724_v5 = vld [vmem:[#allocation2 + $0xab0] sm:$0xf0] }
 0x24d   :  { %v6810_v19 = vld [vmem:[#allocation2 + $0xc94] sm:$0xf]  ;;  %v5727_v34 = vor.u32 %v6746_v14, %v5724_v5  ;;  %3742 = vmatpush.bf16.msrb.mxu0 %v5471_v31  ;;  %v3527_v14 = vpop.f32.mrf.mxu3  ;;  %v4866_v5 = vld [vmem:[#allocation2 + $0x3d8] sm:$0xf] }
 0x24e   :  { %v5980_v23 = vld [vmem:[#allocation2 + $0xcb0] sm:$0xf0]  ;;  %v5378_v31 = vld [vmem:[#allocation2 + $0x7d8] sm:$0xf] }
 0x24f   :  { %v6874_v50 = vld [vmem:[#allocation2 + $0xe94] sm:$0xf]  ;;  %v5983_v27 = vor.u32 %v6810_v19, %v5980_v23  ;;  %3755 = vmatpush.bf16.msrb.mxu1 %v5727_v34  ;;  %v6535_v23 = vld [vmem:[#allocation2 + $0x3f4] sm:$0xf0]  ;;  %v7310_v14 = vpop.eup %6939 }
 0x250   :  { %v6236_v40 = vld [vmem:[#allocation2 + $0xeb0] sm:$0xf0] }
 0x251   :  { %v6674_v32 = vld [vmem:[#allocation2 + $0x854] sm:$0xf]  ;;  %v6239_v46 = vor.u32 %v6874_v50, %v6236_v40  ;;  %3768 = vmatpush.bf16.msrb.mxu2 %v5983_v27  ;;  %v4611_v27 = vor.u32 %v6471_v18, %v4610_v15 }
 0x252   :  { %v5436_v35 = vld [vmem:[#allocation2 + $0x870] sm:$0xf0] }
 0x253   :  { %v6738_v37 = vld [vmem:[#allocation2 + $0xa54] sm:$0xf]  ;;  %v5439_v47 = vor.u32 %v6674_v32, %v5436_v35  ;;  %3781 = vmatpush.bf16.msrb.mxu3 %v6239_v46  ;;  %v6663_v32 = vld [vmem:[#allocation2 + $0x7f4] sm:$0xf0]  ;;  %v4867_v35 = vor.u32 %v6535_v23, %v4866_v5 }
 0x254   :  { %v5692_v52 = vld [vmem:[#allocation2 + $0xa70] sm:$0xf0]  ;;  %v4834_v46 = vld [vmem:[#allocation2 + $0x398] sm:$0xf] }
 0x255   :  { %v6802_v51 = vld [vmem:[#allocation2 + $0xc54] sm:$0xf]  ;;  %v5695_v63 = vor.u32 %v6738_v37, %v5692_v52  ;;  %3743 = vmatpush.bf16.msrb.mxu0 %v5439_v47  ;;  %v5123_v37 = vor.u32 %v6599_v26, %v5122_v25  ;;  %v5379_v52 = vor.u32 %v6663_v32, %v5378_v31  ;;  %v6655_v47 = vld [vmem:[#allocation2 + $0x7b4] sm:$0xf0] }
 0x256   :  { %v5948_v55 = vld [vmem:[#allocation2 + $0xc70] sm:$0xf0]  ;;  %v4514_v5 = vld [vmem:[#allocation2 + $0x118] sm:$0xf] }
 0x257   :  { %v6866_v56 = vld [vmem:[#allocation2 + $0xe54] sm:$0xf]  ;;  %v5951_v0 = vor.u32 %v6802_v51, %v5948_v55  ;;  %3756 = vmatpush.bf16.msrb.mxu1 %v5695_v63  ;;  %v6527_v51 = vld [vmem:[#allocation2 + $0x3b4] sm:$0xf0] }
 0x258   :  { %v6204_v59 = vld [vmem:[#allocation2 + $0xe70] sm:$0xf0]  ;;  %v5090_v55 = vld [vmem:[#allocation2 + $0x598] sm:$0xf] }
 0x259   :  { %v6666_v61 = vld [vmem:[#allocation2 + $0x814] sm:$0xf]  ;;  %v6207_v9 = vor.u32 %v6866_v56, %v6204_v59  ;;  %3769 = vmatpush.bf16.msrb.mxu2 %v5951_v0  ;;  %v6591_v56 = vld [vmem:[#allocation2 + $0x5b4] sm:$0xf0] }
 0x25a   :  { %v5404_v48 = vld [vmem:[#allocation2 + $0x830] sm:$0xf0]  ;;  %v5346_v59 = vld [vmem:[#allocation2 + $0x798] sm:$0xf] }
 0x25b   :  { %v6730_v62 = vld [vmem:[#allocation2 + $0xa14] sm:$0xf]  ;;  %v5407_v19 = vor.u32 %v6666_v61, %v5404_v48  ;;  %3782 = vmatpush.bf16.msrb.mxu3 %v6207_v9  ;;  %v4579_v61 = vor.u32 %v6463_v45, %v4578_v43  ;;  %v4835_v48 = vor.u32 %v6527_v51, %v4834_v46  ;;  %v4546_v63 = vld [vmem:[#allocation2 + $0x158] sm:$0xf]  ;;  %v3551_v45 = vpop.f32.mrf.mxu1 }
 0x25c   :  { %v5660_v1 = vld [vmem:[#allocation2 + $0xa30] sm:$0xf0]  ;;  %v6455_v0 = vld [vmem:[#allocation2 + $0x174] sm:$0xf0] }
 0x25d   :  { %v6794_v2 = vld [vmem:[#allocation2 + $0xc14] sm:$0xf]  ;;  %v5663_v50 = vor.u32 %v6730_v62, %v5660_v1  ;;  %3744 = vmatpush.bf16.msrb.mxu0 %v5407_v19  ;;  %v5091_v62 = vor.u32 %v6591_v56, %v5090_v55  ;;  %v4802_v1 = vld [vmem:[#allocation2 + $0x358] sm:$0xf] }
 0x25e   :  { %v5916_v10 = vld [vmem:[#allocation2 + $0xc30] sm:$0xf0]  ;;  %v6583_v9 = vld [vmem:[#allocation2 + $0x574] sm:$0xf0]  ;;  %v4803_v15 = vor.u32 %v6519_v3, %v4802_v1  ;;  %v3564_v1 = vpop.f32.mrf.mxu2 }
 0x25f   :  { %v6858_v60 = vld [vmem:[#allocation2 + $0xe14] sm:$0xf]  ;;  %v5919_v40 = vor.u32 %v6794_v2, %v5916_v10  ;;  %3757 = vmatpush.bf16.msrb.mxu1 %v5663_v50  ;;  %v5347_v2 = vor.u32 %v6655_v47, %v5346_v59  ;;  %v5314_v10 = vld [vmem:[#allocation2 + $0x758] sm:$0xf]  ;;  %v5059_v18 = vor.u32 %v6583_v9, %v5058_v7 }
 0x260   :  { %v6172_v13 = vld [vmem:[#allocation2 + $0xe30] sm:$0xf0]  ;;  %3745 = vmatmul.bf16.vlgmr.msrb.gmra.mxu0 %v7164_v41  ;;  %v6447_v19 = vld [vmem:[#allocation2 + $0x134] sm:$0xf0] }
 0x261   :  { %v6175_v34 = vor.u32 %v6858_v60, %v6172_v13  ;;  %3770 = vmatpush.bf16.msrb.mxu2 %v5919_v40  ;;  %3789 = vmatpush.bf16.msra.mxu0 %v4611_v27  ;;  %v6647_v60 = vld [vmem:[#allocation2 + $0x774] sm:$0xf0]  ;;  %v4547_v13 = vor.u32 %v6455_v0, %v4546_v63  ;;  %v4515_v49 = vor.u32 %v6447_v19, %v4514_v5  ;;  %v7313_v27 = vadd.f32 1.0, %v7310_v14 }
 0x262   :  { %3758 = vmatmul.bf16.vlgmr.msrb.gmra.mxu1 %v7168_v44  ;;  %v4770_v23 = vld [vmem:[#allocation2 + $0x318] sm:$0xf]  ;;  %v5315_v25 = vor.u32 %v6647_v60, %v5314_v10  ;;  %v3577_v60 = vpop.f32.mrf.mxu3 }
 0x263   :  { %3783 = vmatpush.bf16.msrb.mxu3 %v6175_v34  ;;  %3802 = vmatpush.bf16.msra.mxu1 %v4867_v35  ;;  %v6511_v26 = vld [vmem:[#allocation2 + $0x334] sm:$0xf0]  ;;  %v3538_v34 = vpop.f32.mrf.mxu0  ;;  %6941 = vrcp.f32 %v7313_v27 }
 0x264   :  { %3771 = vmatmul.bf16.vlgmr.msrb.gmra.mxu2 %v7162_v38  ;;  %v5026_v50 = vld [vmem:[#allocation2 + $0x518] sm:$0xf]  ;;  %v4771_v35 = vor.u32 %v6511_v26, %v4770_v23  ;;  %v3539_v43 = vadd.f32 %v3538_v34, %v7303_v33 }
 0x265   :  { %3815 = vmatpush.bf16.msra.mxu2 %v5123_v37  ;;  %3790 = vmatpush.bf16.msra.mxu0 %v4579_v61  ;;  %v6575_v40 = vld [vmem:[#allocation2 + $0x534] sm:$0xf0] }
 0x266   :  { %3784 = vmatmul.bf16.vlgmr.msrb.gmra.mxu3 %v7166_v42  ;;  %v5282_v31 = vld [vmem:[#allocation2 + $0x718] sm:$0xf]  ;;  %v5027_v37 = vor.u32 %v6575_v40, %v5026_v50  ;;  %v3552_v61 = vadd.f32 %v3551_v45, %v3539_v43 }
 0x267   :  { %3828 = vmatpush.bf16.msra.mxu3 %v5379_v52  ;;  %3803 = vmatpush.bf16.msra.mxu1 %v4835_v48  ;;  %v6639_v32 = vld [vmem:[#allocation2 + $0x734] sm:$0xf0] }
 0x268   :  { %v4482_v46 = vld [vmem:[#allocation2 + $0xd8] sm:$0xf]  ;;  %v5283_v55 = vor.u32 %v6639_v32, %v5282_v31  ;;  %v3565_v10 = vadd.f32 %v3564_v1, %v3552_v61 }
 0x269   :  { %3816 = vmatpush.bf16.msra.mxu2 %v5091_v62  ;;  %3791 = vmatpush.bf16.msra.mxu0 %v4547_v13  ;;  %v6439_v52 = vld [vmem:[#allocation2 + $0xf4] sm:$0xf0]  ;;  %v6942_v43 = vpop.eup %6941 }
 0x26a   :  { %v4738_v51 = vld [vmem:[#allocation2 + $0x2d8] sm:$0xf]  ;;  %v4483_v63 = vor.u32 %v6439_v52, %v4482_v46  ;;  %v3578_v23 = vadd.f32 %v3577_v60, %v3565_v10 }
 0x26b   :  { %3829 = vmatpush.bf16.msra.mxu3 %v5347_v2  ;;  %3804 = vmatpush.bf16.msra.mxu1 %v4803_v15  ;;  %v6503_v56 = vld [vmem:[#allocation2 + $0x2f4] sm:$0xf0]  ;;  %v3540_v40 = vpop.f32.mrf.mxu0 }
 0x26c   :  { %v4994_v59 = vld [vmem:[#allocation2 + $0x4d8] sm:$0xf]  ;;  %v4739_v0 = vor.u32 %v6503_v56, %v4738_v51  ;;  %v4000_v45 = vmul.f32 0.0010405828, %v3578_v23 }
 0x26d   :  { %3817 = vmatpush.bf16.msra.mxu2 %v5059_v18  ;;  %v6567_v47 = vld [vmem:[#allocation2 + $0x4f4] sm:$0xf0]  ;;  %3792 = vmatpush.bf16.msra.mxu0 %v4515_v49 }
 0x26e   :  { %v5250_v48 = vld [vmem:[#allocation2 + $0x6d8] sm:$0xf]  ;;  %v4995_v33 = vor.u32 %v6567_v47, %v4994_v59 }
 0x26f   :  { %3830 = vmatpush.bf16.msra.mxu3 %v5315_v25  ;;  %v6631_v62 = vld [vmem:[#allocation2 + $0x6f4] sm:$0xf0]  ;;  %3805 = vmatpush.bf16.msra.mxu1 %v4771_v35  ;;  %v7318_v25 = vunpack.c.h.bf16 %v7278_v29 }
 0x270   :  { %v4450_v2 = vld [vmem:[#allocation2 + $0x98] sm:$0xf]  ;;  %v5251_v9 = vor.u32 %v6631_v62, %v5250_v48 }
 0x271   :  { %3818 = vmatpush.bf16.msra.mxu2 %v5027_v37  ;;  %v6431_v3 = vld [vmem:[#allocation2 + $0xb4] sm:$0xf0]  ;;  %3793 = vmatpush.bf16.msra.mxu0 %v4483_v63  ;;  %v3553_v37 = vpop.f32.mrf.mxu1  ;;  %v4221_v59 = vsub.f32 %v4000_v45, %v7318_v25  ;;  %v4205_v63 = vmul.f32 %v6942_v43, %v7310_v14 }
 0x272   :  { %v4706_v7 = vld [vmem:[#allocation2 + $0x298] sm:$0xf]  ;;  %v4451_v26 = vor.u32 %v6431_v3, %v4450_v2 }
 0x273   :  { %3831 = vmatpush.bf16.msra.mxu3 %v5283_v55  ;;  %v6495_v13 = vld [vmem:[#allocation2 + $0x2b4] sm:$0xf0]  ;;  %3806 = vmatpush.bf16.msra.mxu1 %v4739_v0 }
 0x274   :  { %v4962_v15 = vld [vmem:[#allocation2 + $0x498] sm:$0xf]  ;;  %v4707_v31 = vor.u32 %v6495_v13, %v4706_v7  ;;  %v3566_v7 = vpop.f32.mrf.mxu2 }
 0x275   :  { %v6559_v18 = vld [vmem:[#allocation2 + $0x4b4] sm:$0xf0]  ;;  %3819 = vmatpush.bf16.msra.mxu2 %v4995_v33  ;;  %3794 = vmatpush.bf16.msra.mxu0 %v4451_v26 }
 0x276   :  { %v5218_v5 = vld [vmem:[#allocation2 + $0x698] sm:$0xf]  ;;  %v4963_v32 = vor.u32 %v6559_v18, %v4962_v15  ;;  %v3579_v15 = vpop.f32.mrf.mxu3 }
 0x277   :  { %v6623_v19 = vld [vmem:[#allocation2 + $0x6b4] sm:$0xf0]  ;;  %3832 = vmatpush.bf16.msra.mxu3 %v5251_v9  ;;  %3807 = vmatpush.bf16.msra.mxu1 %v4707_v31  ;;  %v4229_v9 = vand.u32 2147483647, %v4221_v59  ;;  %v4213_v31 = vsel %vm4197_vm3, %v6942_v43, %v4205_v63 }
 0x278   :  { %v4418_v50 = vld [vmem:[#allocation2 + $0x58] sm:$0xf]  ;;  %v5219_v46 = vor.u32 %v6623_v19, %v5218_v5 }
 0x279   :  { %v6423_v49 = vld [vmem:[#allocation2 + $0x74] sm:$0xf0]  ;;  %3820 = vmatpush.bf16.msra.mxu2 %v4963_v32  ;;  %v4237_v23 = vmul.f32 5.0, %v4229_v9 }
 0x27a   :  { %v4674_v34 = vld [vmem:[#allocation2 + $0x258] sm:$0xf]  ;;  %v4419_v47 = vor.u32 %v6423_v49, %v4418_v50 }
 0x27b   :  { %v6487_v35 = vld [vmem:[#allocation2 + $0x274] sm:$0xf0]  ;;  %3833 = vmatpush.bf16.msra.mxu3 %v5219_v46  ;;  %v4245_v37 = vadd.f32 1.0, %v4237_v23 }
 0x27c   :  { %v4930_v52 = vld [vmem:[#allocation2 + $0x458] sm:$0xf]  ;;  %v4675_v0 = vor.u32 %v6487_v35, %v4674_v34  ;;  %3795 = vmatpush.bf16.msra.mxu0 %v4419_v47 }
 0x27d   :  { %v6551_v29 = vld [vmem:[#allocation2 + $0x474] sm:$0xf0]  ;;  %v4253_v59 = vmul.f32 %v4245_v37, %v4213_v31  ;;  %v4261_v47 = vmul.f32 %v4245_v37, %v7318_v25 }
 0x27e   :  { %v5186_v51 = vld [vmem:[#allocation2 + $0x658] sm:$0xf]  ;;  %v4931_v33 = vor.u32 %v6551_v29, %v4930_v52  ;;  %3808 = vmatpush.bf16.msra.mxu1 %v4675_v0 }
 0x27f   :  { %v6615_v55 = vld [vmem:[#allocation2 + $0x674] sm:$0xf0] }
 0x280   :  { %v4386_v56 = vld [vmem:[#allocation2 + $0x18] sm:$0xf]  ;;  %v5187_v10 = vor.u32 %v6615_v55, %v5186_v51  ;;  %3821 = vmatpush.bf16.msra.mxu2 %v4931_v33  ;;  %v4269_v33 = vmul.f32 %v4253_v59, %v7318_v25 }
 0x281   :  { %v6415_v61 = vld [vmem:[#allocation2 + $0x34] sm:$0xf0] }
 0x282   :  { %v4642_v48 = vld [vmem:[#allocation2 + $0x218] sm:$0xf]  ;;  %v4387_v26 = vor.u32 %v6415_v61, %v4386_v56  ;;  %3834 = vmatpush.bf16.msra.mxu3 %v5187_v10 }
 0x283   :  { %v6479_v62 = vld [vmem:[#allocation2 + $0x234] sm:$0xf0] }
 0x284   :  { %v4898_v1 = vld [vmem:[#allocation2 + $0x418] sm:$0xf]  ;;  %v4643_v32 = vor.u32 %v6479_v62, %v4642_v48  ;;  %3796 = vmatpush.bf16.msra.mxu0 %v4387_v26 }
 0x285   :  { %v6543_v2 = vld [vmem:[#allocation2 + $0x434] sm:$0xf0] }
 0x286   :  { %v5154_v3 = vld [vmem:[#allocation2 + $0x618] sm:$0xf]  ;;  %v4899_v49 = vor.u32 %v6543_v2, %v4898_v1  ;;  %3809 = vmatpush.bf16.msra.mxu1 %v4643_v32  ;;  %v4286_v1 = vadd.f32 %v4261_v47, %v4253_v59 }
 0x287   :  { %v6607_v60 = vld [vmem:[#allocation2 + $0x634] sm:$0xf0]  ;;  %3797 = vmatmul.bf16.vlgmr.msra.gmra.mxu0 %v7155_v20 }
 0x288   :  { %v5634_v13 = vld [vmem:[#allocation2 + $0x9d8] sm:$0xf]  ;;  %v5155_v45 = vor.u32 %v6607_v60, %v5154_v3  ;;  %3822 = vmatpush.bf16.msra.mxu2 %v4899_v49  ;;  %v7332_v23 = vadd.f32 %v7291_v16, %v4286_v1  ;;  %v7337_v1 = vld [vmem:[#allocation5 + $0x10] sm:$0xff] }
 0x289   :  { %v6727_v18 = vld [vmem:[#allocation2 + $0x9f4] sm:$0xf0]  ;;  %3810 = vmatmul.bf16.vlgmr.msra.gmra.mxu1 %v7158_v21 }
 0x28a   :  { %v5890_v5 = vld [vmem:[#allocation2 + $0xbd8] sm:$0xf]  ;;  %v5635_v46 = vor.u32 %v6727_v18, %v5634_v13  ;;  %3835 = vmatpush.bf16.msra.mxu3 %v5155_v45 }
 0x28b   :  { %v6791_v19 = vld [vmem:[#allocation2 + $0xbf4] sm:$0xf0]  ;;  %3823 = vmatmul.bf16.vlgmr.msra.gmra.mxu2 %v7150_v4 }
 0x28c   :  { %v6146_v50 = vld [vmem:[#allocation2 + $0xdd8] sm:$0xf]  ;;  %v5891_v52 = vor.u32 %v6791_v19, %v5890_v5  ;;  %3841 = vmatpush.bf16.msrb.mxu0 %v5635_v46  ;;  %v7329_v19 = vadd.f32 %v7295_v22, %v4269_v33 }
 0x28d   :  { %v6855_v40 = vld [vmem:[#allocation2 + $0xdf4] sm:$0xf0]  ;;  %3836 = vmatmul.bf16.vlgmr.msra.gmra.mxu3 %v7152_v6 }
 0x28e   :  { %v6402_v34 = vld [vmem:[#allocation2 + $0xfd8] sm:$0xf]  ;;  %v6147_v29 = vor.u32 %v6855_v40, %v6146_v50  ;;  %3854 = vmatpush.bf16.msrb.mxu1 %v5891_v52 }
 0x28f   :  { %v6919_v35 = vld [vmem:[#allocation2 + $0xff4] sm:$0xf0] }
 0x290   :  { %v5602_v51 = vld [vmem:[#allocation2 + $0x998] sm:$0xf]  ;;  %v6403_v43 = vor.u32 %v6919_v35, %v6402_v34  ;;  %3867 = vmatpush.bf16.msrb.mxu2 %v6147_v29 }
 0x291   :  { %v6719_v55 = vld [vmem:[#allocation2 + $0x9b4] sm:$0xf0] }
 0x292   :  { %v5858_v56 = vld [vmem:[#allocation2 + $0xb98] sm:$0xf]  ;;  %v5603_v2 = vor.u32 %v6719_v55, %v5602_v51  ;;  %3880 = vmatpush.bf16.msrb.mxu3 %v6403_v43  ;;  %v3590_v55 = vpop.f32.mrf.mxu0 }
 0x293   :  { %v6783_v61 = vld [vmem:[#allocation2 + $0xbb4] sm:$0xf0] }
 0x294   :  { %v6114_v63 = vld [vmem:[#allocation2 + $0xd98] sm:$0xf]  ;;  %v5859_v3 = vor.u32 %v6783_v61, %v5858_v56  ;;  %3842 = vmatpush.bf16.msrb.mxu0 %v5603_v2 }
 0x295   :  { %v6847_v48 = vld [vmem:[#allocation2 + $0xdb4] sm:$0xf0] }
 0x296   :  { %v6370_v62 = vld [vmem:[#allocation2 + $0xf98] sm:$0xf]  ;;  %v6115_v7 = vor.u32 %v6847_v48, %v6114_v63  ;;  %3855 = vmatpush.bf16.msrb.mxu1 %v5859_v3  ;;  %v3603_v63 = vpop.f32.mrf.mxu1 }
 0x297   :  { %v6911_v0 = vld [vmem:[#allocation2 + $0xfb4] sm:$0xf0]  ;;  %v3604_v33 = vadd.f32 %v3603_v63, %v3590_v55 }
 0x298   :  { %v5570_v9 = vld [vmem:[#allocation2 + $0x958] sm:$0xf]  ;;  %v6371_v13 = vor.u32 %v6911_v0, %v6370_v62  ;;  %3868 = vmatpush.bf16.msrb.mxu2 %v6115_v7 }
 0x299   :  { %v6711_v10 = vld [vmem:[#allocation2 + $0x974] sm:$0xf0] }
 0x29a   :  { %v5826_v60 = vld [vmem:[#allocation2 + $0xb58] sm:$0xf]  ;;  %v5571_v40 = vor.u32 %v6711_v10, %v5570_v9  ;;  %3881 = vmatpush.bf16.msrb.mxu3 %v6371_v13 }
 0x29b   :  { %v6775_v15 = vld [vmem:[#allocation2 + $0xb74] sm:$0xf0] }
 0x29c   :  { %v6082_v18 = vld [vmem:[#allocation2 + $0xd58] sm:$0xf]  ;;  %v5827_v31 = vor.u32 %v6775_v15, %v5826_v60  ;;  %3843 = vmatpush.bf16.msrb.mxu0 %v5571_v40 }
 0x29d   :  { %v6839_v5 = vld [vmem:[#allocation2 + $0xd74] sm:$0xf0] }
 0x29e   :  { %v6338_v26 = vld [vmem:[#allocation2 + $0xf58] sm:$0xf]  ;;  %v6083_v32 = vor.u32 %v6839_v5, %v6082_v18  ;;  %3856 = vmatpush.bf16.msrb.mxu1 %v5827_v31  ;;  %v3616_v18 = vpop.f32.mrf.mxu2  ;;  %v7340_v5 = vunpack.c.l.bf16 %v7337_v1  ;;  %v3605_v55 = vpop.f32.mrf.mxu1 }
 0x29f   :  { %v6903_v50 = vld [vmem:[#allocation2 + $0xf74] sm:$0xf0] }
 0x2a0   :  { %v5538_v49 = vld [vmem:[#allocation2 + $0x918] sm:$0xf]  ;;  %v6339_v16 = vor.u32 %v6903_v50, %v6338_v26  ;;  %3869 = vmatpush.bf16.msrb.mxu2 %v6083_v32  ;;  %v3617_v32 = vadd.f32 %v3616_v18, %v3604_v33  ;;  %vm4198_vm4 = vcmp.ge.f32.partialorder %v7340_v5, 0.0 }
 0x2a1   :  { %v6703_v22 = vld [vmem:[#allocation2 + $0x934] sm:$0xf0] }
 0x2a2   :  { %v5794_v34 = vld [vmem:[#allocation2 + $0xb18] sm:$0xf]  ;;  %v5539_v29 = vor.u32 %v6703_v22, %v5538_v49  ;;  %3882 = vmatpush.bf16.msrb.mxu3 %v6339_v16  ;;  %v3629_v49 = vpop.f32.mrf.mxu3 }
 0x2a3   :  { %v6767_v35 = vld [vmem:[#allocation2 + $0xb34] sm:$0xf0] }
 0x2a4   :  { %v6050_v37 = vld [vmem:[#allocation2 + $0xd18] sm:$0xf]  ;;  %v5795_v56 = vor.u32 %v6767_v35, %v5794_v34  ;;  %3844 = vmatpush.bf16.msrb.mxu0 %v5539_v29 }
 0x2a5   :  { %v6831_v45 = vld [vmem:[#allocation2 + $0xd34] sm:$0xf0] }
 0x2a6   :  { %v6306_v46 = vld [vmem:[#allocation2 + $0xf18] sm:$0xf]  ;;  %v6051_v59 = vor.u32 %v6831_v45, %v6050_v37  ;;  %3857 = vmatpush.bf16.msrb.mxu1 %v5795_v56  ;;  %v7342_v37 = vadd.f32 %v3629_v49, %v3617_v32  ;;  %v3592_v45 = vpop.f32.mrf.mxu0  ;;  %v4029_v56 = vand.u32 2147483647, %v7340_v5  ;;  %v4612_v32 = vld [vmem:[#allocation2 + $0x1f8] sm:$0xf0] }
 0x2a7   :  { %v6895_v52 = vld [vmem:[#allocation2 + $0xf34] sm:$0xf0]  ;;  %v6531_v49 = vld [vmem:[#allocation2 + $0x3dc] sm:$0xf] }
 0x2a8   :  { %v5506_v51 = vld [vmem:[#allocation2 + $0x8d8] sm:$0xf]  ;;  %v6307_v48 = vor.u32 %v6895_v52, %v6306_v46  ;;  %3870 = vmatpush.bf16.msrb.mxu2 %v6051_v59 }
 0x2a9   :  { %v6695_v47 = vld [vmem:[#allocation2 + $0x8f4] sm:$0xf0] }
 0x2aa   :  { %v5762_v43 = vld [vmem:[#allocation2 + $0xad8] sm:$0xf]  ;;  %v5507_v7 = vor.u32 %v6695_v47, %v5506_v51  ;;  %3883 = vmatpush.bf16.msrb.mxu3 %v6307_v48 }
 0x2ab   :  { %v6759_v61 = vld [vmem:[#allocation2 + $0xaf4] sm:$0xf0] }
 0x2ac   :  { %v6018_v62 = vld [vmem:[#allocation2 + $0xcd8] sm:$0xf]  ;;  %v5763_v9 = vor.u32 %v6759_v61, %v5762_v43  ;;  %3845 = vmatpush.bf16.msrb.mxu0 %v5507_v7 }
 0x2ad   :  { %v6823_v0 = vld [vmem:[#allocation2 + $0xcf4] sm:$0xf0] }
 0x2ae   :  { %v6274_v2 = vld [vmem:[#allocation2 + $0xed8] sm:$0xf]  ;;  %v6019_v10 = vor.u32 %v6823_v0, %v6018_v62  ;;  %3858 = vmatpush.bf16.msrb.mxu1 %v5763_v9 }
 0x2af   :  { %v6887_v3 = vld [vmem:[#allocation2 + $0xef4] sm:$0xf0] }
 0x2b0   :  { %v5474_v60 = vld [vmem:[#allocation2 + $0x898] sm:$0xf]  ;;  %v6275_v26 = vor.u32 %v6887_v3, %v6274_v2  ;;  %3871 = vmatpush.bf16.msrb.mxu2 %v6019_v10 }
 0x2b1   :  { %v6687_v13 = vld [vmem:[#allocation2 + $0x8b4] sm:$0xf0] }
 0x2b2   :  { %v5730_v15 = vld [vmem:[#allocation2 + $0xa98] sm:$0xf]  ;;  %v5475_v16 = vor.u32 %v6687_v13, %v5474_v60  ;;  %3884 = vmatpush.bf16.msrb.mxu3 %v6275_v26  ;;  %v3618_v60 = vpop.f32.mrf.mxu2  ;;  %v4037_v13 = vsub.f32 0.0, %v4029_v56 }
 0x2b3   :  { %v6751_v50 = vld [vmem:[#allocation2 + $0xab4] sm:$0xf0]  ;;  %v6451_v60 = vld [vmem:[#allocation2 + $0x15c] sm:$0xf] }
 0x2b4   :  { %v5986_v40 = vld [vmem:[#allocation2 + $0xc98] sm:$0xf]  ;;  %v5731_v46 = vor.u32 %v6751_v50, %v5730_v15  ;;  %3846 = vmatpush.bf16.msrb.mxu0 %v5475_v16  ;;  %v6595_v16 = vld [vmem:[#allocation2 + $0x5dc] sm:$0xf] }
 0x2b5   :  { %v6815_v31 = vld [vmem:[#allocation2 + $0xcb4] sm:$0xf0] }
 0x2b6   :  { %v6242_v22 = vld [vmem:[#allocation2 + $0xe98] sm:$0xf]  ;;  %v5987_v52 = vor.u32 %v6815_v31, %v5986_v40  ;;  %3859 = vmatpush.bf16.msrb.mxu1 %v5731_v46  ;;  %v3631_v40 = vpop.f32.mrf.mxu3  ;;  %v6467_v31 = vld [vmem:[#allocation2 + $0x1dc] sm:$0xf] }
 0x2b7   :  { %v6879_v34 = vld [vmem:[#allocation2 + $0xeb4] sm:$0xf0]  ;;  %v4615_v56 = vor.u32 %v6467_v31, %v4612_v32  ;;  %v5060_v40 = vld [vmem:[#allocation2 + $0x578] sm:$0xf0] }
 0x2b8   :  { %v5442_v35 = vld [vmem:[#allocation2 + $0x858] sm:$0xf]  ;;  %v6243_v59 = vor.u32 %v6879_v34, %v6242_v22  ;;  %3872 = vmatpush.bf16.msrb.mxu2 %v5987_v52  ;;  %v4868_v34 = vld [vmem:[#allocation2 + $0x3f8] sm:$0xf0] }
 0x2b9   :  { %v6679_v29 = vld [vmem:[#allocation2 + $0x874] sm:$0xf0]  ;;  %v6659_v52 = vld [vmem:[#allocation2 + $0x7dc] sm:$0xf] }
 0x2ba   :  { %v5698_v51 = vld [vmem:[#allocation2 + $0xa58] sm:$0xf]  ;;  %v5443_v62 = vor.u32 %v6679_v29, %v5442_v35  ;;  %3885 = vmatpush.bf16.msrb.mxu3 %v6243_v59  ;;  %v5124_v35 = vld [vmem:[#allocation2 + $0x5f8] sm:$0xf0]  ;;  %v4871_v59 = vor.u32 %v6531_v49, %v4868_v34 }
 0x2bb   :  { %v6743_v47 = vld [vmem:[#allocation2 + $0xa74] sm:$0xf0]  ;;  %v5380_v29 = vld [vmem:[#allocation2 + $0x7f8] sm:$0xf0] }
 0x2bc   :  { %v5954_v43 = vld [vmem:[#allocation2 + $0xc58] sm:$0xf]  ;;  %v5699_v3 = vor.u32 %v6743_v47, %v5698_v51  ;;  %3847 = vmatpush.bf16.msrb.mxu0 %v5443_v62  ;;  %v4049_v51 = vmul.f32 1.442695, %v4037_v13  ;;  %v5127_v47 = vor.u32 %v6595_v16, %v5124_v35  ;;  %v4836_v62 = vld [vmem:[#allocation2 + $0x3b8] sm:$0xf0] }
 0x2bd   :  { %v6807_v61 = vld [vmem:[#allocation2 + $0xc74] sm:$0xf0]  ;;  %v4548_v13 = vld [vmem:[#allocation2 + $0x178] sm:$0xf0] }
 0x2be   :  { %v6210_v63 = vld [vmem:[#allocation2 + $0xe58] sm:$0xf]  ;;  %v5955_v7 = vor.u32 %v6807_v61, %v5954_v43  ;;  %3860 = vmatpush.bf16.msrb.mxu1 %v5699_v3  ;;  %v6459_v43 = vld [vmem:[#allocation2 + $0x19c] sm:$0xf]  ;;  %6943 = vpow2.f32 %v4049_v51  ;;  %v4551_v49 = vor.u32 %v6451_v60, %v4548_v13 }
 0x2bf   :  { %v6871_v48 = vld [vmem:[#allocation2 + $0xe74] sm:$0xf0]  ;;  %v4580_v61 = vld [vmem:[#allocation2 + $0x1b8] sm:$0xf0] }
 0x2c0   :  { %v5410_v0 = vld [vmem:[#allocation2 + $0x818] sm:$0xf]  ;;  %v6211_v15 = vor.u32 %v6871_v48, %v6210_v63  ;;  %3873 = vmatpush.bf16.msrb.mxu2 %v5955_v7  ;;  %v6523_v63 = vld [vmem:[#allocation2 + $0x39c] sm:$0xf]  ;;  %v5383_v48 = vor.u32 %v6659_v52, %v5380_v29  ;;  %v4583_v7 = vor.u32 %v6459_v43, %v4580_v61  ;;  %v3642_v43 = vpop.f32.mrf.mxu0 }
 0x2c1   :  { %v6671_v33 = vld [vmem:[#allocation2 + $0x834] sm:$0xf0]  ;;  %v5348_v3 = vld [vmem:[#allocation2 + $0x7b8] sm:$0xf0] }
 0x2c2   :  { %v5666_v2 = vld [vmem:[#allocation2 + $0xa18] sm:$0xf]  ;;  %v5411_v22 = vor.u32 %v6671_v33, %v5410_v0  ;;  %3886 = vmatpush.bf16.msrb.mxu3 %v6211_v15  ;;  %v6587_v0 = vld [vmem:[#allocation2 + $0x59c] sm:$0xf] }
 0x2c3   :  { %v6735_v9 = vld [vmem:[#allocation2 + $0xa34] sm:$0xf0]  ;;  %v5092_v33 = vld [vmem:[#allocation2 + $0x5b8] sm:$0xf0] }
 0x2c4   :  { %v5922_v10 = vld [vmem:[#allocation2 + $0xc18] sm:$0xf]  ;;  %v5667_v45 = vor.u32 %v6735_v9, %v5666_v2  ;;  %3848 = vmatpush.bf16.msrb.mxu0 %v5411_v22  ;;  %v6651_v2 = vld [vmem:[#allocation2 + $0x79c] sm:$0xf]  ;;  %v4839_v9 = vor.u32 %v6523_v63, %v4836_v62  ;;  %v7349_v22 = vpop.eup %6943  ;;  %v3643_v62 = vadd.f32 %v3642_v43, %v7342_v37 }
 0x2c5   :  { %v6799_v18 = vld [vmem:[#allocation2 + $0xc34] sm:$0xf0]  ;;  %v6515_v15 = vld [vmem:[#allocation2 + $0x35c] sm:$0xf]  ;;  %7578 = vst [vmem:[#allocation15_spill] sm:$0xff] %v7349_v22  ;;  %v7352_v61 = vadd.f32 1.0, %v7349_v22 }
 0x2c6   :  { %v6178_v26 = vld [vmem:[#allocation2 + $0xe18] sm:$0xf]  ;;  %v5923_v46 = vor.u32 %v6799_v18, %v5922_v10  ;;  %3861 = vmatpush.bf16.msrb.mxu1 %v5667_v45  ;;  %v5095_v10 = vor.u32 %v6587_v0, %v5092_v33  ;;  %v5351_v18 = vor.u32 %v6651_v2, %v5348_v3  ;;  %v6643_v31 = vld [vmem:[#allocation2 + $0x75c] sm:$0xf]  ;;  %v3655_v0 = vpop.f32.mrf.mxu1 }
 0x2c7   :  { %v6863_v50 = vld [vmem:[#allocation2 + $0xe34] sm:$0xf0]  ;;  %3849 = vmatmul.bf16.vlgmr.msrb.gmra.mxu0 %v7164_v41  ;;  %v5316_v32 = vld [vmem:[#allocation2 + $0x778] sm:$0xf0]  ;;  %7579 = vst [vmem:[#allocation16_spill] sm:$0xff] %v7352_v61  ;;  %v3656_v13 = vadd.f32 %v3655_v0, %v3643_v62  ;;  %6945 = vrcp.f32 %v7352_v61 }
 0x2c8   :  { %v6179_v55 = vor.u32 %v6863_v50, %v6178_v26  ;;  %3874 = vmatpush.bf16.msrb.mxu2 %v5923_v46  ;;  %3893 = vmatpush.bf16.msra.mxu0 %v4615_v56  ;;  %v4804_v26 = vld [vmem:[#allocation2 + $0x378] sm:$0xf0]  ;;  %v5319_v52 = vor.u32 %v6643_v31, %v5316_v32 }
 0x2c9   :  { %v6579_v50 = vld [vmem:[#allocation2 + $0x55c] sm:$0xf]  ;;  %3862 = vmatmul.bf16.vlgmr.msrb.gmra.mxu1 %v7168_v44  ;;  %v4807_v34 = vor.u32 %v6515_v15, %v4804_v26 }
 0x2ca   :  { %3887 = vmatpush.bf16.msrb.mxu3 %v6179_v55  ;;  %3906 = vmatpush.bf16.msra.mxu1 %v4871_v59  ;;  %v5063_v16 = vor.u32 %v6579_v50, %v5060_v40  ;;  %v6443_v35 = vld [vmem:[#allocation2 + $0x11c] sm:$0xf]  ;;  %v3668_v40 = vpop.f32.mrf.mxu2 }
 0x2cb   :  { %3875 = vmatmul.bf16.vlgmr.msrb.gmra.mxu2 %v7162_v38  ;;  %v4516_v45 = vld [vmem:[#allocation2 + $0x138] sm:$0xf0] }
 0x2cc   :  { %3919 = vmatpush.bf16.msra.mxu2 %v5127_v47  ;;  %3894 = vmatpush.bf16.msra.mxu0 %v4583_v7  ;;  %v6507_v46 = vld [vmem:[#allocation2 + $0x31c] sm:$0xf]  ;;  %v4519_v47 = vor.u32 %v6443_v35, %v4516_v45  ;;  %v3681_v35 = vpop.f32.mrf.mxu3 }
 0x2cd   :  { %3888 = vmatmul.bf16.vlgmr.msrb.gmra.mxu3 %v7166_v42  ;;  %v4772_v29 = vld [vmem:[#allocation2 + $0x338] sm:$0xf0] }
 0x2ce   :  { %3932 = vmatpush.bf16.msra.mxu3 %v5383_v48  ;;  %3907 = vmatpush.bf16.msra.mxu1 %v4839_v9  ;;  %v6571_v51 = vld [vmem:[#allocation2 + $0x51c] sm:$0xf]  ;;  %v4775_v63 = vor.u32 %v6507_v46, %v4772_v29 }
 0x2cf   :  { %v5028_v55 = vld [vmem:[#allocation2 + $0x538] sm:$0xf0] }
 0x2d0   :  { %3920 = vmatpush.bf16.msra.mxu2 %v5095_v10  ;;  %v6635_v56 = vld [vmem:[#allocation2 + $0x71c] sm:$0xf]  ;;  %3895 = vmatpush.bf16.msra.mxu0 %v4551_v49  ;;  %v5031_v48 = vor.u32 %v6571_v51, %v5028_v55 }
 0x2d1   :  { %v5284_v59 = vld [vmem:[#allocation2 + $0x738] sm:$0xf0] }
 0x2d2   :  { %3933 = vmatpush.bf16.msra.mxu3 %v5351_v18  ;;  %3908 = vmatpush.bf16.msra.mxu1 %v4807_v34  ;;  %v6435_v33 = vld [vmem:[#allocation2 + $0xdc] sm:$0xf]  ;;  %v5287_v7 = vor.u32 %v6635_v56, %v5284_v59  ;;  %v7356_v56 = vld [vmem:[#allocation7 + $0x10] sm:$0xff] }
 0x2d3   :  { %v4484_v2 = vld [vmem:[#allocation2 + $0xf8] sm:$0xf0]  ;;  %v7359_v59 = vunpack.c.l.bf16 %v7356_v56 }
 0x2d4   :  { %3921 = vmatpush.bf16.msra.mxu2 %v5063_v16  ;;  %v6499_v3 = vld [vmem:[#allocation2 + $0x2dc] sm:$0xf]  ;;  %3896 = vmatpush.bf16.msra.mxu0 %v4519_v47  ;;  %v4487_v26 = vor.u32 %v6435_v33, %v4484_v2  ;;  %v3669_v16 = vadd.f32 %v3668_v40, %v3656_v13 }
 0x2d5   :  { %v4740_v9 = vld [vmem:[#allocation2 + $0x2f8] sm:$0xf0] }
 0x2d6   :  { %3934 = vmatpush.bf16.msra.mxu3 %v5319_v52  ;;  %v6563_v10 = vld [vmem:[#allocation2 + $0x4dc] sm:$0xf]  ;;  %3909 = vmatpush.bf16.msra.mxu1 %v4775_v63  ;;  %v4743_v50 = vor.u32 %v6499_v3, %v4740_v9  ;;  %v3682_v55 = vadd.f32 %v3681_v35, %v3669_v16  ;;  %v3644_v63 = vpop.f32.mrf.mxu0  ;;  %v3657_v3 = vpop.f32.mrf.mxu1 }
 0x2d7   :  { %v4996_v60 = vld [vmem:[#allocation2 + $0x4f8] sm:$0xf0] }
 0x2d8   :  { %v6627_v15 = vld [vmem:[#allocation2 + $0x6dc] sm:$0xf]  ;;  %3922 = vmatpush.bf16.msra.mxu2 %v5031_v48  ;;  %v4999_v37 = vor.u32 %v6563_v10, %v4996_v60  ;;  %3897 = vmatpush.bf16.msra.mxu0 %v4487_v26  ;;  %v4001_v9 = vmul.f32 0.0010405828, %v3682_v55 }
 0x2d9   :  { %v5252_v18 = vld [vmem:[#allocation2 + $0x6f8] sm:$0xf0] }
 0x2da   :  { %v6427_v31 = vld [vmem:[#allocation2 + $0x9c] sm:$0xf]  ;;  %3935 = vmatpush.bf16.msra.mxu3 %v5287_v7  ;;  %v5255_v34 = vor.u32 %v6627_v15, %v5252_v18  ;;  %3910 = vmatpush.bf16.msra.mxu1 %v4743_v50  ;;  %v6946_v7 = vpop.eup %6945  ;;  %v4222_v40 = vsub.f32 %v4001_v9, %v7359_v59 }
 0x2db   :  { %v4452_v32 = vld [vmem:[#allocation2 + $0xb8] sm:$0xf0] }
 0x2dc   :  { %v6491_v49 = vld [vmem:[#allocation2 + $0x29c] sm:$0xf]  ;;  %v4455_v47 = vor.u32 %v6427_v31, %v4452_v32  ;;  %3923 = vmatpush.bf16.msra.mxu2 %v4999_v37 }
 0x2dd   :  { %v4708_v45 = vld [vmem:[#allocation2 + $0x2b8] sm:$0xf0] }
 0x2de   :  { %v6555_v46 = vld [vmem:[#allocation2 + $0x49c] sm:$0xf]  ;;  %v4711_v48 = vor.u32 %v6491_v49, %v4708_v45  ;;  %3936 = vmatpush.bf16.msra.mxu3 %v5255_v34  ;;  %3898 = vmatpush.bf16.msra.mxu0 %v4455_v47  ;;  %v4206_v49 = vmul.f32 %v6946_v7, %v7349_v22  ;;  %v3683_v47 = vpop.f32.mrf.mxu3 }
 0x2df   :  { %v4964_v52 = vld [vmem:[#allocation2 + $0x4b8] sm:$0xf0] }
 0x2e0   :  { %v6619_v29 = vld [vmem:[#allocation2 + $0x69c] sm:$0xf]  ;;  %v4967_v62 = vor.u32 %v6555_v46, %v4964_v52  ;;  %3911 = vmatpush.bf16.msra.mxu1 %v4711_v48  ;;  %v3670_v52 = vpop.f32.mrf.mxu2 }
 0x2e1   :  { %v5220_v51 = vld [vmem:[#allocation2 + $0x6b8] sm:$0xf0] }
 0x2e2   :  { %v6419_v43 = vld [vmem:[#allocation2 + $0x5c] sm:$0xf]  ;;  %v5223_v10 = vor.u32 %v6619_v29, %v5220_v51  ;;  %3924 = vmatpush.bf16.msra.mxu2 %v4967_v62  ;;  %v4230_v29 = vand.u32 2147483647, %v4222_v40 }
 0x2e3   :  { %v4420_v0 = vld [vmem:[#allocation2 + $0x78] sm:$0xf0] }
 0x2e4   :  { %v6483_v33 = vld [vmem:[#allocation2 + $0x25c] sm:$0xf]  ;;  %v4423_v50 = vor.u32 %v6419_v43, %v4420_v0  ;;  %3937 = vmatpush.bf16.msra.mxu3 %v5223_v10  ;;  %v4238_v9 = vmul.f32 5.0, %v4230_v29 }
 0x2e5   :  { %v4676_v2 = vld [vmem:[#allocation2 + $0x278] sm:$0xf0] }
 0x2e6   :  { %v6547_v60 = vld [vmem:[#allocation2 + $0x45c] sm:$0xf]  ;;  %v4679_v16 = vor.u32 %v6483_v33, %v4676_v2  ;;  %3899 = vmatpush.bf16.msra.mxu0 %v4423_v50  ;;  %v4214_v33 = vsel %vm4198_vm4, %v6946_v7, %v4206_v49 }
 0x2e7   :  { %v4932_v13 = vld [vmem:[#allocation2 + $0x478] sm:$0xf0] }
 0x2e8   :  { %v6611_v15 = vld [vmem:[#allocation2 + $0x65c] sm:$0xf]  ;;  %v4935_v34 = vor.u32 %v6547_v60, %v4932_v13  ;;  %3912 = vmatpush.bf16.msra.mxu1 %v4679_v16 }
 0x2e9   :  { %v5188_v18 = vld [vmem:[#allocation2 + $0x678] sm:$0xf0] }
 0x2ea   :  { %v6411_v26 = vld [vmem:[#allocation2 + $0x1c] sm:$0xf]  ;;  %v5191_v51 = vor.u32 %v6611_v15, %v5188_v18  ;;  %3925 = vmatpush.bf16.msra.mxu2 %v4935_v34  ;;  %v4246_v15 = vadd.f32 1.0, %v4238_v9 }
 0x2eb   :  { %v4388_v37 = vld [vmem:[#allocation2 + $0x38] sm:$0xf0] }
 0x2ec   :  { %v6475_v31 = vld [vmem:[#allocation2 + $0x21c] sm:$0xf]  ;;  %v4391_v22 = vor.u32 %v6411_v26, %v4388_v37  ;;  %3938 = vmatpush.bf16.msra.mxu3 %v5191_v51  ;;  %v4254_v37 = vmul.f32 %v4246_v15, %v4214_v33  ;;  %v4262_v61 = vmul.f32 %v4246_v15, %v7359_v59 }
 0x2ed   :  { %v4644_v32 = vld [vmem:[#allocation2 + $0x238] sm:$0xf0] }
 0x2ee   :  { %v6539_v35 = vld [vmem:[#allocation2 + $0x41c] sm:$0xf]  ;;  %v4647_v2 = vor.u32 %v6475_v31, %v4644_v32  ;;  %3900 = vmatpush.bf16.msra.mxu0 %v4391_v22 }
 0x2ef   :  { %v4900_v45 = vld [vmem:[#allocation2 + $0x438] sm:$0xf0] }
 0x2f0   :  { %v6603_v46 = vld [vmem:[#allocation2 + $0x61c] sm:$0xf]  ;;  %v4903_v60 = vor.u32 %v6539_v35, %v4900_v45  ;;  %3913 = vmatpush.bf16.msra.mxu1 %v4647_v2  ;;  %v4287_v35 = vadd.f32 %v4262_v61, %v4254_v37 }
 0x2f1   :  { %v5156_v55 = vld [vmem:[#allocation2 + $0x638] sm:$0xf0]  ;;  %3901 = vmatmul.bf16.vlgmr.msra.gmra.mxu0 %v7155_v20 }
 0x2f2   :  { %v6723_v63 = vld [vmem:[#allocation2 + $0x9dc] sm:$0xf]  ;;  %v5159_v18 = vor.u32 %v6603_v46, %v5156_v55  ;;  %3926 = vmatpush.bf16.msra.mxu2 %v4903_v60  ;;  %v4270_v46 = vmul.f32 %v4254_v37, %v7359_v59 }
 0x2f3   :  { %v5636_v43 = vld [vmem:[#allocation2 + $0x9f8] sm:$0xf0]  ;;  %3914 = vmatmul.bf16.vlgmr.msra.gmra.mxu1 %v7158_v21 }
 0x2f4   :  { %v6787_v0 = vld [vmem:[#allocation2 + $0xbdc] sm:$0xf]  ;;  %v5639_v40 = vor.u32 %v6723_v63, %v5636_v43  ;;  %3939 = vmatpush.bf16.msra.mxu3 %v5159_v18  ;;  %v7370_v61 = vadd.f32 %v7329_v19, %v4270_v46 }
 0x2f5   :  { %v5892_v3 = vld [vmem:[#allocation2 + $0xbf8] sm:$0xf0]  ;;  %3927 = vmatmul.bf16.vlgmr.msra.gmra.mxu2 %v7150_v4 }
 0x2f6   :  { %v6851_v48 = vld [vmem:[#allocation2 + $0xddc] sm:$0xf]  ;;  %v5895_v52 = vor.u32 %v6787_v0, %v5892_v3  ;;  %3945 = vmatpush.bf16.msrb.mxu0 %v5639_v40 }
 0x2f7   :  { %v6148_v62 = vld [vmem:[#allocation2 + $0xdf8] sm:$0xf0]  ;;  %3940 = vmatmul.bf16.vlgmr.msra.gmra.mxu3 %v7152_v6 }
 0x2f8   :  { %v6915_v10 = vld [vmem:[#allocation2 + $0xfdc] sm:$0xf]  ;;  %v6151_v47 = vor.u32 %v6851_v48, %v6148_v62  ;;  %3958 = vmatpush.bf16.msrb.mxu1 %v5895_v52  ;;  %v7373_v62 = vadd.f32 %v7332_v23, %v4287_v35 }
 0x2f9   :  { %v6404_v13 = vld [vmem:[#allocation2 + $0xff8] sm:$0xf0] }
 0x2fa   :  { %v6715_v29 = vld [vmem:[#allocation2 + $0x99c] sm:$0xf]  ;;  %v6407_v7 = vor.u32 %v6915_v10, %v6404_v13  ;;  %3971 = vmatpush.bf16.msrb.mxu2 %v6151_v47 }
 0x2fb   :  { %v5604_v50 = vld [vmem:[#allocation2 + $0x9b8] sm:$0xf0] }
 0x2fc   :  { %v6779_v26 = vld [vmem:[#allocation2 + $0xb9c] sm:$0xf]  ;;  %v5607_v45 = vor.u32 %v6715_v29, %v5604_v50  ;;  %3984 = vmatpush.bf16.msrb.mxu3 %v6407_v7  ;;  %v3694_v29 = vpop.f32.mrf.mxu0 }
 0x2fd   :  { %v5860_v49 = vld [vmem:[#allocation2 + $0xbb8] sm:$0xf0] }
 0x2fe   :  { %v6843_v16 = vld [vmem:[#allocation2 + $0xd9c] sm:$0xf]  ;;  %v5863_v51 = vor.u32 %v6779_v26, %v5860_v49  ;;  %3946 = vmatpush.bf16.msrb.mxu0 %v5607_v45  ;;  %v3707_v49 = vpop.f32.mrf.mxu1 }
 0x2ff   :  { %v6116_v31 = vld [vmem:[#allocation2 + $0xdb8] sm:$0xf0]  ;;  %v3708_v35 = vadd.f32 %v3707_v49, %v3694_v29 }
 0x300   :  { %v6907_v32 = vld [vmem:[#allocation2 + $0xf9c] sm:$0xf]  ;;  %v6119_v55 = vor.u32 %v6843_v16, %v6116_v31  ;;  %3959 = vmatpush.bf16.msrb.mxu1 %v5863_v51 }
 0x301   :  { %v6372_v34 = vld [vmem:[#allocation2 + $0xfb8] sm:$0xf0] }
 0x302   :  { %v6707_v63 = vld [vmem:[#allocation2 + $0x95c] sm:$0xf]  ;;  %v6375_v0 = vor.u32 %v6907_v32, %v6372_v34  ;;  %3972 = vmatpush.bf16.msrb.mxu2 %v6119_v55 }
 0x303   :  { %v5572_v22 = vld [vmem:[#allocation2 + $0x978] sm:$0xf0] }
 0x304   :  { %v6771_v43 = vld [vmem:[#allocation2 + $0xb5c] sm:$0xf]  ;;  %v5575_v60 = vor.u32 %v6707_v63, %v5572_v22  ;;  %3985 = vmatpush.bf16.msrb.mxu3 %v6375_v0 }
 0x305   :  { %v5828_v3 = vld [vmem:[#allocation2 + $0xb78] sm:$0xf0] }
 0x306   :  { %v6835_v9 = vld [vmem:[#allocation2 + $0xd5c] sm:$0xf]  ;;  %v5831_v4 = vor.u32 %v6771_v43, %v5828_v3  ;;  %3947 = vmatpush.bf16.msrb.mxu0 %v5575_v60  ;;  %v3720_v3 = vpop.f32.mrf.mxu2 }
 0x307   :  { %v6084_v48 = vld [vmem:[#allocation2 + $0xd78] sm:$0xf0] }
 0x308   :  { %v6899_v33 = vld [vmem:[#allocation2 + $0xf5c] sm:$0xf]  ;;  %v6087_v10 = vor.u32 %v6835_v9, %v6084_v48  ;;  %3960 = vmatpush.bf16.msrb.mxu1 %v5831_v4  ;;  %v7379_v9 = vunpack.c.h.bf16 %v7337_v1  ;;  %v3721_v4 = vadd.f32 %v3720_v3, %v3708_v35 }
 0x309   :  { %v6340_v2 = vld [vmem:[#allocation2 + $0xf78] sm:$0xf0] }
 0x30a   :  { %v6699_v13 = vld [vmem:[#allocation2 + $0x91c] sm:$0xf]  ;;  %v6343_v23 = vor.u32 %v6899_v33, %v6340_v2  ;;  %3973 = vmatpush.bf16.msrb.mxu2 %v6087_v10  ;;  %v3733_v10 = vpop.f32.mrf.mxu3  ;;  %v4030_v29 = vand.u32 2147483647, %v7379_v9  ;;  %vm4199_vm5 = vcmp.ge.f32.partialorder %v7379_v9, 0.0 }
 0x30b   :  { %v5540_v19 = vld [vmem:[#allocation2 + $0x938] sm:$0xf0] }
 0x30c   :  { %v6763_v15 = vld [vmem:[#allocation2 + $0xb1c] sm:$0xf]  ;;  %v5543_v6 = vor.u32 %v6699_v13, %v5540_v19  ;;  %3986 = vmatpush.bf16.msrb.mxu3 %v6343_v23 }
 0x30d   :  { %v5796_v18 = vld [vmem:[#allocation2 + $0xb38] sm:$0xf0] }
 0x30e   :  { %v6827_v40 = vld [vmem:[#allocation2 + $0xd1c] sm:$0xf]  ;;  %v5799_v21 = vor.u32 %v6763_v15, %v5796_v18  ;;  %3948 = vmatpush.bf16.msrb.mxu0 %v5543_v6  ;;  %v3734_v18 = vadd.f32 %v3733_v10, %v3721_v4  ;;  %v3709_v6 = vpop.f32.mrf.mxu1 }
 0x30f   :  { %v6052_v52 = vld [vmem:[#allocation2 + $0xd38] sm:$0xf0] }
 0x310   :  { %v6891_v47 = vld [vmem:[#allocation2 + $0xf1c] sm:$0xf]  ;;  %v6055_v50 = vor.u32 %v6827_v40, %v6052_v52  ;;  %3961 = vmatpush.bf16.msrb.mxu1 %v5799_v21  ;;  %v3696_v40 = vpop.f32.mrf.mxu0 }
 0x311   :  { %v6308_v20 = vld [vmem:[#allocation2 + $0xf38] sm:$0xf0] }
 0x312   :  { %v6691_v26 = vld [vmem:[#allocation2 + $0x8dc] sm:$0xf]  ;;  %v6311_v16 = vor.u32 %v6891_v47, %v6308_v20  ;;  %3974 = vmatpush.bf16.msrb.mxu2 %v6055_v50 }
 0x313   :  { %v5508_v37 = vld [vmem:[#allocation2 + $0x8f8] sm:$0xf0] }
 0x314   :  { %v6755_v7 = vld [vmem:[#allocation2 + $0xadc] sm:$0xf]  ;;  %v5511_v51 = vor.u32 %v6691_v26, %v5508_v37  ;;  %3987 = vmatpush.bf16.msrb.mxu3 %v6311_v16 }
 0x315   :  { %v5764_v31 = vld [vmem:[#allocation2 + $0xaf8] sm:$0xf0] }
 0x316   :  { %v6819_v32 = vld [vmem:[#allocation2 + $0xcdc] sm:$0xf]  ;;  %v5767_v55 = vor.u32 %v6755_v7, %v5764_v31  ;;  %3949 = vmatpush.bf16.msrb.mxu0 %v5511_v51  ;;  %v4038_v51 = vsub.f32 0.0, %v4030_v29  ;;  %v3759_v40 = vpop.f32.mrf.mxu1 }
 0x317   :  { %v6020_v34 = vld [vmem:[#allocation2 + $0xcf8] sm:$0xf0] }
 0x318   :  { %v6883_v45 = vld [vmem:[#allocation2 + $0xedc] sm:$0xf]  ;;  %v6023_v63 = vor.u32 %v6819_v32, %v6020_v34  ;;  %3962 = vmatpush.bf16.msrb.mxu1 %v5767_v55  ;;  %v4051_v4 = vmul.f32 1.442695, %v4038_v51 }
 0x319   :  { %v6276_v46 = vld [vmem:[#allocation2 + $0xef8] sm:$0xf0] }
 0x31a   :  { %v6683_v22 = vld [vmem:[#allocation2 + $0x89c] sm:$0xf]  ;;  %v6279_v48 = vor.u32 %v6883_v45, %v6276_v46  ;;  %3975 = vmatpush.bf16.msrb.mxu2 %v6023_v63  ;;  %v3722_v46 = vpop.f32.mrf.mxu2  ;;  %6947 = vpow2.f32 %v4051_v4 }
 0x31b   :  { %v5476_v43 = vld [vmem:[#allocation2 + $0x8b8] sm:$0xf0] }
 0x31c   :  { %v6747_v0 = vld [vmem:[#allocation2 + $0xa9c] sm:$0xf]  ;;  %v5479_v15 = vor.u32 %v6683_v22, %v5476_v43  ;;  %3988 = vmatpush.bf16.msrb.mxu3 %v6279_v48 }
 0x31d   :  { %v5732_v33 = vld [vmem:[#allocation2 + $0xab8] sm:$0xf0] }
 0x31e   :  { %v6811_v2 = vld [vmem:[#allocation2 + $0xc9c] sm:$0xf]  ;;  %v5735_v52 = vor.u32 %v6747_v0, %v5732_v33  ;;  %3950 = vmatpush.bf16.msrb.mxu0 %v5479_v15  ;;  %v3735_v0 = vpop.f32.mrf.mxu3 }
 0x31f   :  { %v5988_v60 = vld [vmem:[#allocation2 + $0xcb8] sm:$0xf0] }
 0x320   :  { %v6875_v13 = vld [vmem:[#allocation2 + $0xe9c] sm:$0xf]  ;;  %v5991_v47 = vor.u32 %v6811_v2, %v5988_v60  ;;  %3963 = vmatpush.bf16.msrb.mxu1 %v5735_v52 }
 0x321   :  { %v6244_v19 = vld [vmem:[#allocation2 + $0xeb8] sm:$0xf0] }
 0x322   :  { %v6675_v23 = vld [vmem:[#allocation2 + $0x85c] sm:$0xf]  ;;  %v6247_v21 = vor.u32 %v6875_v13, %v6244_v19  ;;  %3976 = vmatpush.bf16.msrb.mxu2 %v5991_v47  ;;  %v7386_v13 = vpop.eup %6947  ;;  %v3746_v19 = vpop.f32.mrf.mxu0 }
 0x323   :  { %v5444_v1 = vld [vmem:[#allocation2 + $0x878] sm:$0xf0]  ;;  %v7389_v15 = vadd.f32 1.0, %v7386_v13  ;;  %v3772_v47 = vpop.f32.mrf.mxu2 }
 0x324   :  { %v6739_v20 = vld [vmem:[#allocation2 + $0xa5c] sm:$0xf]  ;;  %v5447_v16 = vor.u32 %v6675_v23, %v5444_v1  ;;  %3989 = vmatpush.bf16.msrb.mxu3 %v6247_v21  ;;  %v3747_v23 = vadd.f32 %v3746_v19, %v3734_v18 }
 0x325   :  { %v5700_v50 = vld [vmem:[#allocation2 + $0xa78] sm:$0xf0]  ;;  %6949 = vrcp.f32 %v7389_v15 }
 0x326   :  { %v6803_v26 = vld [vmem:[#allocation2 + $0xc5c] sm:$0xf]  ;;  %v5703_v32 = vor.u32 %v6739_v20, %v5700_v50  ;;  %3951 = vmatpush.bf16.msrb.mxu0 %v5447_v16  ;;  %v3760_v52 = vadd.f32 %v3759_v40, %v3747_v23 }
 0x327   :  { %v5956_v37 = vld [vmem:[#allocation2 + $0xc78] sm:$0xf0] }
 0x328   :  { %v6867_v7 = vld [vmem:[#allocation2 + $0xe5c] sm:$0xf]  ;;  %v5959_v34 = vor.u32 %v6803_v26, %v5956_v37  ;;  %3964 = vmatpush.bf16.msrb.mxu1 %v5703_v32  ;;  %v3773_v1 = vadd.f32 %v3772_v47, %v3760_v52 }
 0x329   :  { %v6212_v49 = vld [vmem:[#allocation2 + $0xe78] sm:$0xf0] }
 0x32a   :  { %v6667_v31 = vld [vmem:[#allocation2 + $0x81c] sm:$0xf]  ;;  %v6215_v55 = vor.u32 %v6867_v7, %v6212_v49  ;;  %3977 = vmatpush.bf16.msrb.mxu2 %v5959_v34 }
 0x32b   :  { %v5412_v35 = vld [vmem:[#allocation2 + $0x838] sm:$0xf0]  ;;  %v6950_v6 = vpop.eup %6949  ;;  %v3774_v18 = vpop.f32.mrf.mxu2 }
 0x32c   :  { %v6731_v45 = vld [vmem:[#allocation2 + $0xa1c] sm:$0xf]  ;;  %v5415_v33 = vor.u32 %v6667_v31, %v5412_v35  ;;  %3990 = vmatpush.bf16.msrb.mxu3 %v6215_v55  ;;  %v4207_v50 = vmul.f32 %v6950_v6, %v7386_v13 }
 0x32d   :  { %v5668_v63 = vld [vmem:[#allocation2 + $0xa38] sm:$0xf0] }
 0x32e   :  { %v6795_v22 = vld [vmem:[#allocation2 + $0xc1c] sm:$0xf]  ;;  %v5671_v2 = vor.u32 %v6731_v45, %v5668_v63  ;;  %3952 = vmatpush.bf16.msrb.mxu0 %v5415_v33  ;;  %v4215_v49 = vsel %vm4199_vm5, %v6950_v6, %v4207_v50 }
 0x32f   :  { %v5924_v43 = vld [vmem:[#allocation2 + $0xc38] sm:$0xf0] }
 0x330   :  { %v6859_v3 = vld [vmem:[#allocation2 + $0xe1c] sm:$0xf]  ;;  %v5927_v60 = vor.u32 %v6795_v22, %v5924_v43  ;;  %3965 = vmatpush.bf16.msrb.mxu1 %v5671_v2 }
 0x331   :  { %v6180_v48 = vld [vmem:[#allocation2 + $0xe38] sm:$0xf0]  ;;  %3953 = vmatmul.bf16.vlgmr.msrb.gmra.mxu0 %v7164_v41  ;;  %v3785_v41 = vpop.f32.mrf.mxu3 }
 0x332   :  { %v6183_v10 = vor.u32 %v6859_v3, %v6180_v48  ;;  %3978 = vmatpush.bf16.msrb.mxu2 %v5927_v60  ;;  %v3786_v20 = vadd.f32 %v3785_v41, %v3773_v1  ;;  %v4008_v63 = vld [vmem:[#allocation5 + $0x18] sm:$0xff] }
 0x333   :  { %3966 = vmatmul.bf16.vlgmr.msrb.gmra.mxu1 %v7168_v44  ;;  %v7393_v44 = vunpack.c.h.bf16 %v7356_v56  ;;  %v3824_v22 = vpop.f32.mrf.mxu2  ;;  %v7402_v43 = vunpack.c.l.bf16 %v4008_v63  ;;  %v6980_v6 = vld [vmem:[#allocation7 + $0x18] sm:$0xff] }
 0x334   :  { %3991 = vmatpush.bf16.msrb.mxu3 %v6183_v10  ;;  %v4002_v29 = vmul.f32 0.0010405828, %v3786_v20 }
 0x335   :  { %3979 = vmatmul.bf16.vlgmr.msrb.gmra.mxu2 %v7162_v38  ;;  %v3748_v38 = vpop.f32.mrf.mxu0  ;;  %v4031_v60 = vand.u32 2147483647, %v7402_v43  ;;  %vm4200_vm6 = vcmp.ge.f32.partialorder %v7402_v43, 0.0 }
 0x336   :  { %v4223_v21 = vsub.f32 %v4002_v29, %v7393_v44  ;;  %v7411_v29 = vunpack.c.l.bf16 %v6980_v6 }
 0x337   :  { %3992 = vmatmul.bf16.vlgmr.msrb.gmra.mxu3 %v7166_v42  ;;  %v3761_v42 = vpop.f32.mrf.mxu1  ;;  %v4039_v10 = vsub.f32 0.0, %v4031_v60 }
 0x338   :  { %v4231_v26 = vand.u32 2147483647, %v4223_v21 }
 0x339   :  { %v3787_v37 = vpop.f32.mrf.mxu3 }
 0x33a   :  { %v4239_v7 = vmul.f32 5.0, %v4231_v26 }
 0x33b   :  { %v3826_v4 = vpop.f32.mrf.mxu2 }
 0x33c   :  { %v4247_v16 = vadd.f32 1.0, %v4239_v7 }
 0x33d   :  { %v3798_v46 = vpop.f32.mrf.mxu0 }
 0x33e   :  { %v4255_v31 = vmul.f32 %v4247_v16, %v4215_v49  ;;  %v4263_v56 = vmul.f32 %v4247_v16, %v7393_v44 }
 0x33f   :  { %v3811_v51 = vpop.f32.mrf.mxu1 }
 0x340   :  { %v4271_v32 = vmul.f32 %v4255_v31, %v7393_v44  ;;  %v4288_v34 = vadd.f32 %v4263_v56, %v4255_v31  ;;  %v3812_v55 = vadd.f32 %v3811_v51, %v3798_v46 }
 0x341   :  { %v3837_v3 = vpop.f32.mrf.mxu3 }
 0x342   :  { %v4278_v35 = vadd.f32 %v7370_v61, %v4271_v32  ;;  %v4295_v45 = vadd.f32 %v7373_v62, %v4288_v34  ;;  %v3825_v0 = vadd.f32 %v3824_v22, %v3812_v55  ;;  %v4053_v61 = vmul.f32 1.442695, %v4039_v10 }
 0x343   :  { %v7417_v55 = vunpack.c.h.bf16 %v4008_v63 }
 0x344   :  { %v3838_v48 = vadd.f32 %v3837_v3, %v3825_v0  ;;  %6951 = vpow2.f32 %v4053_v61 }
 0x345   :  { %v3800_v33 = vpop.f32.mrf.mxu0  ;;  %vm4201_vm7 = vcmp.ge.f32.partialorder %v7417_v55, 0.0 }
 0x346   :  { %v4032_v33 = vand.u32 2147483647, %v7417_v55 }
 0x347   :  { %v3813_v2 = vpop.f32.mrf.mxu1 }
 0x348   :  { %v4040_v2 = vsub.f32 0.0, %v4032_v33 }
 0x349   :  { %v3839_v19 = vpop.f32.mrf.mxu3 }
 0x34a   :  { %v7405_v62 = vpop.eup %6951  ;;  %v4055_v10 = vmul.f32 1.442695, %v4040_v2 }
 0x34b   :  { %v7408_v40 = vadd.f32 1.0, %v7405_v62 }
 0x34d   :  { %v3850_v23 = vpop.f32.mrf.mxu0  ;;  %6953 = vrcp.f32 %v7408_v40 }
 0x34e   :  { %v3851_v52 = vadd.f32 %v3850_v23, %v3838_v48  ;;  %v3876_v41 = vpop.f32.mrf.mxu2  ;;  %6955 = vpow2.f32 %v4055_v10  ;;  %v4062_v10 = vmax.f32 %v7379_v9, 0.0 }
 0x34f   :  { %v3863_v47 = vpop.f32.mrf.mxu1 }
 0x350   :  { %v3864_v1 = vadd.f32 %v3863_v47, %v3851_v52 }
 0x351   :  { %v3889_v38 = vpop.f32.mrf.mxu3 }
 0x352   :  { %v3877_v20 = vadd.f32 %v3876_v41, %v3864_v1 }
 0x353   :  { %v6954_v18 = vpop.eup %6953 }
 0x354   :  { %v3890_v42 = vadd.f32 %v3889_v38, %v3877_v20  ;;  %v4208_v49 = vmul.f32 %v6954_v18, %v7405_v62  ;;  %v7425_v63 = vpop.eup %6955 }
 0x355   :  { %v3852_v21 = vpop.f32.mrf.mxu0 }
 0x356   :  { %v4003_v26 = vmul.f32 0.0010405828, %v3890_v42  ;;  %v3878_v7 = vpop.f32.mrf.mxu2  ;;  %v4216_v32 = vsel %vm4200_vm6, %v6954_v18, %v4208_v49  ;;  %v4093_v49 = vmul.f32 -0.5, %v7227_v11 }
 0x357   :  { %v3865_v50 = vpop.f32.mrf.mxu1 }
 0x358   :  { %v4224_v37 = vsub.f32 %v4003_v26, %v7411_v29  ;;  %v4084_v26 = vmul.f32 -0.5, %v7211_v36 }
 0x359   :  { %v3891_v31 = vpop.f32.mrf.mxu3 }
 0x35a   :  { %v4232_v16 = vand.u32 2147483647, %v4224_v37  ;;  %v7436_v37 = vunpack.c.h.bf16 %v6980_v6  ;;  %v4057_v31 = vmax.f32 %v7201_v57, 0.0  ;;  %v4066_v6 = vmul.f32 %v7238_v12, %v7206_v8 }
 0x35c   :  { %v4240_v56 = vmul.f32 5.0, %v4232_v16 }
 0x35e   :  { %v4248_v34 = vadd.f32 1.0, %v4240_v56  ;;  %v4085_v56 = vadd.f32 1.0, %v4084_v26  ;;  %v4105_v26 = vand.u32 2147483647, %v7271_v24 }
 0x360   :  { %v4264_v46 = vmul.f32 %v4248_v34, %v7411_v29  ;;  %v4256_v51 = vmul.f32 %v4248_v34, %v4216_v32  ;;  %v4058_v34 = vmax.f32 %v7206_v8, 0.0  ;;  %v4102_v8 = vmul.f32 -0.5, %v7271_v24 }
 0x361   :  { %vm7499_vm10 = vcmp.lt.f32.partialorder %v4105_v26, 0.0004427343 }
 0x362   :  { %v4272_v22 = vmul.f32 %v4256_v51, %v7411_v29  ;;  %v4289_v0 = vadd.f32 %v4264_v46, %v4256_v51 }
 0x364   :  { %v7420_v3 = vadd.f32 %v4278_v35, %v4272_v22  ;;  %v7422_v48 = vadd.f32 %v4295_v45, %v4289_v0  ;;  %v7428_v35 = vadd.f32 1.0, %v7425_v63  ;;  %v4060_v22 = vmax.f32 %v7301_v17, 0.0 }
 0x365   :  { %v4067_v0 = vmul.f32 %v7281_v30, %v7262_v39 }
 0x366   :  { %6957 = vrcp.f32 %v7428_v35 }
 0x367   :  { %6959 = vlog2.f32 %v7220_v58  ;;  %v4059_v58 = vmax.f32 %v7262_v39, 0.0  ;;  %v4064_v39 = vmax.f32 %v7417_v55, 0.0 }
 0x368   :  { %6961 = vlog2.f32 %v7231_v28  ;;  %v4065_v28 = vmul.f32 %v7217_v54, %v7201_v57  ;;  %v4069_v57 = vmul.f32 %v7359_v59, %v7340_v5  ;;  %v4094_v54 = vadd.f32 1.0, %v4093_v49 }
 0x369   :  { %6963 = vlog2.f32 %v7274_v53  ;;  %v4074_v59 = vsub.f32 %v4058_v34, %v4066_v6  ;;  %v4114_v6 = vand.u32 2147483647, %v7310_v14 }
 0x36a   :  { %6965 = vlog2.f32 %v7313_v27  ;;  %v4068_v27 = vmul.f32 %v7318_v25, %v7301_v17  ;;  %v7464_v17 = vmul.f32 %v7393_v44, %v7379_v9  ;;  %v7468_v25 = vmul.f32 %v7411_v29, %v7402_v43 }
 0x36b   :  { %v4087_v44 = vand.u32 2147483647, %v7211_v36  ;;  %vm7504_vm11 = vcmp.lt.f32.partialorder %v4114_v6, 0.0004427343 }
 0x36c   :  { %v6958_v20 = vpop.eup %6957 }
 0x36d   :  { %v4209_v50 = vmul.f32 %v6958_v20, %v7425_v63  ;;  %v6960_v33 = vpop.eup %6959  ;;  %vm7486_vm8 = vcmp.lt.f32.partialorder %v4087_v44, 0.0004427343 }
 0x36e   :  { %v3902_v60 = vpop.f32.mrf.mxu0  ;;  %v6962_v12 = vpop.eup %6961 }
 0x36f   :  { %v7438_v7 = vsel %vm4201_vm7, %v6958_v20, %v4209_v50  ;;  %v6964_v30 = vpop.eup %6963  ;;  %v4096_v20 = vand.u32 2147483647, %v7227_v11 }
 0x370   :  { %v3915_v4 = vpop.f32.mrf.mxu1 }
 0x371   :  { %v3916_v45 = vadd.f32 %v3915_v4, %v3902_v60  ;;  %v4061_v60 = vmax.f32 %v7340_v5, 0.0  ;;  %v4073_v5 = vsub.f32 %v4057_v31, %v4065_v28  ;;  %v4101_v28 = vmul.f32 0.6931472, %v6964_v30 }
 0x372   :  { %vm7490_vm9 = vcmp.lt.f32.partialorder %v4096_v20, 0.0004427343 }
 0x376   :  { %v3904_v23 = vpop.f32.mrf.mxu0 }
 0x378   :  { %v3928_v19 = vpop.f32.mrf.mxu2  ;;  %v3917_v52 = vpop.f32.mrf.mxu1 }
 0x379   :  { %v3929_v41 = vadd.f32 %v3928_v19, %v3916_v45  ;;  %v4063_v19 = vmax.f32 %v7402_v43, 0.0  ;;  %v7470_v52 = vsub.f32 %v4059_v58, %v4067_v0  ;;  %v7475_v45 = vsub.f32 %v4061_v60, %v4069_v57 }
 0x37a   :  { %v3941_v61 = vpop.f32.mrf.mxu3  ;;  %v4095_v58 = vmul.f32 %v7227_v11, %v4094_v54  ;;  %v4132_v54 = vand.u32 2147483647, %v7386_v13 }
 0x37b   :  { %v3942_v38 = vadd.f32 %v3941_v61, %v3929_v41  ;;  %v6966_v61 = vpop.eup %6965  ;;  %v4083_v41 = vmul.f32 0.6931472, %v6960_v33 }
 0x37c   :  { %v4110_v0 = vmul.f32 0.6931472, %v6966_v61  ;;  %vm7529_vm13 = vcmp.lt.f32.partialorder %v4132_v54, 0.0004427343 }
 0x380   :  { %v3930_v47 = vpop.f32.mrf.mxu2 }
 0x381   :  { %v7472_v47 = vsub.f32 %v4060_v22, %v4068_v27 }
 0x382   :  { %v3943_v1 = vpop.f32.mrf.mxu3 }
 0x383   :  { %v4111_v1 = vmul.f32 -0.5, %v7310_v14 }
 0x385   :  { %v4112_v49 = vadd.f32 1.0, %v4111_v1 }
 0x387   :  { %v4113_v27 = vmul.f32 %v7310_v14, %v4112_v49 }
 0x3ae   :  { %v3954_v42 = vpop.f32.mrf.mxu0 }
 0x3af   :  { %v3955_v18 = vadd.f32 %v3954_v42, %v3942_v38  ;;  %v4086_v38 = vmul.f32 %v7211_v36, %v4085_v56  ;;  %v4103_v42 = vadd.f32 1.0, %v4102_v8  ;;  %v4129_v56 = vmul.f32 -0.5, %v7386_v13 }
 0x3b0   :  { %v3967_v21 = vpop.f32.mrf.mxu1  ;;  %v4147_v8 = vmul.f32 -0.5, %v7425_v63 }
 0x3b1   :  { %v3968_v16 = vadd.f32 %v3967_v21, %v3955_v18  ;;  %v7580_v21 = vld [vmem:[#allocation16_spill] sm:$0xff]  ;;  %v4092_v18 = vmul.f32 0.6931472, %v6962_v12  ;;  %v4130_v57 = vadd.f32 1.0, %v4129_v56 }
 0x3b2   :  { %6967 = vlog2.f32 %v7580_v21 }
 0x3b3   :  { %6969 = vlog2.f32 %v7389_v15  ;;  %v4098_v12 = vsel %vm7490_vm9, %v4095_v58, %v4092_v18  ;;  %v4131_v20 = vmul.f32 %v7386_v13, %v4130_v57  ;;  %v4072_v13 = vmul.f32 %v7436_v37, %v7417_v55 }
 0x3b4   :  { %6971 = vlog2.f32 %v7408_v40  ;;  %v4089_v40 = vsel %vm7486_vm8, %v4086_v38, %v4083_v41  ;;  %v4154_v18 = vadd.f32 %v4098_v12, %v4074_v59 }
 0x3b5   :  { %6973 = vlog2.f32 %v7428_v35  ;;  %v4153_v38 = vadd.f32 %v4089_v40, %v4073_v5 }
 0x3b6   :  { %v3956_v53 = vpop.f32.mrf.mxu0 }
 0x3b7   :  { %v4104_v53 = vmul.f32 %v7271_v24, %v4103_v42  ;;  %v4138_v24 = vmul.f32 -0.5, %v7405_v62 }
 0x3b8   :  { %v3980_v32 = vpop.f32.mrf.mxu2  ;;  %v3969_v2 = vpop.f32.mrf.mxu1 }
 0x3b9   :  { %v3981_v46 = vadd.f32 %v3980_v32, %v3968_v16  ;;  %v7581_v16 = vld [vmem:[#allocation15_spill] sm:$0xff]  ;;  %v6968_v2 = vpop.eup %6967  ;;  %v4139_v41 = vadd.f32 1.0, %v4138_v24 }
 0x3ba   :  { %v3993_v51 = vpop.f32.mrf.mxu3  ;;  %v4120_v31 = vmul.f32 -0.5, %v7581_v16  ;;  %v4123_v11 = vand.u32 2147483647, %v7581_v16  ;;  %v6970_v61 = vpop.eup %6969  ;;  %v4119_v1 = vmul.f32 0.6931472, %v6968_v2 }
 0x3bb   :  { %v3994_v4 = vadd.f32 %v3993_v51, %v3981_v46  ;;  %v6972_v44 = vpop.eup %6971  ;;  %v4128_v42 = vmul.f32 0.6931472, %v6970_v61  ;;  %v4140_v58 = vmul.f32 %v7405_v62, %v4139_v41 }
 0x3bc   :  { %v4121_v33 = vadd.f32 1.0, %v4120_v31  ;;  %vm7519_vm12 = vcmp.lt.f32.partialorder %v4123_v11, 0.0004427343 }
 0x3bd   :  { %v4004_v23 = vmul.f32 0.0010405828, %v3994_v4  ;;  %v4107_v4 = vsel %vm7499_vm10, %v4104_v53, %v4101_v28  ;;  %v4161_v28 = vadd.f32 %v4154_v18, %v4153_v38  ;;  %v4134_v6 = vsel %vm7529_vm13, %v4131_v20, %v4128_v42 }
 0x3be   :  { %v4122_v35 = vmul.f32 %v7581_v16, %v4121_v33  ;;  %v4150_v16 = vand.u32 2147483647, %v7425_v63  ;;  %v4155_v31 = vadd.f32 %v4107_v4, %v7470_v52 }
 0x3bf   :  { %v4225_v29 = vsub.f32 %v4004_v23, %v7436_v37  ;;  %v4116_v23 = vsel %vm7504_vm11, %v4113_v27, %v4110_v0 }
 0x3c0   :  { %v3982_v50 = vpop.f32.mrf.mxu2  ;;  %v4125_v5 = vsel %vm7519_vm12, %v4122_v35, %v4119_v1  ;;  %v4156_v52 = vadd.f32 %v4116_v23, %v7472_v47  ;;  %vm4151_vm15 = vcmp.lt.f32.partialorder %v4150_v16, 0.0004427343  ;;  %v4080_v47 = vsub.f32 %v4064_v39, %v4072_v13 }
 0x3c1   :  { %v4233_v32 = vand.u32 2147483647, %v4225_v29  ;;  %v4141_v29 = vand.u32 2147483647, %v7405_v62  ;;  %v4148_v50 = vadd.f32 1.0, %v4147_v8  ;;  %v4157_v9 = vadd.f32 %v4125_v5, %v7475_v45 }
 0x3c2   :  { %v3995_v34 = vpop.f32.mrf.mxu3 }
 0x3c3   :  { %v4241_v51 = vmul.f32 5.0, %v4233_v32  ;;  %v6974_v32 = vpop.eup %6973  ;;  %v4137_v34 = vmul.f32 0.6931472, %v6972_v44  ;;  %vm7545_vm14 = vcmp.lt.f32.partialorder %v4141_v29, 0.0004427343  ;;  %v4149_v46 = vmul.f32 %v7425_v63, %v4148_v50 }
 0x3c4   :  { %v4146_v62 = vmul.f32 0.6931472, %v6974_v32 }
 0x3c5   :  { %v4249_v60 = vadd.f32 1.0, %v4241_v51 }
 0x3c7   :  { %v4257_v14 = vmul.f32 %v4249_v60, %v7438_v7  ;;  %v4265_v49 = vmul.f32 %v4249_v60, %v7436_v37 }
 0x3c9   :  { %v4273_v7 = vmul.f32 %v4257_v14, %v7436_v37  ;;  %v4079_v37 = vsub.f32 %v4063_v19, %v7468_v25  ;;  %v4290_v36 = vadd.f32 %v4265_v49, %v4257_v14  ;;  %v4152_v19 = vsel %vm4151_vm15, %v4149_v46, %v4146_v62 }
 0x3ca   :  { %v4160_v63 = vadd.f32 %v4152_v19, %v4080_v47 }
 0x3cb   :  { %v4280_v26 = vadd.f32 %v7420_v3, %v4273_v7  ;;  %v4078_v3 = vsub.f32 %v4062_v10, %v7464_v17  ;;  %v4162_v10 = vadd.f32 %v4161_v28, %v4155_v31  ;;  %v4143_v17 = vsel %vm7545_vm14, %v4140_v58, %v4137_v34 }
 0x3cc   :  { %v4297_v25 = vadd.f32 %v7422_v48, %v4290_v36  ;;  %v4159_v51 = vadd.f32 %v4143_v17, %v4079_v37 }
 0x3cd   :  { %4281 = vadd.xlane.f32.xlu0 %v4280_v26  ;;  %v4158_v56 = vadd.f32 %v4134_v6, %v4078_v3  ;;  %v4163_v43 = vadd.f32 %v4162_v10, %v4156_v52 }
 0x3cf   :  { %v4164_v53 = vadd.f32 %v4163_v43, %v4157_v9 }
 0x3d1   :  { %v4165_v11 = vadd.f32 %v4164_v53, %v4158_v56 }
 0x3d3   :  { %v4166_v22 = vadd.f32 %v4165_v11, %v4159_v51 }
 0x3d5   :  { %4298 = vadd.xlane.f32.xlu0 %v4297_v25  ;;  %v4167_v0 = vadd.f32 %v4166_v22, %v4160_v63 }
 0x3d7   :  { %4168 = vadd.xlane.f32.xlu1 %v4167_v0 }
 0x440   :  { %v4282_v45 = vpop.xlane.xlu0 %4281 }
 0x441   :  { %v4300_v23 = vadd.f32 1.0, %v4282_v45 }
 0x448   :  { %v4299_v27 = vpop.xlane.xlu0 %4298 }
 0x449   :  { %v4301_v33 = vsub.f32 %v4299_v27, %v4282_v45 }
 0x44a   :  { %v4169_v55 = vpop.xlane.xlu1 %4168 }
 0x44b   :  { %v4302_v2 = vadd.f32 1.0, %v4301_v33  ;;  %v4170_v39 = vrot.slane %v4169_v55, 4 }
 0x44d   :  { %6975 = vrcp.f32 %v4302_v2  ;;  %v4171_v60 = vadd.f32 %v4170_v39, %v4169_v55  ;;  %v4314_v54 = vand.u32 2147483648, %v4302_v2  ;;  %v4312_v12 = vand.u32 2147483647, %v4302_v2 }
 0x44e   :  { %vm4308_vm2 = vweird.f32 %v4302_v2 }
 0x44f   :  { %v4172_v57 = vrot.slane %v4171_v60, 2  ;;  %v4315_v61 = vor.u32 1.1754944e-38, %v4314_v54  ;;  %vm4313_vm4 = vcmp.eq.f32.partialorder %v4312_v12, 8.507059e+37 }
 0x451   :  { %v4173_v48 = vadd.f32 %v4172_v57, %v4171_v60 }
 0x453   :  { %v6976_v15 = vpop.eup %6975  ;;  %v4174_v8 = vrot.slane %v4173_v48, 1 }
 0x454   :  { %v4304_v24 = vmul.f32 %v6976_v15, %v4302_v2  ;;  %vm4309_vm0 = vweird.f32 %v6976_v15 }
 0x455   :  { %v4175_v4 = vadd.f32 %v4174_v8, %v4173_v48  ;;  %vm4310_vm3 = vmor %vm4308_vm2, %vm4309_vm0 }
 0x456   :  { %v4305_v40 = vsub.f32 1.0, %v4304_v24 }
 0x457   :  { %4177 = vst.msk [vmem:[#allocation8] sm:$0x1] %vm4176_vm1, %v4175_v4 }
 0x458   :  { %v4306_v14 = vmul.f32 %v6976_v15, %v4305_v40  ;;  %4336 = dma.vmem_to_hbm [thread:$0]  %s4332_s2, 16, %s4334_s7, [#allocation4]  }
 0x45a   :  { %v4307_v30 = vadd.f32 %v6976_v15, %v4306_v14 }
 0x45c   :  { %v4311_v1 = vsel %vm4310_vm3, %v6976_v15, %v4307_v30 }
 0x45d   :  { %v4316_v35 = vsel %vm4313_vm4, %v4315_v61, %v4311_v1 }
 0x45e   :  { %v4317_v41 = vmul.f32 %v4316_v35, %v4300_v23 }
 0x460   :  { %v4318_v44 = vsub.f32 1.0, %v4317_v41 }
 0x462   :  { %v4319_v7 = vrot.slane %v4318_v44, 4 }
 0x464   :  { %v4320_v20 = vadd.f32 %v4319_v7, %v4318_v44 }
 0x466   :  { %v4321_v29 = vrot.slane %v4320_v20, 2 }
 0x468   :  { %v4322_v38 = vadd.f32 %v4321_v29, %v4320_v20 }
 0x46a   :  { %v4323_v42 = vrot.slane %v4322_v38, 1 }
 0x46c   :  { %v4324_v21 = vadd.f32 %v4323_v42, %v4322_v38 }
 0x46e   :  { %4325 = vst.msk [vmem:[#allocation9] sm:$0x1] %vm4176_vm1, %v4324_v21 }
 0x46f   :  { %4347 = dma.vmem_to_hbm [thread:$0]  %s4343_s8, 16, %s4345_s11, [#allocation10]  }
 0x470   :  { %7105 = dma.done.wait [#allocation4], 16  }
 0x471   :  { %7106 = vsyncadd [#allocation4], 4294967280 }
 0x472   :  { %7107 = dma.done.wait [#allocation10], 16  }
 0x473   :  { %7108 = vsyncadd [#allocation10], 4294967280 }
 0x474   :  { %4356 = vsyncpa [#allocation3], 1 }
 0x475   :  { %4357 = vsyncpa [#allocation6], 1 }
 0x476   :  { %4358 = vsyncpa [#allocation4], 1 }
 0x477   :  { %4359 = vsyncpa [#allocation10], 1 }

</bundles_post_ra>
